<compile_context>
chip_gen: v7x
topology: tpu7x:2x2x1
jax: 0.10.0
libtpu: 0.0.40
codegen_flags: <defaults>
</compile_context>

<pallas_src>
import functools

import jax
import jax.numpy as jnp
from jax.experimental import pallas as pl
from jax.experimental.pallas import tpu as pltpu

EPS = 1e-5


# ----------------------------------------------------------------------------
# Fused kernel factory
# ----------------------------------------------------------------------------
def _make_bottleneck_kernel(H, W, Ho, Wo, stride, Nb, use_conv_shortcut):
    HW = H * W
    PAD = 2 * W                      # h1 stored at pad rows [PAD, PAD + HW)

    def kernel(*refs):
        it = iter(refs)
        x_ref = next(it)
        w1_ref = next(it); b1_ref = next(it); a1_ref = next(it)
        w2_ref = next(it); b2_ref = next(it); a2_ref = next(it)
        w3_ref = next(it); b3_ref = next(it)
        wsc_ref = next(it) if use_conv_shortcut else None
        xsc_ref = next(it) if stride > 1 else None
        o_ref = next(it)
        pad_ref = next(it)           # (HW + 4W, red) bf16 zero-halo h1 copy
        acc_ref = next(it)           # (HW, red)      f32 conv2 accumulator

        f32, bf16 = jnp.float32, jnp.bfloat16
        red = acc_ref.shape[1]

        # Zero only the top/bottom halo rows: the interior is fully rewritten
        # for every image.  Done every grid step (not only step 0) because on
        # multi-TensorCore parts each core owns its scratch and only sees a
        # subset of grid steps; cost is just 4*W rows of bf16.
        zrow = jnp.zeros((2 * W, red), pad_ref.dtype)
        pad_ref[0:2 * W, :] = zrow
        pad_ref[PAD + HW:PAD + HW + 2 * W, :] = zrow

        # Column-edge masks for the 3x3 taps, hoisted out of the tap loop.
        col = jax.lax.broadcasted_iota(jnp.int32, (HW, 1), 0) % W
        mask_l = col >= 1            # dx == 0 taps: column x-1 invalid at x == 0
        mask_r = col <= W - 2        # dx == 2 taps: column x+1 invalid at x == W-1

        for nb in range(Nb):         # static unrolled loop over images in block
            # --- conv1 (1x1) with BN0 (input) / BN1 (output) folded + PReLU1 ---
            x_in = x_ref[nb]                                           # (HW, Cin) bf16
            h1 = jnp.dot(x_in, w1_ref[...], preferred_element_type=f32) + b1_ref[...]
            h1 = jnp.where(h1 >= 0.0, h1, a1_ref[...] * h1)
            pad_ref[PAD:PAD + HW, :] = h1.astype(bf16)                 # bf16 scratch

            # --- conv2 (3x3, pad=1): 9 shifted-window matmuls, BN2 scale folded,
            #     accumulated in place into the f32 VMEM scratch. ---
            for t in range(9):
                dy, dx = divmod(t, 3)
                off = PAD + (dy - 1) * W + (dx - 1)
                tap = pad_ref[off:off + HW, :]                         # (HW, red) bf16
                if dx == 0:
                    tap = jnp.where(mask_l, tap, 0.0)
                elif dx == 2:
                    tap = jnp.where(mask_r, tap, 0.0)
                upd = jnp.dot(tap, w2_ref[t], preferred_element_type=f32)
                if t == 0:
                    acc_ref[...] = upd
                else:
                    acc_ref[...] += upd

            # --- spatial stride (conv3 stride / MaxPool(1, stride)) ---
            # Strided sublane reads of the accumulator, one per output row
            # (no one-hot matmul, no jnp.pad, no reshapes).
            if stride == 1:
                h2 = acc_ref[...]                                      # (HW, red) f32
                xs = x_ref[nb]                                         # reload: short live range
            else:
                h2 = jnp.concatenate(
                    [acc_ref[pl.ds(y * stride * W, Wo, stride=stride), :]
                     for y in range(Ho)], axis=0)                      # (Ho*Wo, red) f32
                xs = xsc_ref[nb]                                       # (Ho*Wo, Cin) bf16

            # BN2 shift + PReLU2 after the subsample (elementwise per channel,
            # commutes with spatial subsampling -> fewer rows to activate).
            h2 = h2 + b2_ref[...]
            h2 = jnp.where(h2 >= 0.0, h2, a2_ref[...] * h2).astype(bf16)

            # --- conv3 (1x1) with BN3 folded + shortcut; single combined bias ---
            out = jnp.dot(h2, w3_ref[...], preferred_element_type=f32)
            if use_conv_shortcut:
                out = out + jnp.dot(xs, wsc_ref[...], preferred_element_type=f32)
            else:
                out = out + xs.astype(f32)
            out = out + b3_ref[...]                 # b3 (+ shortcut-BN shift)
            o_ref[nb] = out.astype(o_ref.dtype)

    return kernel


def _const_spec(shape):
    zeros = (0,) * len(shape)
    return pl.BlockSpec(shape, lambda n, _z=zeros: _z)


def _vmem_limit_bytes():
    # ~48 MiB ceiling keeps us inside v7x's 64 MiB physical VMEM; allow more
    # headroom on v5e/v6e (128 MiB).  Defensive: fall back to 48 MiB.
    try:
        cap = getattr(pltpu.get_tpu_info(), "vmem_capacity_bytes", None)
        if cap is not None and cap >= 100 * 1024 * 1024:
            return 96 * 1024 * 1024
    except Exception:
        pass
    return 48 * 1024 * 1024


def _pick_batch_block(N, per_image_bytes, budget_bytes=8 * 1024 * 1024):
    """Images per grid step: amortize per-step overhead, keep grid >= 2, fit VMEM."""
    if N <= 1:
        return 1
    cap = max(1, min(N // 2, budget_bytes // max(per_image_bytes, 1)))
    nb = 1
    for d in range(1, min(cap, N) + 1):
        if N % d == 0:
            nb = d
    return nb


# ----------------------------------------------------------------------------
# Parameter setup / BN folding (glue, plain JAX)
# ----------------------------------------------------------------------------
def _bn_fold(bn):
    s = bn["gamma"] / jnp.sqrt(bn["var"] + EPS)
    b = bn["beta"] - bn["mean"] * s
    return s, b


def init_params(key, in_ch, depth):
    red = depth // 4
    keys = jax.random.split(key, 9)

    def bn_init(k, c):
        k1, k2, k3, k4 = jax.random.split(k, 4)
        return dict(
            gamma=1.0 + 0.1 * jax.random.normal(k1, (c,), jnp.float32),
            beta=0.1 * jax.random.normal(k2, (c,), jnp.float32),
            mean=0.1 * jax.random.normal(k3, (c,), jnp.float32),
            var=0.5 + 0.5 * jnp.abs(jax.random.normal(k4, (c,), jnp.float32)),
        )

    p = {
        "bn0": bn_init(keys[0], in_ch),
        "w1": 0.2 * jax.random.normal(keys[1], (red, in_ch, 1, 1), jnp.float32),
        "bn1": bn_init(keys[2], red),
        "prelu1": jnp.full((red,), 0.25, jnp.float32),
        "w2": 0.2 * jax.random.normal(keys[3], (red, red, 3, 3), jnp.float32),
        "bn2": bn_init(keys[4], red),
        "prelu2": jnp.full((red,), 0.25, jnp.float32),
        "w3": 0.2 * jax.random.normal(keys[5], (depth, red, 1, 1), jnp.float32),
        "bn3": bn_init(keys[6], depth),
    }
    if in_ch != depth:
        p["w_sc"] = 0.2 * jax.random.normal(keys[7], (depth, in_ch, 1, 1), jnp.float32)
        p["bn_sc"] = bn_init(keys[8], depth)
    return p


# ----------------------------------------------------------------------------
# BottleneckIR forward (single fused Pallas call)
# ----------------------------------------------------------------------------
def bottleneck_ir_forward(x_nchw, params, stride, batch_block=None):
    N, Cin, H, W = x_nchw.shape
    red = params["w1"].shape[0]
    depth = params["w3"].shape[0]
    Ho = (H - 1) // stride + 1
    Wo = (W - 1) // stride + 1
    HW = H * W

    # NCHW -> NHWC bf16 once (layout needed for the matmul formulation).
    x_nhwc = jnp.transpose(x_nchw, (0, 2, 3, 1)).astype(jnp.bfloat16)
    x2 = x_nhwc.reshape(N, HW, Cin)

    s0, b0 = _bn_fold(params["bn0"])
    s1, b1 = _bn_fold(params["bn1"])
    s2, b2 = _bn_fold(params["bn2"])
    s3, b3 = _bn_fold(params["bn3"])

    # conv1: fold BN0 (input side) and BN1 (output side) into weights / bias.
    w1 = params["w1"][:, :, 0, 0]                                     # (red, Cin)
    w1f = ((w1.T * s0[:, None]) * s1[None, :]).astype(jnp.bfloat16)   # (Cin, red)
    b1f = ((b0 @ w1.T) * s1 + b1).reshape(1, red).astype(jnp.float32)
    a1 = params["prelu1"].reshape(1, red).astype(jnp.float32)

    # conv2: per-tap (in, out) weights with BN2 scale folded in.
    w2f = (jnp.transpose(params["w2"], (2, 3, 1, 0)) * s2).reshape(
        9, red, red).astype(jnp.bfloat16)
    b2f = b2.reshape(1, red).astype(jnp.float32)
    a2 = params["prelu2"].reshape(1, red).astype(jnp.float32)

    # conv3: fold BN3 scale; fold the shortcut-BN shift into one combined bias.
    w3f = (params["w3"][:, :, 0, 0].T * s3[None, :]).astype(jnp.bfloat16)  # (red, depth)
    use_conv_sc = "w_sc" in params
    if use_conv_sc:
        s_sc, b_sc = _bn_fold(params["bn_sc"])
        wscf = (params["w_sc"][:, :, 0, 0].T * s_sc[None, :]).astype(jnp.bfloat16)
        bcat = (b3 + b_sc).reshape(1, depth).astype(jnp.float32)
    else:
        wscf = None
        bcat = b3.reshape(1, depth).astype(jnp.float32)

    inputs = [x2, w1f, b1f, a1, w2f, b2f, a2, w3f, bcat]
    if use_conv_sc:
        inputs.append(wscf)
    if stride > 1:
        # Shortcut rows (x at the strided output positions), sliced once in the
        # wrapper (tiny Ho*Wo*Cin bf16 array) so the kernel never needs a
        # strided load of packed bf16 input.
        xsc = x_nhwc[:, ::stride, ::stride, :].reshape(N, Ho * Wo, Cin)
        inputs.append(xsc)

    per_img = 2 * (HW * Cin * 2 + Ho * Wo * depth * 2
                   + (Ho * Wo * Cin * 2 if stride > 1 else 0))
    Nb = batch_block or _pick_batch_block(N, per_img)

    in_specs = [pl.BlockSpec((Nb, HW, Cin), lambda n: (n, 0, 0))]
    in_specs += [_const_spec(a.shape) for a in inputs[1:9]]
    if use_conv_sc:
        in_specs.append(_const_spec(wscf.shape))
    if stride > 1:
        in_specs.append(pl.BlockSpec((Nb, Ho * Wo, Cin), lambda n: (n, 0, 0)))

    kernel = _make_bottleneck_kernel(H, W, Ho, Wo, stride, Nb, use_conv_sc)

    out = pl.pallas_call(
        kernel,
        out_shape=jax.ShapeDtypeStruct((N, Ho * Wo, depth), jnp.bfloat16),
        grid_spec=pltpu.PrefetchScalarGridSpec(
            num_scalar_prefetch=0,
            grid=(N // Nb,),
            in_specs=in_specs,
            out_specs=pl.BlockSpec((Nb, Ho * Wo, depth), lambda n: (n, 0, 0)),
            scratch_shapes=[
                pltpu.VMEM((HW + 4 * W, red), jnp.bfloat16),   # zero-halo h1 copy
                pltpu.VMEM((HW, red), jnp.float32),            # conv2 accumulator
            ],
        ),
        compiler_params=pltpu.CompilerParams(
            dimension_semantics=("parallel",),
            vmem_limit_bytes=_vmem_limit_bytes(),
        ),
    )(*inputs)

    out = out.reshape(N, Ho, Wo, depth)
    return jnp.transpose(out, (0, 3, 1, 2))        # NCHW, bf16


# ----------------------------------------------------------------------------
# Pure-JAX reference (mirrors the PyTorch module in eval mode)
# ----------------------------------------------------------------------------
def reference_forward(x, params, stride):
    def bn(t, p):
        s = p["gamma"] / jnp.sqrt(p["var"] + EPS)
        return t * s[None, :, None, None] + (p["beta"] - p["mean"] * s)[None, :, None, None]

    def conv(t, w, st=1, pad=0):
        return jax.lax.conv_general_dilated(
            t, w, (st, st), [(pad, pad), (pad, pad)],
            dimension_numbers=("NCHW", "OIHW", "NCHW"),
        )

    def prelu(t, a):
        return jnp.where(t >= 0, t, a[None, :, None, None] * t)

    if "w_sc" in params:
        shortcut = bn(conv(x, params["w_sc"], stride), params["bn_sc"])
    else:
        shortcut = x[:, :, ::stride, ::stride]

    r = bn(x, params["bn0"])
    r = bn(conv(r, params["w1"]), params["bn1"])
    r = prelu(r, params["prelu1"])
    r = bn(conv(r, params["w2"], 1, 1), params["bn2"])
    r = prelu(r, params["prelu2"])
    r = bn(conv(r, params["w3"], stride), params["bn3"])
    return r + shortcut


def _run_case(name, key, N, in_channel, depth, stride, H, W):
    kx, kp = jax.random.split(key)
    x = jax.random.normal(kx, (N, in_channel, H, W), jnp.float32)
    params = init_params(kp, in_channel, depth)

    fwd = jax.jit(functools.partial(bottleneck_ir_forward, stride=stride))
    out = jax.block_until_ready(fwd(x, params))

    ref = reference_forward(x, params, stride)
    Ho = (H - 1) // stride + 1
    Wo = (W - 1) // stride + 1
    assert out.shape == (N, depth, Ho, Wo), (name, out.shape)
    outf = out.astype(jnp.float32)
    err = float(jnp.max(jnp.abs(outf - ref)))
    assert jnp.allclose(outf, ref, rtol=5e-2, atol=5e-2), (name, err)
    return err


if __name__ == "__main__":
    key = jax.random.PRNGKey(0)
    k1, k2, k3 = jax.random.split(key, 3)

    # conv shortcut (in_channel != depth), stride 2
    _run_case("conv_sc_s2", k1, N=2, in_channel=4, depth=16, stride=2, H=16, W=16)
    # identity shortcut (MaxPool(1, stride)), stride 2
    _run_case("identity_s2", k2, N=2, in_channel=16, depth=16, stride=2, H=8, W=8)
    # identity shortcut, stride 1, multiple images per grid step (Nb = 2)
    _run_case("identity_s1", k3, N=4, in_channel=16, depth=16, stride=1, H=8, W=8)

    print("KERNEL_OK")
</pallas_src>

<mosaic_0001>
module attributes {stable_mosaic.version = 11 : i64} {
  func.func @kernel(%arg0: i32, %arg1: memref<1x256x4xbf16, #tpu.memory_space<vmem>>, %arg2: memref<4x4xbf16, #tpu.memory_space<vmem>>, %arg3: memref<1x4xf32, #tpu.memory_space<vmem>>, %arg4: memref<1x4xf32, #tpu.memory_space<vmem>>, %arg5: memref<9x4x4xbf16, #tpu.memory_space<vmem>>, %arg6: memref<1x4xf32, #tpu.memory_space<vmem>>, %arg7: memref<1x4xf32, #tpu.memory_space<vmem>>, %arg8: memref<4x16xbf16, #tpu.memory_space<vmem>>, %arg9: memref<1x16xf32, #tpu.memory_space<vmem>>, %arg10: memref<4x16xbf16, #tpu.memory_space<vmem>>, %arg11: memref<1x64x4xbf16, #tpu.memory_space<vmem>>, %arg12: memref<1x64x16xbf16, #tpu.memory_space<vmem>>, %arg13: memref<320x4xbf16, #tpu.memory_space<vmem>>, %arg14: memref<256x4xf32, #tpu.memory_space<vmem>>) attributes {dimension_semantics = [#tpu.dimension_semantics<parallel>], iteration_bounds = array<i64: 2>, scalar_prefetch = 0 : i64, scratch_operands = 2 : i64, tpu.core_type = #tpu.core_type<tc>, window_params = [{transform_indices = @transform_0, window_bounds = array<i64: 1, 256, 4>}, {pipeline_mode = #tpu.pipeline_mode<synchronous>, transform_indices = @transform_1, window_bounds = array<i64: 4, 4>}, {pipeline_mode = #tpu.pipeline_mode<synchronous>, transform_indices = @transform_2, window_bounds = array<i64: 1, 4>}, {pipeline_mode = #tpu.pipeline_mode<synchronous>, transform_indices = @transform_3, window_bounds = array<i64: 1, 4>}, {pipeline_mode = #tpu.pipeline_mode<synchronous>, transform_indices = @transform_4, window_bounds = array<i64: 9, 4, 4>}, {pipeline_mode = #tpu.pipeline_mode<synchronous>, transform_indices = @transform_5, window_bounds = array<i64: 1, 4>}, {pipeline_mode = #tpu.pipeline_mode<synchronous>, transform_indices = @transform_6, window_bounds = array<i64: 1, 4>}, {pipeline_mode = #tpu.pipeline_mode<synchronous>, transform_indices = @transform_7, window_bounds = array<i64: 4, 16>}, {pipeline_mode = #tpu.pipeline_mode<synchronous>, transform_indices = @transform_8, window_bounds = array<i64: 1, 16>}, {pipeline_mode = #tpu.pipeline_mode<synchronous>, transform_indices = @transform_9, window_bounds = array<i64: 4, 16>}, {transform_indices = @transform_10, window_bounds = array<i64: 1, 64, 4>}, {transform_indices = @transform_11, window_bounds = array<i64: 1, 64, 16>}]} {
    %cst = arith.constant 0.000000e+00 : bf16
    %0 = vector.broadcast %cst : bf16 to vector<32x4xbf16>
    %c0 = arith.constant 0 : index
    %c0_0 = arith.constant 0 : index
    %1 = vector.load %arg13[%c0, %c0_0] : memref<320x4xbf16, #tpu.memory_space<vmem>>, vector<32x4xbf16>
    tpu.vector_store %arg13[%c0, %c0_0], %0 {strides = array<i32>} : memref<320x4xbf16, #tpu.memory_space<vmem>>, vector<32x4xbf16>,
    %c288 = arith.constant 288 : index
    %c0_1 = arith.constant 0 : index
    %2 = vector.load %arg13[%c288, %c0_1] : memref<320x4xbf16, #tpu.memory_space<vmem>>, vector<32x4xbf16>
    tpu.vector_store %arg13[%c288, %c0_1], %0 {strides = array<i32>} : memref<320x4xbf16, #tpu.memory_space<vmem>>, vector<32x4xbf16>,
    %3 = tpu.iota {dimensions = array<i32: 0>} : vector<256x1xi32>
    %c16_i32 = arith.constant 16 : i32
    %c0_i32 = arith.constant 0 : i32
    %4 = arith.cmpi eq, %c16_i32, %c0_i32 : i32
    %c1_i32 = arith.constant 1 : i32
    %5 = arith.select %4, %c1_i32, %c16_i32 : i32
    %6 = vector.broadcast %5 : i32 to vector<256x1xi32>
    %7 = arith.remsi %3, %6 : vector<256x1xi32>
    %c0_i32_2 = arith.constant 0 : i32
    %8 = vector.broadcast %c0_i32_2 : i32 to vector<256x1xi32>
    %9 = arith.cmpi ne, %7, %8 : vector<256x1xi32>
    %c0_i32_3 = arith.constant 0 : i32
    %10 = vector.broadcast %c0_i32_3 : i32 to vector<256x1xi32>
    %11 = arith.cmpi slt, %7, %10 : vector<256x1xi32>
    %c0_i32_4 = arith.constant 0 : i32
    %12 = arith.cmpi slt, %5, %c0_i32_4 : i32
    %13 = vector.broadcast %12 : i1 to vector<256x1xi1>
    %14 = vector.broadcast %13 : vector<256x1xi1> to vector<256x1xi1>
    %15 = arith.xori %11, %14 : vector<256x1xi1>
    %16 = arith.andi %15, %9 : vector<256x1xi1>
    %17 = vector.broadcast %5 : i32 to vector<256x1xi32>
    %18 = arith.addi %7, %17 : vector<256x1xi32>
    %19 = arith.select %16, %18, %7 : vector<256x1xi1>, vector<256x1xi32>
    %c1_i32_5 = arith.constant 1 : i32
    %20 = vector.broadcast %c1_i32_5 : i32 to vector<256x1xi32>
    %21 = arith.cmpi sge, %19, %20 : vector<256x1xi32>
    %c14_i32 = arith.constant 14 : i32
    %22 = vector.broadcast %c14_i32 : i32 to vector<256x1xi32>
    %23 = arith.cmpi sle, %19, %22 : vector<256x1xi32>
    %c0_6 = arith.constant 0 : index
    %c0_7 = arith.constant 0 : index
    %c0_8 = arith.constant 0 : index
    %24 = vector.load %arg1[%c0_6, %c0_7, %c0_8] : memref<1x256x4xbf16, #tpu.memory_space<vmem>>, vector<1x256x4xbf16>
    %25 = vector.shape_cast %24 : vector<1x256x4xbf16> to vector<256x4xbf16>
    %c0_9 = arith.constant 0 : index
    %c0_10 = arith.constant 0 : index
    %26 = vector.load %arg2[%c0_9, %c0_10] : memref<4x4xbf16, #tpu.memory_space<vmem>>, vector<4x4xbf16>
    %cst_11 = arith.constant dense<0.000000e+00> : vector<256x4xf32>
    %27 = tpu.matmul %25, %26, %cst_11 {dimension_numbers = #tpu.dot_dimension_numbers<[1], [0], [0], [1], [0, 0, 1, 1], [], []>} : vector<256x4xbf16>, vector<4x4xbf16>, vector<256x4xf32> -> vector<256x4xf32>
    %c0_12 = arith.constant 0 : index
    %c0_13 = arith.constant 0 : index
    %28 = vector.load %arg3[%c0_12, %c0_13] : memref<1x4xf32, #tpu.memory_space<vmem>>, vector<1x4xf32>
    %29 = vector.broadcast %28 : vector<1x4xf32> to vector<256x4xf32>
    %30 = arith.addf %27, %29 : vector<256x4xf32>
    %cst_14 = arith.constant 0.000000e+00 : f32
    %31 = vector.broadcast %cst_14 : f32 to vector<256x4xf32>
    %32 = arith.cmpf oge, %30, %31 : vector<256x4xf32>
    %c0_15 = arith.constant 0 : index
    %c0_16 = arith.constant 0 : index
    %33 = vector.load %arg4[%c0_15, %c0_16] : memref<1x4xf32, #tpu.memory_space<vmem>>, vector<1x4xf32>
    %34 = vector.broadcast %33 : vector<1x4xf32> to vector<256x4xf32>
    %35 = arith.mulf %34, %30 : vector<256x4xf32>
    %36 = arith.select %32, %30, %35 : vector<256x4xi1>, vector<256x4xf32>
    %37 = arith.truncf %36 : vector<256x4xf32> to vector<256x4xbf16>
    %c32 = arith.constant 32 : index
    %c0_17 = arith.constant 0 : index
    %38 = vector.load %arg13[%c32, %c0_17] : memref<320x4xbf16, #tpu.memory_space<vmem>>, vector<256x4xbf16>
    tpu.vector_store %arg13[%c32, %c0_17], %37 {strides = array<i32>} : memref<320x4xbf16, #tpu.memory_space<vmem>>, vector<256x4xbf16>,
    %c15 = arith.constant 15 : index
    %c0_18 = arith.constant 0 : index
    %39 = vector.load %arg13[%c15, %c0_18] : memref<320x4xbf16, #tpu.memory_space<vmem>>, vector<256x4xbf16>
    %cst_19 = arith.constant 0.000000e+00 : f32
    %40 = arith.truncf %cst_19 : f32 to bf16
    %41 = vector.shape_cast %21 : vector<256x1xi1> to vector<256x1xi1>
    %42 = vector.broadcast %41 : vector<256x1xi1> to vector<256x4xi1>
    %43 = vector.broadcast %40 : bf16 to vector<256x4xbf16>
    %44 = arith.select %42, %39, %43 : vector<256x4xi1>, vector<256x4xbf16>
    %c0_20 = arith.constant 0 : index
    %c0_21 = arith.constant 0 : index
    %c0_22 = arith.constant 0 : index
    %45 = vector.load %arg5[%c0_20, %c0_21, %c0_22] : memref<9x4x4xbf16, #tpu.memory_space<vmem>>, vector<1x4x4xbf16>
    %46 = vector.shape_cast %45 : vector<1x4x4xbf16> to vector<4x4xbf16>
    %cst_23 = arith.constant dense<0.000000e+00> : vector<256x4xf32>
    %47 = tpu.matmul %44, %46, %cst_23 {dimension_numbers = #tpu.dot_dimension_numbers<[1], [0], [0], [1], [0, 0, 1, 1], [], []>} : vector<256x4xbf16>, vector<4x4xbf16>, vector<256x4xf32> -> vector<256x4xf32>
    %c0_24 = arith.constant 0 : index
    %c0_25 = arith.constant 0 : index
    %48 = vector.load %arg14[%c0_24, %c0_25] : memref<256x4xf32, #tpu.memory_space<vmem>>, vector<256x4xf32>
    tpu.vector_store %arg14[%c0_24, %c0_25], %47 {strides = array<i32>} : memref<256x4xf32, #tpu.memory_space<vmem>>, vector<256x4xf32>,
    %c16 = arith.constant 16 : index
    %c0_26 = arith.constant 0 : index
    %49 = vector.load %arg13[%c16, %c0_26] : memref<320x4xbf16, #tpu.memory_space<vmem>>, vector<256x4xbf16>
    %c1 = arith.constant 1 : index
    %c0_27 = arith.constant 0 : index
    %c0_28 = arith.constant 0 : index
    %50 = vector.load %arg5[%c1, %c0_27, %c0_28] : memref<9x4x4xbf16, #tpu.memory_space<vmem>>, vector<1x4x4xbf16>
    %51 = vector.shape_cast %50 : vector<1x4x4xbf16> to vector<4x4xbf16>
    %cst_29 = arith.constant dense<0.000000e+00> : vector<256x4xf32>
    %52 = tpu.matmul %49, %51, %cst_29 {dimension_numbers = #tpu.dot_dimension_numbers<[1], [0], [0], [1], [0, 0, 1, 1], [], []>} : vector<256x4xbf16>, vector<4x4xbf16>, vector<256x4xf32> -> vector<256x4xf32>
    %c0_30 = arith.constant 0 : index
    %c0_31 = arith.constant 0 : index
    %53 = vector.load %arg14[%c0_30, %c0_31] : memref<256x4xf32, #tpu.memory_space<vmem>>, vector<256x4xf32>
    %54 = arith.addf %53, %52 : vector<256x4xf32>
    %c0_32 = arith.constant 0 : index
    %c0_33 = arith.constant 0 : index
    %55 = vector.load %arg14[%c0_32, %c0_33] : memref<256x4xf32, #tpu.memory_space<vmem>>, vector<256x4xf32>
    tpu.vector_store %arg14[%c0_32, %c0_33], %54 {strides = array<i32>} : memref<256x4xf32, #tpu.memory_space<vmem>>, vector<256x4xf32>,
    %c17 = arith.constant 17 : index
    %c0_34 = arith.constant 0 : index
    %56 = vector.load %arg13[%c17, %c0_34] : memref<320x4xbf16, #tpu.memory_space<vmem>>, vector<256x4xbf16>
    %cst_35 = arith.constant 0.000000e+00 : f32
    %57 = arith.truncf %cst_35 : f32 to bf16
    %58 = vector.shape_cast %23 : vector<256x1xi1> to vector<256x1xi1>
    %59 = vector.broadcast %58 : vector<256x1xi1> to vector<256x4xi1>
    %60 = vector.broadcast %57 : bf16 to vector<256x4xbf16>
    %61 = arith.select %59, %56, %60 : vector<256x4xi1>, vector<256x4xbf16>
    %c2 = arith.constant 2 : index
    %c0_36 = arith.constant 0 : index
    %c0_37 = arith.constant 0 : index
    %62 = vector.load %arg5[%c2, %c0_36, %c0_37] : memref<9x4x4xbf16, #tpu.memory_space<vmem>>, vector<1x4x4xbf16>
    %63 = vector.shape_cast %62 : vector<1x4x4xbf16> to vector<4x4xbf16>
    %cst_38 = arith.constant dense<0.000000e+00> : vector<256x4xf32>
    %64 = tpu.matmul %61, %63, %cst_38 {dimension_numbers = #tpu.dot_dimension_numbers<[1], [0], [0], [1], [0, 0, 1, 1], [], []>} : vector<256x4xbf16>, vector<4x4xbf16>, vector<256x4xf32> -> vector<256x4xf32>
    %c0_39 = arith.constant 0 : index
    %c0_40 = arith.constant 0 : index
    %65 = vector.load %arg14[%c0_39, %c0_40] : memref<256x4xf32, #tpu.memory_space<vmem>>, vector<256x4xf32>
    %66 = arith.addf %65, %64 : vector<256x4xf32>
    %c0_41 = arith.constant 0 : index
    %c0_42 = arith.constant 0 : index
    %67 = vector.load %arg14[%c0_41, %c0_42] : memref<256x4xf32, #tpu.memory_space<vmem>>, vector<256x4xf32>
    tpu.vector_store %arg14[%c0_41, %c0_42], %66 {strides = array<i32>} : memref<256x4xf32, #tpu.memory_space<vmem>>, vector<256x4xf32>,
    %c31 = arith.constant 31 : index
    %c0_43 = arith.constant 0 : index
    %68 = vector.load %arg13[%c31, %c0_43] : memref<320x4xbf16, #tpu.memory_space<vmem>>, vector<256x4xbf16>
    %cst_44 = arith.constant 0.000000e+00 : f32
    %69 = arith.truncf %cst_44 : f32 to bf16
    %70 = vector.shape_cast %21 : vector<256x1xi1> to vector<256x1xi1>
    %71 = vector.broadcast %70 : vector<256x1xi1> to vector<256x4xi1>
    %72 = vector.broadcast %69 : bf16 to vector<256x4xbf16>
    %73 = arith.select %71, %68, %72 : vector<256x4xi1>, vector<256x4xbf16>
    %c3 = arith.constant 3 : index
    %c0_45 = arith.constant 0 : index
    %c0_46 = arith.constant 0 : index
    %74 = vector.load %arg5[%c3, %c0_45, %c0_46] : memref<9x4x4xbf16, #tpu.memory_space<vmem>>, vector<1x4x4xbf16>
    %75 = vector.shape_cast %74 : vector<1x4x4xbf16> to vector<4x4xbf16>
    %cst_47 = arith.constant dense<0.000000e+00> : vector<256x4xf32>
    %76 = tpu.matmul %73, %75, %cst_47 {dimension_numbers = #tpu.dot_dimension_numbers<[1], [0], [0], [1], [0, 0, 1, 1], [], []>} : vector<256x4xbf16>, vector<4x4xbf16>, vector<256x4xf32> -> vector<256x4xf32>
    %c0_48 = arith.constant 0 : index
    %c0_49 = arith.constant 0 : index
    %77 = vector.load %arg14[%c0_48, %c0_49] : memref<256x4xf32, #tpu.memory_space<vmem>>, vector<256x4xf32>
    %78 = arith.addf %77, %76 : vector<256x4xf32>
    %c0_50 = arith.constant 0 : index
    %c0_51 = arith.constant 0 : index
    %79 = vector.load %arg14[%c0_50, %c0_51] : memref<256x4xf32, #tpu.memory_space<vmem>>, vector<256x4xf32>
    tpu.vector_store %arg14[%c0_50, %c0_51], %78 {strides = array<i32>} : memref<256x4xf32, #tpu.memory_space<vmem>>, vector<256x4xf32>,
    %c32_52 = arith.constant 32 : index
    %c0_53 = arith.constant 0 : index
    %80 = vector.load %arg13[%c32_52, %c0_53] : memref<320x4xbf16, #tpu.memory_space<vmem>>, vector<256x4xbf16>
    %c4 = arith.constant 4 : index
    %c0_54 = arith.constant 0 : index
    %c0_55 = arith.constant 0 : index
    %81 = vector.load %arg5[%c4, %c0_54, %c0_55] : memref<9x4x4xbf16, #tpu.memory_space<vmem>>, vector<1x4x4xbf16>
    %82 = vector.shape_cast %81 : vector<1x4x4xbf16> to vector<4x4xbf16>
    %cst_56 = arith.constant dense<0.000000e+00> : vector<256x4xf32>
    %83 = tpu.matmul %80, %82, %cst_56 {dimension_numbers = #tpu.dot_dimension_numbers<[1], [0], [0], [1], [0, 0, 1, 1], [], []>} : vector<256x4xbf16>, vector<4x4xbf16>, vector<256x4xf32> -> vector<256x4xf32>
    %c0_57 = arith.constant 0 : index
    %c0_58 = arith.constant 0 : index
    %84 = vector.load %arg14[%c0_57, %c0_58] : memref<256x4xf32, #tpu.memory_space<vmem>>, vector<256x4xf32>
    %85 = arith.addf %84, %83 : vector<256x4xf32>
    %c0_59 = arith.constant 0 : index
    %c0_60 = arith.constant 0 : index
    %86 = vector.load %arg14[%c0_59, %c0_60] : memref<256x4xf32, #tpu.memory_space<vmem>>, vector<256x4xf32>
    tpu.vector_store %arg14[%c0_59, %c0_60], %85 {strides = array<i32>} : memref<256x4xf32, #tpu.memory_space<vmem>>, vector<256x4xf32>,
    %c33 = arith.constant 33 : index
    %c0_61 = arith.constant 0 : index
    %87 = vector.load %arg13[%c33, %c0_61] : memref<320x4xbf16, #tpu.memory_space<vmem>>, vector<256x4xbf16>
    %cst_62 = arith.constant 0.000000e+00 : f32
    %88 = arith.truncf %cst_62 : f32 to bf16
    %89 = vector.shape_cast %23 : vector<256x1xi1> to vector<256x1xi1>
    %90 = vector.broadcast %89 : vector<256x1xi1> to vector<256x4xi1>
    %91 = vector.broadcast %88 : bf16 to vector<256x4xbf16>
    %92 = arith.select %90, %87, %91 : vector<256x4xi1>, vector<256x4xbf16>
    %c5 = arith.constant 5 : index
    %c0_63 = arith.constant 0 : index
    %c0_64 = arith.constant 0 : index
    %93 = vector.load %arg5[%c5, %c0_63, %c0_64] : memref<9x4x4xbf16, #tpu.memory_space<vmem>>, vector<1x4x4xbf16>
    %94 = vector.shape_cast %93 : vector<1x4x4xbf16> to vector<4x4xbf16>
    %cst_65 = arith.constant dense<0.000000e+00> : vector<256x4xf32>
    %95 = tpu.matmul %92, %94, %cst_65 {dimension_numbers = #tpu.dot_dimension_numbers<[1], [0], [0], [1], [0, 0, 1, 1], [], []>} : vector<256x4xbf16>, vector<4x4xbf16>, vector<256x4xf32> -> vector<256x4xf32>
    %c0_66 = arith.constant 0 : index
    %c0_67 = arith.constant 0 : index
    %96 = vector.load %arg14[%c0_66, %c0_67] : memref<256x4xf32, #tpu.memory_space<vmem>>, vector<256x4xf32>
    %97 = arith.addf %96, %95 : vector<256x4xf32>
    %c0_68 = arith.constant 0 : index
    %c0_69 = arith.constant 0 : index
    %98 = vector.load %arg14[%c0_68, %c0_69] : memref<256x4xf32, #tpu.memory_space<vmem>>, vector<256x4xf32>
    tpu.vector_store %arg14[%c0_68, %c0_69], %97 {strides = array<i32>} : memref<256x4xf32, #tpu.memory_space<vmem>>, vector<256x4xf32>,
    %c47 = arith.constant 47 : index
    %c0_70 = arith.constant 0 : index
    %99 = vector.load %arg13[%c47, %c0_70] : memref<320x4xbf16, #tpu.memory_space<vmem>>, vector<256x4xbf16>
    %cst_71 = arith.constant 0.000000e+00 : f32
    %100 = arith.truncf %cst_71 : f32 to bf16
    %101 = vector.shape_cast %21 : vector<256x1xi1> to vector<256x1xi1>
    %102 = vector.broadcast %101 : vector<256x1xi1> to vector<256x4xi1>
    %103 = vector.broadcast %100 : bf16 to vector<256x4xbf16>
    %104 = arith.select %102, %99, %103 : vector<256x4xi1>, vector<256x4xbf16>
    %c6 = arith.constant 6 : index
    %c0_72 = arith.constant 0 : index
    %c0_73 = arith.constant 0 : index
    %105 = vector.load %arg5[%c6, %c0_72, %c0_73] : memref<9x4x4xbf16, #tpu.memory_space<vmem>>, vector<1x4x4xbf16>
    %106 = vector.shape_cast %105 : vector<1x4x4xbf16> to vector<4x4xbf16>
    %cst_74 = arith.constant dense<0.000000e+00> : vector<256x4xf32>
    %107 = tpu.matmul %104, %106, %cst_74 {dimension_numbers = #tpu.dot_dimension_numbers<[1], [0], [0], [1], [0, 0, 1, 1], [], []>} : vector<256x4xbf16>, vector<4x4xbf16>, vector<256x4xf32> -> vector<256x4xf32>
    %c0_75 = arith.constant 0 : index
    %c0_76 = arith.constant 0 : index
    %108 = vector.load %arg14[%c0_75, %c0_76] : memref<256x4xf32, #tpu.memory_space<vmem>>, vector<256x4xf32>
    %109 = arith.addf %108, %107 : vector<256x4xf32>
    %c0_77 = arith.constant 0 : index
    %c0_78 = arith.constant 0 : index
    %110 = vector.load %arg14[%c0_77, %c0_78] : memref<256x4xf32, #tpu.memory_space<vmem>>, vector<256x4xf32>
    tpu.vector_store %arg14[%c0_77, %c0_78], %109 {strides = array<i32>} : memref<256x4xf32, #tpu.memory_space<vmem>>, vector<256x4xf32>,
    %c48 = arith.constant 48 : index
    %c0_79 = arith.constant 0 : index
    %111 = vector.load %arg13[%c48, %c0_79] : memref<320x4xbf16, #tpu.memory_space<vmem>>, vector<256x4xbf16>
    %c7 = arith.constant 7 : index
    %c0_80 = arith.constant 0 : index
    %c0_81 = arith.constant 0 : index
    %112 = vector.load %arg5[%c7, %c0_80, %c0_81] : memref<9x4x4xbf16, #tpu.memory_space<vmem>>, vector<1x4x4xbf16>
    %113 = vector.shape_cast %112 : vector<1x4x4xbf16> to vector<4x4xbf16>
    %cst_82 = arith.constant dense<0.000000e+00> : vector<256x4xf32>
    %114 = tpu.matmul %111, %113, %cst_82 {dimension_numbers = #tpu.dot_dimension_numbers<[1], [0], [0], [1], [0, 0, 1, 1], [], []>} : vector<256x4xbf16>, vector<4x4xbf16>, vector<256x4xf32> -> vector<256x4xf32>
    %c0_83 = arith.constant 0 : index
    %c0_84 = arith.constant 0 : index
    %115 = vector.load %arg14[%c0_83, %c0_84] : memref<256x4xf32, #tpu.memory_space<vmem>>, vector<256x4xf32>
    %116 = arith.addf %115, %114 : vector<256x4xf32>
    %c0_85 = arith.constant 0 : index
    %c0_86 = arith.constant 0 : index
    %117 = vector.load %arg14[%c0_85, %c0_86] : memref<256x4xf32, #tpu.memory_space<vmem>>, vector<256x4xf32>
    tpu.vector_store %arg14[%c0_85, %c0_86], %116 {strides = array<i32>} : memref<256x4xf32, #tpu.memory_space<vmem>>, vector<256x4xf32>,
    %c49 = arith.constant 49 : index
    %c0_87 = arith.constant 0 : index
    %118 = vector.load %arg13[%c49, %c0_87] : memref<320x4xbf16, #tpu.memory_space<vmem>>, vector<256x4xbf16>
    %cst_88 = arith.constant 0.000000e+00 : f32
    %119 = arith.truncf %cst_88 : f32 to bf16
    %120 = vector.shape_cast %23 : vector<256x1xi1> to vector<256x1xi1>
    %121 = vector.broadcast %120 : vector<256x1xi1> to vector<256x4xi1>
    %122 = vector.broadcast %119 : bf16 to vector<256x4xbf16>
    %123 = arith.select %121, %118, %122 : vector<256x4xi1>, vector<256x4xbf16>
    %c8 = arith.constant 8 : index
    %c0_89 = arith.constant 0 : index
    %c0_90 = arith.constant 0 : index
    %124 = vector.load %arg5[%c8, %c0_89, %c0_90] : memref<9x4x4xbf16, #tpu.memory_space<vmem>>, vector<1x4x4xbf16>
    %125 = vector.shape_cast %124 : vector<1x4x4xbf16> to vector<4x4xbf16>
    %cst_91 = arith.constant dense<0.000000e+00> : vector<256x4xf32>
    %126 = tpu.matmul %123, %125, %cst_91 {dimension_numbers = #tpu.dot_dimension_numbers<[1], [0], [0], [1], [0, 0, 1, 1], [], []>} : vector<256x4xbf16>, vector<4x4xbf16>, vector<256x4xf32> -> vector<256x4xf32>
    %c0_92 = arith.constant 0 : index
    %c0_93 = arith.constant 0 : index
    %127 = vector.load %arg14[%c0_92, %c0_93] : memref<256x4xf32, #tpu.memory_space<vmem>>, vector<256x4xf32>
    %128 = arith.addf %127, %126 : vector<256x4xf32>
    %c0_94 = arith.constant 0 : index
    %c0_95 = arith.constant 0 : index
    %129 = vector.load %arg14[%c0_94, %c0_95] : memref<256x4xf32, #tpu.memory_space<vmem>>, vector<256x4xf32>
    tpu.vector_store %arg14[%c0_94, %c0_95], %128 {strides = array<i32>} : memref<256x4xf32, #tpu.memory_space<vmem>>, vector<256x4xf32>,
    %c0_96 = arith.constant 0 : index
    %c0_97 = arith.constant 0 : index
    %130 = tpu.strided_load %arg14[%c0_96, %c0_97] {strides = array<i32: 2, 1>} : memref<256x4xf32, #tpu.memory_space<vmem>>, vector<8x4xf32>
    %c32_98 = arith.constant 32 : index
    %c0_99 = arith.constant 0 : index
    %131 = tpu.strided_load %arg14[%c32_98, %c0_99] {strides = array<i32: 2, 1>} : memref<256x4xf32, #tpu.memory_space<vmem>>, vector<8x4xf32>
    %c64 = arith.constant 64 : index
    %c0_100 = arith.constant 0 : index
    %132 = tpu.strided_load %arg14[%c64, %c0_100] {strides = array<i32: 2, 1>} : memref<256x4xf32, #tpu.memory_space<vmem>>, vector<8x4xf32>
    %c96 = arith.constant 96 : index
    %c0_101 = arith.constant 0 : index
    %133 = tpu.strided_load %arg14[%c96, %c0_101] {strides = array<i32: 2, 1>} : memref<256x4xf32, #tpu.memory_space<vmem>>, vector<8x4xf32>
    %c128 = arith.constant 128 : index
    %c0_102 = arith.constant 0 : index
    %134 = tpu.strided_load %arg14[%c128, %c0_102] {strides = array<i32: 2, 1>} : memref<256x4xf32, #tpu.memory_space<vmem>>, vector<8x4xf32>
    %c160 = arith.constant 160 : index
    %c0_103 = arith.constant 0 : index
    %135 = tpu.strided_load %arg14[%c160, %c0_103] {strides = array<i32: 2, 1>} : memref<256x4xf32, #tpu.memory_space<vmem>>, vector<8x4xf32>
    %c192 = arith.constant 192 : index
    %c0_104 = arith.constant 0 : index
    %136 = tpu.strided_load %arg14[%c192, %c0_104] {strides = array<i32: 2, 1>} : memref<256x4xf32, #tpu.memory_space<vmem>>, vector<8x4xf32>
    %c224 = arith.constant 224 : index
    %c0_105 = arith.constant 0 : index
    %137 = tpu.strided_load %arg14[%c224, %c0_105] {strides = array<i32: 2, 1>} : memref<256x4xf32, #tpu.memory_space<vmem>>, vector<8x4xf32>
    %138 = tpu.concatenate %130, %131, %132, %133, %134, %135, %136, %137 in 0 : vector<8x4xf32>, vector<8x4xf32>, vector<8x4xf32>, vector<8x4xf32>, vector<8x4xf32>, vector<8x4xf32>, vector<8x4xf32>, vector<8x4xf32> -> vector<64x4xf32>
    %c0_106 = arith.constant 0 : index
    %c0_107 = arith.constant 0 : index
    %c0_108 = arith.constant 0 : index
    %139 = vector.load %arg11[%c0_106, %c0_107, %c0_108] : memref<1x64x4xbf16, #tpu.memory_space<vmem>>, vector<1x64x4xbf16>
    %140 = vector.shape_cast %139 : vector<1x64x4xbf16> to vector<64x4xbf16>
    %c0_109 = arith.constant 0 : index
    %c0_110 = arith.constant 0 : index
    %141 = vector.load %arg6[%c0_109, %c0_110] : memref<1x4xf32, #tpu.memory_space<vmem>>, vector<1x4xf32>
    %142 = vector.broadcast %141 : vector<1x4xf32> to vector<64x4xf32>
    %143 = arith.addf %138, %142 : vector<64x4xf32>
    %cst_111 = arith.constant 0.000000e+00 : f32
    %144 = vector.broadcast %cst_111 : f32 to vector<64x4xf32>
    %145 = arith.cmpf oge, %143, %144 : vector<64x4xf32>
    %c0_112 = arith.constant 0 : index
    %c0_113 = arith.constant 0 : index
    %146 = vector.load %arg7[%c0_112, %c0_113] : memref<1x4xf32, #tpu.memory_space<vmem>>, vector<1x4xf32>
    %147 = vector.broadcast %146 : vector<1x4xf32> to vector<64x4xf32>
    %148 = arith.mulf %147, %143 : vector<64x4xf32>
    %149 = arith.select %145, %143, %148 : vector<64x4xi1>, vector<64x4xf32>
    %150 = arith.truncf %149 : vector<64x4xf32> to vector<64x4xbf16>
    %c0_114 = arith.constant 0 : index
    %c0_115 = arith.constant 0 : index
    %151 = vector.load %arg8[%c0_114, %c0_115] : memref<4x16xbf16, #tpu.memory_space<vmem>>, vector<4x16xbf16>
    %cst_116 = arith.constant dense<0.000000e+00> : vector<64x16xf32>
    %152 = tpu.matmul %150, %151, %cst_116 {dimension_numbers = #tpu.dot_dimension_numbers<[1], [0], [0], [1], [0, 0, 1, 1], [], []>} : vector<64x4xbf16>, vector<4x16xbf16>, vector<64x16xf32> -> vector<64x16xf32>
    %c0_117 = arith.constant 0 : index
    %c0_118 = arith.constant 0 : index
    %153 = vector.load %arg10[%c0_117, %c0_118] : memref<4x16xbf16, #tpu.memory_space<vmem>>, vector<4x16xbf16>
    %cst_119 = arith.constant dense<0.000000e+00> : vector<64x16xf32>
    %154 = tpu.matmul %140, %153, %cst_119 {dimension_numbers = #tpu.dot_dimension_numbers<[1], [0], [0], [1], [0, 0, 1, 1], [], []>} : vector<64x4xbf16>, vector<4x16xbf16>, vector<64x16xf32> -> vector<64x16xf32>
    %155 = arith.addf %152, %154 : vector<64x16xf32>
    %c0_120 = arith.constant 0 : index
    %c0_121 = arith.constant 0 : index
    %156 = vector.load %arg9[%c0_120, %c0_121] : memref<1x16xf32, #tpu.memory_space<vmem>>, vector<1x16xf32>
    %157 = vector.broadcast %156 : vector<1x16xf32> to vector<64x16xf32>
    %158 = arith.addf %155, %157 : vector<64x16xf32>
    %159 = arith.truncf %158 : vector<64x16xf32> to vector<64x16xbf16>
    %c0_122 = arith.constant 0 : index
    %c0_123 = arith.constant 0 : index
    %c0_124 = arith.constant 0 : index
    %160 = vector.load %arg12[%c0_122, %c0_123, %c0_124] : memref<1x64x16xbf16, #tpu.memory_space<vmem>>, vector<1x64x16xbf16>
    %161 = vector.shape_cast %160 : vector<1x64x16xbf16> to vector<64x16xbf16>
    %162 = vector.shape_cast %159 : vector<64x16xbf16> to vector<1x64x16xbf16>
    tpu.vector_store %arg12[%c0_122, %c0_123, %c0_124], %162 {strides = array<i32>} : memref<1x64x16xbf16, #tpu.memory_space<vmem>>, vector<1x64x16xbf16>,
    return
  }
  func.func @transform_0(%arg0: i32) -> (i32, i32, i32) {
    %c0_i32 = arith.constant 0 : i32
    %c0_i32_0 = arith.constant 0 : i32
    %c0_i32_1 = arith.constant 0 : i32
    return %arg0, %c0_i32, %c0_i32_0 : i32, i32, i32
  }
  func.func @transform_1(%arg0: i32) -> (i32, i32) {
    %c0_i32 = arith.constant 0 : i32
    %c0_i32_0 = arith.constant 0 : i32
    %c0_i32_1 = arith.constant 0 : i32
    return %c0_i32, %c0_i32_0 : i32, i32
  }
  func.func @transform_2(%arg0: i32) -> (i32, i32) {
    %c0_i32 = arith.constant 0 : i32
    %c0_i32_0 = arith.constant 0 : i32
    %c0_i32_1 = arith.constant 0 : i32
    return %c0_i32, %c0_i32_0 : i32, i32
  }
  func.func @transform_3(%arg0: i32) -> (i32, i32) {
    %c0_i32 = arith.constant 0 : i32
    %c0_i32_0 = arith.constant 0 : i32
    %c0_i32_1 = arith.constant 0 : i32
    return %c0_i32, %c0_i32_0 : i32, i32
  }
  func.func @transform_4(%arg0: i32) -> (i32, i32, i32) {
    %c0_i32 = arith.constant 0 : i32
    %c0_i32_0 = arith.constant 0 : i32
    %c0_i32_1 = arith.constant 0 : i32
    %c0_i32_2 = arith.constant 0 : i32
    return %c0_i32, %c0_i32_0, %c0_i32_1 : i32, i32, i32
  }
  func.func @transform_5(%arg0: i32) -> (i32, i32) {
    %c0_i32 = arith.constant 0 : i32
    %c0_i32_0 = arith.constant 0 : i32
    %c0_i32_1 = arith.constant 0 : i32
    return %c0_i32, %c0_i32_0 : i32, i32
  }
  func.func @transform_6(%arg0: i32) -> (i32, i32) {
    %c0_i32 = arith.constant 0 : i32
    %c0_i32_0 = arith.constant 0 : i32
    %c0_i32_1 = arith.constant 0 : i32
    return %c0_i32, %c0_i32_0 : i32, i32
  }
  func.func @transform_7(%arg0: i32) -> (i32, i32) {
    %c0_i32 = arith.constant 0 : i32
    %c0_i32_0 = arith.constant 0 : i32
    %c0_i32_1 = arith.constant 0 : i32
    return %c0_i32, %c0_i32_0 : i32, i32
  }
  func.func @transform_8(%arg0: i32) -> (i32, i32) {
    %c0_i32 = arith.constant 0 : i32
    %c0_i32_0 = arith.constant 0 : i32
    %c0_i32_1 = arith.constant 0 : i32
    return %c0_i32, %c0_i32_0 : i32, i32
  }
  func.func @transform_9(%arg0: i32) -> (i32, i32) {
    %c0_i32 = arith.constant 0 : i32
    %c0_i32_0 = arith.constant 0 : i32
    %c0_i32_1 = arith.constant 0 : i32
    return %c0_i32, %c0_i32_0 : i32, i32
  }
  func.func @transform_10(%arg0: i32) -> (i32, i32, i32) {
    %c0_i32 = arith.constant 0 : i32
    %c0_i32_0 = arith.constant 0 : i32
    %c0_i32_1 = arith.constant 0 : i32
    return %arg0, %c0_i32, %c0_i32_0 : i32, i32, i32
  }
  func.func @transform_11(%arg0: i32) -> (i32, i32, i32) {
    %c0_i32 = arith.constant 0 : i32
    %c0_i32_0 = arith.constant 0 : i32
    %c0_i32_1 = arith.constant 0 : i32
    return %arg0, %c0_i32, %c0_i32_0 : i32, i32, i32
  }
}

</mosaic_0001>

<bundles_post_ra>
// kernel: bottleneck_ir_forward.1
= control target key start
LH: loop header
LB: loop body
LE: loop exit
PB: predicated region body
PF: predicated region fallthrough
CT: control target
= control target key end

     0   :  { %16 = vsyncpa [#allocation5], 0  ;;  %s9618_s0 = inlined_call_operand.vmem [shape: bf16[2,256,4], index: 0, kind: input, shape index: {}]   ;;  %s9619_s1 = inlined_call_operand.vmem [shape: bf16[4,4], index: 1, kind: input, shape index: {}]   ;;  %s9620_s2 = inlined_call_operand.vmem [shape: f32[1,4], index: 2, kind: input, shape index: {}]   ;;  %s9621_s3 = inlined_call_operand.vmem [shape: f32[1,4], index: 3, kind: input, shape index: {}]   ;;  %s9622_s4 = inlined_call_operand.vmem [shape: bf16[9,4,4], index: 4, kind: input, shape index: {}]   ;;  %s9623_s5 = inlined_call_operand.vmem [shape: f32[1,4], index: 5, kind: input, shape index: {}]   ;;  %s9624_s6 = inlined_call_operand.vmem [shape: f32[1,4], index: 6, kind: input, shape index: {}]   ;;  %s9625_s7 = inlined_call_operand.vmem [shape: bf16[4,16], index: 7, kind: input, shape index: {}]   ;;  %s9626_s8 = inlined_call_operand.vmem [shape: f32[1,16], index: 8, kind: input, shape index: {}]   ;;  %s9627_s9 = inlined_call_operand.vmem [shape: bf16[4,16], index: 9, kind: input, shape index: {}]   ;;  %s9628_s10 = inlined_call_operand.vmem [shape: bf16[2,64,4], index: 10, kind: input, shape index: {}]   ;;  %s9629_s11 = inlined_call_operand.hbm [shape: bf16[2,64,16], index: 11, kind: output, shape index: {}]  }
   0x1   :  { %18 = vsyncpa [#allocation5 + $0x1], 0  ;;  %s7193_s17 = smov 0   ;;  %s7195_s18 = smov 0  }
   0x2   :  { %s7197_s19 = smov 0   ;;  %s7199_s20 = smov 0  }
   0x3 LB: > { %s7214_s21 = sadd.s32 4294967295, %s7126_s20   ;;  %s6172_s22 = sadd.s32 4294967294, %s7126_s20   ;;  %s7126_s20 = sphi %s7199_s20, %s9903_s20   ;;  %s7122_s19 = sphi %s7197_s19, %s9902_s19   ;;  %s7118_s18 = sphi %s7195_s18, %s9901_s18   ;;  %s7114_s17 = sphi %s7193_s17, %s9900_s17  }
   0x4   : > { %s7218_s23 = sadd.s32 1, %s7126_s20   ;;  %s272_s24 = sadd.s32 1, %s7122_s19 }
   0x5   : > { %s269_s25 = ssub.s32 %s7126_s20, %s7218_s23  ;;  %p282_p0 = scmp.ne.s32.totalorder %s7122_s19, %s7118_s18 }
   0x6   : > { %p270_p1 = scmp.eq.s32.totalorder %s269_s25, 0  ;;  %p283_p2 = scmp.eq.s32.totalorder %s7214_s21, 1 }
   0x7   : > { %p288_p3 = scmp.ne.s32.totalorder %s7118_s18, %s7114_s17  ;;  %p289_p4 = scmp.eq.s32.totalorder %s6172_s22, 1 }
   0x8   : > { %s7229_s26 = scalar_select %p270_p1, %s7122_s19, %s272_s24  }
   0x9   : > { %p7231_p5 = por %p283_p2, %p282_p0  ;;  %p7235_p6 = por %p289_p4, %p288_p3 }
   0xa   : > { %p6175_p7 = scmp.ge.s32.totalorder %s7126_s20, 1  ;;  %p350_p8 = scmp.lt.s32.totalorder %s7126_s20, 3 }
   0xc   : > { %p351_p9 = pnand %p6175_p7, %p350_p8 }
   0xe   : > { %354 = sbr.rel (%p351_p9) target bundleno = 1057 (0x421), region = 64 }
  0x15   : > { %v926_v0 = vld [vmem:[%s9619_s1] sm:$0x3]  ;;  %vm9651_vm0 = vcmask 1041408   ;;  %p395_p10 = scmp.lt.s32.totalorder %s7214_s21, 1  ;;  %vm408_vm1 = vcmask 31744   ;;  %v413_v18 = vlaneseq  ;;  %v9630_v23 = vmov 0  }
  0x16   : > { %6988 = vmatprep.subr.msk.bf16.mxu0 %vm9651_vm0, %v926_v0  ;;  %v1064_v1 = vsel %vm9651_vm0, %v926_v0, 0  ;;  %6989 = vmatprep.subr.msk.bf16.mxu1 %vm9651_vm0, %v926_v0  ;;  %410 = vst.msk [vmem:[#allocation2 + $0x8] sm:$0xff] %vm408_vm1, %v9630_v23  ;;  %409 = vst.msk [vmem:[#allocation2] sm:$0xff] %vm408_vm1, %v9630_v23  ;;  %vm7129_vm5 = vmmov 1   ;;  %v6247_v34 = vld [vmem:[%s9622_s4 + $0x2] sm:$0x3] }
  0x17   : > { %6619 = vmatpush3.bf16.msra.mxu0 %v1064_v1  ;;  %s7249_s12 = scalar_select %p395_p10, %s7214_s21, 1  ;;  %6979 = vmatpush3.bf16.msra.mxu1 %v1064_v1  ;;  %v7289_v19 = vshrl.u32 %v413_v18, 7  ;;  %411 = vst.msk [vmem:[#allocation2 + $0x90] sm:$0xff] %vm408_vm1, %v9630_v23  ;;  %412 = vst.msk [vmem:[#allocation2 + $0x98] sm:$0xff] %vm408_vm1, %v9630_v23  ;;  %v2162_v36 = vsel %vm9651_vm0, %v6247_v34, 0 }
  0x18   : > { %vm1444_vm6 = vmpackc.low %vm7129_vm5, %vm7129_vm5  ;;  %6991 = vmatprep.subr.msk.bf16.mxu0 %vm9651_vm0, %v6247_v34  ;;  %vm9652_vm8 = vsmask.f32 7424  ;;  %v1717_v41 = vld [vmem:[%s9622_s4] sm:$0x3]  ;;  %vm1718_vm11 = vsmask.f32 256 }
  0x19   : > { %s6427_s13 = sshll.u32 %s7249_s12, 7  ;;  %v416_v20 = vadd.s32 16, %v7289_v19  ;;  %v450_v21 = vand.u32 15, %v7289_v19  ;;  %v7303_v25 = vsel %vm1444_vm6, 65537, %v9630_v23  ;;  %6990 = vmatprep.subr.msk.bf16.mxu1 %vm9651_vm0, %v1717_v41  ;;  %v1900_v42 = vsel %vm9651_vm0, %v1717_v41, 0  ;;  %s6428_s14 = sshll.u32 %s7249_s12, 5 }
  0x1a   : > { %s7255_s16 = scalar_lea.vmem %s9618_s0, %s6427_s13  ;;  %v7341_v53 = vld [vmem:[%s9622_s4 + $0x4] sm:$0x3]  ;;  %v418_v54 = vadd.s32 32, %v7289_v19  ;;  %v420_v55 = vadd.s32 48, %v7289_v19  ;;  %v422_v57 = vadd.s32 64, %v7289_v19  ;;  %v424_v60 = vadd.s32 80, %v7289_v19  ;;  %s9223_s22 = scalar_lea.vmem %s9628_s10, %s6428_s14 }
  0x1b   : > { %v7044_v2 = vld [vmem:[%s7255_s16] sm:$0xff]   ;;  %v7045_v3 = vld [vmem:[%s7255_s16 + $0x8] sm:$0xff]   ;;  %v7046_v4 = vld [vmem:[%s7255_s16 + $0x10] sm:$0xff]   ;;  %v464_v22 = vand.u32 15, %v416_v20  ;;  %vm830_vm2 = vcmp.ge.s32.totalorder %v450_v21, 1  ;;  %v426_v61 = vadd.s32 96, %v7289_v19 }
  0x1c   : > { %6620 = vmatprep.mubr.msk.bf16.mxu0 %vm408_vm1, %v7044_v2  ;;  %v7047_v5 = vld [vmem:[%s7255_s16 + $0x18] sm:$0xff]   ;;  %v7048_v6 = vld [vmem:[%s7255_s16 + $0x20] sm:$0xff]   ;;  %v7055_v8 = vld [vmem:[%s7255_s16 + $0x68] sm:$0xff]   ;;  %v478_v56 = vand.u32 15, %v418_v54  ;;  %v492_v58 = vand.u32 15, %v420_v55  ;;  %v506_v59 = vand.u32 15, %v422_v57 }
  0x1d   : > { %6621 = vmatmul.mubr.msk.bf16.vlgmr.msra.gmra.mrb[0].mxu0 %vm408_vm1, %v7045_v3  ;;  %v7054_v7 = vld [vmem:[%s7255_s16 + $0x60] sm:$0xff]   ;;  %v7058_v9 = vld [vmem:[%s7255_s16 + $0x70] sm:$0xff]   ;;  %v7049_v10 = vld [vmem:[%s7255_s16 + $0x28] sm:$0xff]   ;;  %vm832_vm3 = vcmp.ge.s32.totalorder %v464_v22, 1  ;;  %v520_v62 = vand.u32 15, %v424_v60  ;;  %v428_v63 = vadd.s32 112, %v7289_v19 }
  0x1e   : > { %6624 = vmatprep.mubr.msk.bf16.mxu0 %vm408_vm1, %v7046_v4  ;;  %6644 = vmatprep.mubr.msk.bf16.mxu1 %vm408_vm1, %v7054_v7  ;;  %v7050_v11 = vld [vmem:[%s7255_s16 + $0x30] sm:$0xff]   ;;  %v7059_v12 = vld [vmem:[%s7255_s16 + $0x78] sm:$0xff]   ;;  %v7052_v14 = vld [vmem:[%s7255_s16 + $0x40] sm:$0xff]   ;;  %vm834_vm12 = vcmp.ge.s32.totalorder %v478_v56, 1  ;;  %vm836_vm14 = vcmp.ge.s32.totalorder %v492_v58, 1  ;;  %vm838_vm15 = vcmp.ge.s32.totalorder %v506_v59, 1 }
  0x1f   : > { %6645 = vmatmul.mubr.msk.bf16.vlgmr.msra.gmra.mrb[0].mxu1 %vm408_vm1, %v7055_v8  ;;  %v7051_v13 = vld [vmem:[%s7255_s16 + $0x38] sm:$0xff]   ;;  %v7053_v15 = vld [vmem:[%s7255_s16 + $0x48] sm:$0xff]   ;;  %v7056_v16 = vld [vmem:[%s7255_s16 + $0x50] sm:$0xff]   ;;  %6687 = vmatpush3.bf16.msra.mxu0 %v2162_v36  ;;  %v430_v1 = vadd.s32 128, %v7289_v19  ;;  %v534_v2 = vand.u32 15, %v426_v61  ;;  %v436_v21 = vadd.s32 176, %v7289_v19 }
  0x20   : > { %6648 = vmatprep.mubr.msk.bf16.mxu1 %vm408_vm1, %v7058_v9  ;;  %v7057_v17 = vld [vmem:[%s7255_s16 + $0x58] sm:$0xff]   ;;  %vm1443_vm4 = vmpackc.low %vm830_vm2, %vm830_vm2  ;;  %v2095_v39 = vld [vmem:[#allocation2 + $0x8] sm:$0xff]  ;;  %6653 = vmatpush3.bf16.msra.mxu1 %v1900_v42  ;;  %v432_v9 = vadd.s32 144, %v7289_v19  ;;  %v438_v41 = vadd.s32 192, %v7289_v19  ;;  %v440_v57 = vadd.s32 208, %v7289_v19  ;;  %v417_v61 = vadd.s32 24, %v7289_v19 }
  0x21   : > { %v1475_v24 = vsel %vm1443_vm4, 65537, %v9630_v23  ;;  %vm1445_vm7 = vmpackc.low %vm832_vm3, %vm832_vm3  ;;  %v1362_v43 = vld [vmem:[#allocation2] sm:$0x80]  ;;  %6992 = vmatprep.subr.msk.bf16.mxu1 %vm9651_vm0, %v7341_v53  ;;  %vm7354_vm4 = vcmp.ge.s32.totalorder %v520_v62, 1  ;;  %v562_v8 = vand.u32 15, %v430_v1  ;;  %vm7361_vm5 = vcmp.ge.s32.totalorder %v534_v2, 1 }
  0x22   : > { %v1477_v26 = vsel %vm1445_vm7, 65537, %v9630_v23  ;;  %v6215_v27 = vcombine.low %v1475_v24, %v7303_v25  ;;  %vm1447_vm13 = vmpackc.low %vm834_vm12, %vm834_vm12  ;;  %v437_v34 = vadd.s32 184, %v7289_v19  ;;  %s392_s14 = sand.u32 1, %s7118_s18   ;;  %s6437_s24 = sshll.u32 %s7214_s21, 9 }
  0x23   : > { %v6216_v28 = vcombine.low %v1477_v26, %v7303_v25  ;;  %v1479_v0 = vsel %vm1447_vm13, 65537, %v9630_v23  ;;  %vm1449_vm2 = vmpackc.low %vm836_vm14, %vm836_vm14  ;;  %vm7378_vm13 = vcmp.ge.s32.totalorder %v562_v8, 1  ;;  %v427_v8 = vadd.s32 104, %v7289_v19  ;;  %s9568_s13 = scalar_lea.hbm %s9629_s11, %s6437_s24  ;;  %s9577_s21 = scalar_lea.sflag [#allocation5], %s392_s14 }
  0x24   : > { %v1557_v29 = vshll.u32 %v6215_v27, 16  ;;  %v1560_v30 = vshrl.u32 %v6215_v27, 16  ;;  %vm1451_vm3 = vmpackc.low %vm838_vm15, %vm838_vm15  ;;  %v6217_v3 = vcombine.low %v1479_v0, %v7303_v25  ;;  %v442_v0 = vadd.s32 224, %v7289_v19  ;;  %s7130_s16 = smov [#allocation4]  }
  0x25   : > { %6625 = vmatmul.mubr.msk.bf16.gmra.mrb[4].mxu0 %vm408_vm1, %v7047_v5  ;;  %v1564_v31 = vshll.u32 %v6216_v28, 16  ;;  %v1568_v32 = vshrl.u32 %v6216_v28, 16  ;;  %v548_v5 = vand.u32 15, %v428_v63  ;;  %v1483_v7 = vsel %vm1451_vm3, 65537, %v9630_v23  ;;  %vm1453_vm6 = vmpackc.low %vm7354_vm4, %vm7354_vm4 }
  0x26   : > { %6628 = vmatprep.mubr.msk.bf16.mxu0 %vm408_vm1, %v7048_v6  ;;  %v7308_v33 = vrot.slane %v1557_v29, 1  ;;  %v1481_v6 = vsel %vm1449_vm2, 65537, %v9630_v23  ;;  %vm1455_vm12 = vmpackc.low %vm7361_vm5, %vm7361_vm5  ;;  %v1485_v18 = vsel %vm1453_vm6, 65537, %v9630_v23  ;;  %v1576_v22 = vshrl.u32 %v6217_v3, 16 }
  0x27   : > { %6649 = vmatmul.mubr.msk.bf16.gmra.mrb[4].mxu1 %vm408_vm1, %v7059_v12  ;;  %v1566_v35 = vrot.slane %v1564_v31, 1  ;;  %v1572_v12 = vshll.u32 %v6217_v3, 16  ;;  %vm7371_vm7 = vcmp.ge.s32.totalorder %v548_v5, 1  ;;  %v1487_v28 = vsel %vm1455_vm12, 65537, %v9630_v23  ;;  %vm1459_vm15 = vmpackc.low %vm7378_vm13, %vm7378_vm13 }
  0x28   : > { %9694 = vst [vmem:[#allocation7_spill] sm:$0xff] %v7308_v33  ;;  %v1562_v37 = vor.u32 %v1560_v30, %v7308_v33  ;;  %vm9635_vm9 = vcmp.ne.s16.totalorder %v7308_v33, 0  ;;  %vm1457_vm14 = vmpackc.low %vm7371_vm7, %vm7371_vm7  ;;  %v6220_v29 = vcombine.low %v1485_v18, %v7303_v25  ;;  %v415_v31 = vadd.s32 8, %v7289_v19 }
  0x29   : > { %v7316_v38 = vor.u32 %v1568_v32, %v1566_v35  ;;  %v1700_v45 = vsel %vm9635_vm9, %v1362_v43, 0  ;;  %v1574_v24 = vrot.slane %v1572_v12, 1  ;;  %v6221_v36 = vcombine.low %v1487_v28, %v7303_v25 }
  0x2a   : > { %v7319_v40 = vsel %vm9652_vm8, %v1562_v37, %v1566_v35  ;;  %v1720_v47 = vshrl.u32 %v1700_v45, 16  ;;  %v604_v35 = vand.u32 15, %v436_v21  ;;  %v1489_v37 = vsel %vm1457_vm14, 65537, %v9630_v23 }
  0x2b   : > { %9695 = vst [vmem:[#allocation8_spill] sm:$0xff] %v7319_v40  ;;  %vm9658_vm10 = vcmp.ne.s16.totalorder %v7319_v40, 0  ;;  %v1578_v42 = vor.u32 %v1576_v22, %v1574_v24  ;;  %v1604_v55 = vshll.u32 %v6221_v36, 16  ;;  %v1600_v63 = vshrl.u32 %v6220_v29, 16 }
  0x2c   : > { %v1701_v44 = vsel %vm9658_vm10, %v2095_v39, 0  ;;  %v1722_v50 = vrot.slane %v1720_v47, 7  ;;  %v1596_v47 = vshll.u32 %v6220_v29, 16  ;;  %vm7417_vm6 = vcmp.ge.s32.totalorder %v604_v35, 1 }
  0x2d   : > { %6629 = vmatmul.mubr.msk.bf16.gmra.mrb[8].mxu0 %vm408_vm1, %v7049_v10  ;;  %v1724_v46 = vshrl.u32 %v1701_v44, 16  ;;  %v1727_v48 = vshll.u32 %v1701_v44, 16  ;;  %vm1465_vm7 = vmpackc.low %vm7417_vm6, %vm7417_vm6  ;;  %v7448_v10 = vld [vmem:[%s9622_s4 + $0x6] sm:$0x3]  ;;  %v444_v18 = vadd.s32 240, %v7289_v19  ;;  %v7471_v30 = vsel %vm9651_vm0, %v7341_v53, 0 }
  0x2e   : > { %6632 = vmatprep.mubr.msk.bf16.mxu0 %vm408_vm1, %v7050_v11  ;;  %v434_v11 = vadd.s32 160, %v7289_v19  ;;  %v1598_v62 = vrot.slane %v1596_v47, 1  ;;  %6993 = vmatprep.subr.msk.bf16.mxu0 %vm9651_vm0, %v7448_v10  ;;  %v541_v28 = vand.u32 15, %v427_v8 }
  0x2f   : > { %v7333_v49 = vrot.slane %v1724_v46, 7  ;;  %v7410_v46 = vsel %vm9652_vm8, %v7316_v38, %v1574_v24  ;;  %v618_v38 = vand.u32 15, %v438_v41  ;;  %v419_v41 = vadd.s32 40, %v7289_v19 }
  0x30   : > { %v590_v20 = vand.u32 15, %v434_v11  ;;  %9708 = vst [vmem:[#allocation9_spill] sm:$0xff] %v7410_v46  ;;  %v1608_v11 = vshrl.u32 %v6221_v36, 16 }
  0x31   : > { %v1729_v51 = vor.u32 %v1727_v48, %v7333_v49  ;;  %v457_v48 = vand.u32 15, %v415_v31  ;;  %vm7441_vm13 = vcmp.ge.s32.totalorder %v618_v38, 1 }
  0x32   : > { %vm7397_vm3 = vcmp.ge.s32.totalorder %v590_v20, 1 }
  0x33   : > { %v1730_v52 = vsel %vm1718_vm11, %v1722_v50, %v1729_v51  ;;  %vm1463_vm5 = vmpackc.low %vm7397_vm3, %vm7397_vm3  ;;  %v6222_v51 = vcombine.low %v1489_v37, %v7303_v25  ;;  %vm7432_vm12 = vcmp.le.s32.totalorder %v457_v48, 14  ;;  %v660_v37 = vand.u32 15, %v444_v18 }
  0x34   : > { %6654 = vmatprep.mubr.msk.bf16.mxu1 %vm408_vm1, %v1730_v52  ;;  %v1495_v60 = vsel %vm1463_vm5, 65537, %v9630_v23  ;;  %vm2503_vm14 = vmpackc.low %vm7432_vm12, %vm7432_vm12 }
  0x35   : > { %6633 = vmatmul.mubr.msk.bf16.gmra.mrb[12].mxu0 %vm408_vm1, %v7051_v13  ;;  %v6218_v13 = vcombine.low %v1481_v6, %v7303_v25  ;;  %v1612_v3 = vshll.u32 %v6222_v51, 16  ;;  %v1606_v6 = vrot.slane %v1604_v55, 1  ;;  %v1616_v12 = vshrl.u32 %v6222_v51, 16 }
  0x36   : > { %6636 = vmatprep.mubr.msk.bf16.mxu0 %vm408_vm1, %v7052_v14  ;;  %v6219_v14 = vcombine.low %v1483_v7, %v7303_v25  ;;  %v6225_v7 = vcombine.low %v1495_v60, %v7303_v25  ;;  %v2535_v29 = vsel %vm2503_vm14, 65537, %v9630_v23 }
  0x37   : > { %v1580_v26 = vshll.u32 %v6218_v13, 16  ;;  %v1584_v32 = vshrl.u32 %v6218_v13, 16  ;;  %v1497_v13 = vsel %vm1465_vm7, 65537, %v9630_v23  ;;  %v1614_v20 = vrot.slane %v1612_v3, 1 }
  0x38   : > { %v1588_v27 = vshll.u32 %v6219_v14, 16  ;;  %v1592_v45 = vshrl.u32 %v6219_v14, 16  ;;  %v471_v14 = vand.u32 15, %v417_v61  ;;  %v1610_v31 = vor.u32 %v1608_v11, %v1606_v6 }
  0x39   : > { %v1582_v43 = vrot.slane %v1580_v26, 1  ;;  %v1636_v26 = vshll.u32 %v6225_v7, 16  ;;  %v1640_v48 = vshrl.u32 %v6225_v7, 16  ;;  %vm7503_vm7 = vcmp.ge.s32.totalorder %v660_v37, 1 }
  0x3a   : > { %v1590_v44 = vrot.slane %v1588_v27, 1  ;;  %v6226_v27 = vcombine.low %v1497_v13, %v7303_v25  ;;  %vm7473_vm3 = vcmp.le.s32.totalorder %v471_v14, 14  ;;  %v7491_v51 = vsel %vm9652_vm8, %v1610_v31, %v1614_v20 }
  0x3b   : > { %v1586_v50 = vor.u32 %v1584_v32, %v1582_v43  ;;  %v7424_v58 = vsel %vm9652_vm8, %v1578_v42, %v1582_v43  ;;  %v1618_v32 = vor.u32 %v1616_v12, %v1614_v20  ;;  %v1638_v47 = vrot.slane %v1636_v26, 1  ;;  %9724 = vst [vmem:[#allocation13_spill] sm:$0xff] %v7491_v51  ;;  %vm2505_vm12 = vmpackc.low %vm7473_vm3, %vm7473_vm3 }
  0x3c   : > { %9711 = vst [vmem:[#allocation10_spill] sm:$0xff] %v7424_v58  ;;  %v1594_v59 = vor.u32 %v1592_v45, %v1590_v44  ;;  %v2537_v7 = vsel %vm2505_vm12, 65537, %v9630_v23 }
  0x3d   : > { %6637 = vmatmul.mubr.msk.bf16.gmra.mrb[16].mxu0 %vm408_vm1, %v7053_v15  ;;  %v7437_v2 = vsel %vm9652_vm8, %v1586_v50, %v1590_v44  ;;  %v6264_v44 = vcombine.low %v7303_v25, %v2535_v29  ;;  %v1644_v50 = vshll.u32 %v6226_v27, 16  ;;  %v429_v29 = vadd.s32 120, %v7289_v19 }
  0x3e   : > { %6640 = vmatprep.mubr.msk.bf16.mxu0 %vm408_vm1, %v7056_v16  ;;  %9714 = vst [vmem:[#allocation11_spill] sm:$0xff] %v7437_v2  ;;  %v7457_v15 = vsel %vm9652_vm8, %v1594_v59, %v1598_v62  ;;  %v1602_v16 = vor.u32 %v1600_v63, %v1598_v62  ;;  %v421_v59 = vadd.s32 56, %v7289_v19  ;;  %v423_v63 = vadd.s32 72, %v7289_v19 }
  0x3f   : > { %9717 = vst [vmem:[#allocation12_spill] sm:$0xff] %v7457_v15  ;;  %v2615_v62 = vshrl.u32 %v6264_v44, 16  ;;  %v1646_v1 = vrot.slane %v1644_v50, 1 }
  0x40   : > { %v7488_v45 = vsel %vm9652_vm8, %v1602_v16, %v1606_v6  ;;  %v499_v13 = vand.u32 15, %v421_v59  ;;  %v513_v18 = vand.u32 15, %v423_v63  ;;  %v435_v63 = vadd.s32 168, %v7289_v19 }
  0x41   : > { %v7528_v16 = vrot.slane %v2615_v62, 7 }
  0x42   : > { %vm7552_vm3 = vcmp.le.s32.totalorder %v513_v18, 14 }
  0x45   : > { %6641 = vmatmul.mubr.msk.bf16.gmra.mrb[20].mxu0 %vm408_vm1, %v7057_v17  ;;  %v576_v17 = vand.u32 15, %v432_v9  ;;  %v632_v9 = vand.u32 15, %v440_v57  ;;  %v485_v57 = vand.u32 15, %v419_v41 }
  0x46   : > { %6688 = vmatprep.mubr.msk.bf16.mxu0 %vm408_vm1, %v2095_v39  ;;  %v1491_v39 = vsel %vm1459_vm15, 65537, %v9630_v23  ;;  %vm1467_vm15 = vmpackc.low %vm7441_vm13, %vm7441_vm13 }
  0x47   : > { %vm7392_vm2 = vcmp.ge.s32.totalorder %v576_v17, 1  ;;  %v6223_v52 = vcombine.low %v1491_v39, %v7303_v25  ;;  %v646_v17 = vand.u32 15, %v442_v0  ;;  %v1499_v35 = vsel %vm1467_vm15, 65537, %v9630_v23  ;;  %v3217_v39 = vld [vmem:[#allocation2 + $0x8] sm:$0x80]  ;;  %vm1473_vm13 = vmpackc.low %vm7503_vm7, %vm7503_vm7 }
  0x48   : > { %vm1461_vm4 = vmpackc.low %vm7392_vm2, %vm7392_vm2  ;;  %vm7464_vm2 = vcmp.ge.s32.totalorder %v632_v9, 1  ;;  %v6227_v54 = vcombine.low %v1499_v35, %v7303_v25  ;;  %v3234_v55 = vsel %vm9635_vm9, %v3217_v39, 0  ;;  %v1642_v0 = vor.u32 %v1640_v48, %v1638_v47 }
  0x49   : > { %v1493_v56 = vsel %vm1461_vm4, 65537, %v9630_v23  ;;  %v1620_v4 = vshll.u32 %v6223_v52, 16  ;;  %v1624_v22 = vshrl.u32 %v6223_v52, 16  ;;  %vm7478_vm4 = vcmp.ge.s32.totalorder %v646_v17, 1  ;;  %vm1469_vm5 = vmpackc.low %vm7464_vm2, %vm7464_vm2 }
  0x4a   : > { %v6224_v5 = vcombine.low %v1493_v56, %v7303_v25  ;;  %vm1471_vm6 = vmpackc.low %vm7478_vm4, %vm7478_vm4  ;;  %v1501_v56 = vsel %vm1469_vm5, 65537, %v9630_v23  ;;  %v1648_v9 = vshrl.u32 %v6226_v27, 16  ;;  %v3254_v11 = vshrl.u32 %v3234_v55, 16 }
  0x4b   : > { %v1622_v21 = vrot.slane %v1620_v4, 1  ;;  %v1503_v3 = vsel %vm1471_vm6, 65537, %v9630_v23  ;;  %v425_v4 = vadd.s32 88, %v7289_v19  ;;  %v6228_v6 = vcombine.low %v1501_v56, %v7303_v25  ;;  %vm2511_vm7 = vmpackc.low %vm7552_vm3, %vm7552_vm3 }
  0x4c   : > { %v1628_v24 = vshll.u32 %v6224_v5, 16  ;;  %v1632_v53 = vshrl.u32 %v6224_v5, 16  ;;  %v1652_v5 = vshll.u32 %v6227_v54, 16  ;;  %vm7523_vm14 = vcmp.le.s32.totalorder %v485_v57, 14 }
  0x4d   : > { %v1626_v42 = vor.u32 %v1624_v22, %v1622_v21  ;;  %v7494_v52 = vsel %vm9652_vm8, %v1618_v32, %v1622_v21  ;;  %v6229_v14 = vcombine.low %v1503_v3, %v7303_v25  ;;  %v2618_v17 = vshll.u32 %v6264_v44, 16  ;;  %vm2507_vm15 = vmpackc.low %vm7523_vm14, %vm7523_vm14 }
  0x4e   : > { %v1630_v43 = vrot.slane %v1628_v24, 1  ;;  %v7534_v21 = vsel %vm9652_vm8, %v1642_v0, %v1646_v1  ;;  %v1505_v22 = vsel %vm1473_vm13, 65537, %v9630_v23  ;;  %v527_v24 = vand.u32 15, %v425_v4 }
  0x4f   : > { %v1654_v26 = vrot.slane %v1652_v5, 1  ;;  %v1660_v27 = vshll.u32 %v6228_v6, 16  ;;  %v1650_v31 = vor.u32 %v1648_v9, %v1646_v1  ;;  %v1656_v32 = vshrl.u32 %v6227_v54, 16 }
  0x50   : > { %v7512_v60 = vsel %vm9652_vm8, %v1626_v42, %v1630_v43  ;;  %v1634_v61 = vor.u32 %v1632_v53, %v1630_v43  ;;  %vm7541_vm2 = vcmp.le.s32.totalorder %v499_v13, 14  ;;  %v431_v35 = vadd.s32 136, %v7289_v19 }
  0x51   : > { %v1668_v36 = vshll.u32 %v6229_v14, 16  ;;  %v7547_v37 = vcombine.low %v1505_v22, %v7303_v25  ;;  %v7550_v39 = vor.u32 %v2618_v17, %v7528_v16  ;;  %v6265_v42 = vcombine.low %v7303_v25, %v2537_v7  ;;  %vm2509_vm5 = vmpackc.low %vm7541_vm2, %vm7541_vm2 }
  0x52   : > { %v7531_v20 = vsel %vm9652_vm8, %v1634_v61, %v1638_v47  ;;  %v2539_v43 = vsel %vm2507_vm15, 65537, %v9630_v23  ;;  %vm7558_vm4 = vcmp.le.s32.totalorder %v527_v24, 14  ;;  %v433_v44 = vadd.s32 152, %v7289_v19  ;;  %v2421_v61 = vld [vmem:[#allocation2 + $0x8] sm:$0xff] }
  0x53   : > { %9731 = vst [vmem:[#allocation14_spill] sm:$0xff] %v7550_v39  ;;  %v1662_v47 = vrot.slane %v1660_v27, 1  ;;  %v1664_v48 = vshrl.u32 %v6228_v6, 16  ;;  %vm7566_vm6 = vcmp.le.s32.totalorder %v541_v28, 14  ;;  %v555_v54 = vand.u32 15, %v429_v29  ;;  %vm2513_vm13 = vmpackc.low %vm7558_vm4, %vm7558_vm4 }
  0x54   : > { %v1658_v55 = vor.u32 %v1656_v32, %v1654_v26  ;;  %v1672_v56 = vshrl.u32 %v6229_v14, 16  ;;  %v7570_v38 = vrot.slane %v3254_v11, 7  ;;  %v569_v57 = vand.u32 15, %v431_v35  ;;  %vm2515_vm14 = vmpackc.low %vm7566_vm6, %vm7566_vm6 }
  0x55   : > { %v7576_v59 = vsel %vm9652_vm8, %v1650_v31, %v1654_v26  ;;  %vm9636_vm12 = vcmp.ne.s16.totalorder %v7550_v39, 0  ;;  %v6266_v62 = vcombine.low %v7303_v25, %v2539_v43  ;;  %v1670_v0 = vrot.slane %v1668_v36, 1 }
  0x56   : > { %9738 = vst [vmem:[#allocation15_spill] sm:$0xff] %v7570_v38  ;;  %v1676_v1 = vshll.u32 %v7547_v37, 16  ;;  %v2622_v3 = vshrl.u32 %v6265_v42, 16  ;;  %v583_v4 = vand.u32 15, %v433_v44  ;;  %v1666_v5 = vor.u32 %v1664_v48, %v1662_v47 }
  0x57   : > { %v2625_v6 = vshll.u32 %v6265_v42, 16  ;;  %v2541_v7 = vsel %vm2509_vm5, 65537, %v9630_v23  ;;  %vm7594_vm15 = vcmp.le.s32.totalorder %v555_v54, 14  ;;  %v1674_v9 = vor.u32 %v1672_v56, %v1670_v0 }
  0x58   : > { %v2758_v11 = vsel %vm9636_vm12, %v2421_v61, 0  ;;  %v2543_v12 = vsel %vm2511_vm7, 65537, %v9630_v23  ;;  %vm7606_vm6 = vcmp.le.s32.totalorder %v569_v57, 14  ;;  %v2630_v14 = vshrl.u32 %v6266_v62, 16  ;;  %vm2517_vm2 = vmpackc.low %vm7594_vm15, %vm7594_vm15 }
  0x59   : > { %v2545_v17 = vsel %vm2513_vm13, 65537, %v9630_v23  ;;  %v2547_v18 = vsel %vm2515_vm14, 65537, %v9630_v23  ;;  %v597_v22 = vand.u32 15, %v435_v63  ;;  %v7617_v24 = vrot.slane %v1676_v1, 1  ;;  %vm2519_vm4 = vmpackc.low %vm7606_vm6, %vm7606_vm6 }
  0x5a   : > { %v2624_v26 = vrot.slane %v2622_v3, 7  ;;  %v6267_v27 = vcombine.low %v7303_v25, %v2541_v7  ;;  %vm7623_vm3 = vcmp.le.s32.totalorder %v583_v4, 14  ;;  %v7628_v29 = vsel %vm9652_vm8, %v1658_v55, %v1662_v47 }
  0x5b   : > { %9745 = vst [vmem:[#allocation16_spill] sm:$0xff] %v7628_v29  ;;  %v2780_v31 = vshll.u32 %v2758_v11, 16  ;;  %v6268_v32 = vcombine.low %v7303_v25, %v2543_v12  ;;  %v7636_v35 = vsel %vm9652_vm8, %v1666_v5, %v1670_v0  ;;  %v2633_v36 = vshll.u32 %v6266_v62, 16  ;;  %vm2521_vm5 = vmpackc.low %vm7623_vm3, %vm7623_vm3 }
  0x5c   : > { %9746 = vst [vmem:[#allocation17_spill] sm:$0xff] %v7636_v35  ;;  %v6269_v41 = vcombine.low %v7303_v25, %v2545_v17  ;;  %v6270_v42 = vcombine.low %v7303_v25, %v2547_v18  ;;  %v2632_v43 = vrot.slane %v2630_v14, 7  ;;  %v2549_v53 = vsel %vm2517_vm2, 65537, %v9630_v23 }
  0x5d   : > { %vm7644_vm7 = vcmp.le.s32.totalorder %v597_v22, 14  ;;  %v439_v47 = vadd.s32 200, %v7289_v19  ;;  %v7651_v48 = vsel %vm9652_vm8, %v1674_v9, %v7617_v24  ;;  %v2627_v50 = vor.u32 %v2625_v6, %v2624_v26 }
  0x5e   : > { %9749 = vst [vmem:[#allocation18_spill] sm:$0xff] %v7651_v48  ;;  %v2638_v54 = vshrl.u32 %v6267_v27, 16  ;;  %v2551_v55 = vsel %vm2519_vm4, 65537, %v9630_v23  ;;  %v2778_v56 = vshrl.u32 %v2758_v11, 16  ;;  %v2782_v57 = vrot.slane %v2780_v31, 1  ;;  %vm2523_vm13 = vmpackc.low %vm7644_vm7, %vm7644_vm7 }
  0x5f   : > { %v2646_v61 = vshrl.u32 %v6268_v32, 16  ;;  %v611_v62 = vand.u32 15, %v437_v34  ;;  %v2654_v63 = vshrl.u32 %v6269_v41, 16  ;;  %v2662_v0 = vshrl.u32 %v6270_v42, 16 }
  0x60   : > { %v6271_v1 = vcombine.low %v7303_v25, %v2549_v53  ;;  %v2553_v3 = vsel %vm2521_vm5, 65537, %v9630_v23  ;;  %v2635_v4 = vor.u32 %v2633_v36, %v2632_v43  ;;  %v6272_v5 = vcombine.low %v7303_v25, %v2551_v55 }
  0x61   : > { %v625_v6 = vand.u32 15, %v439_v47  ;;  %v441_v7 = vadd.s32 216, %v7289_v19  ;;  %v2640_v8 = vrot.slane %v2638_v54, 7  ;;  %v2641_v9 = vshll.u32 %v6267_v27, 16 }
  0x62   : > { %v2649_v11 = vshll.u32 %v6268_v32, 16  ;;  %v2657_v12 = vshll.u32 %v6269_v41, 16  ;;  %v2648_v13 = vrot.slane %v2646_v61, 7  ;;  %v6273_v14 = vcombine.low %v7303_v25, %v2553_v3  ;;  %v7715_v3 = vld [vmem:[%s9622_s4 + $0x8] sm:$0x3] }
  0x63   : > { %v2555_v17 = vsel %vm2523_vm13, 65537, %v9630_v23  ;;  %vm7663_vm14 = vcmp.le.s32.totalorder %v611_v62, 14  ;;  %v2656_v22 = vrot.slane %v2654_v63, 7  ;;  %v7667_v28 = vrot.slane %v2662_v0, 7 }
  0x64   : > { %v2665_v31 = vshll.u32 %v6270_v42, 16  ;;  %v2670_v34 = vshrl.u32 %v6271_v1, 16  ;;  %v7671_v36 = vsel %vm1718_vm11, %v7528_v16, %v2627_v50  ;;  %v2678_v27 = vshrl.u32 %v6272_v5, 16  ;;  %vm2525_vm6 = vmpackc.low %vm7663_vm14, %vm7663_vm14 }
  0x65   : > { %vm7673_vm15 = vcmp.le.s32.totalorder %v625_v6, 14  ;;  %v639_v41 = vand.u32 15, %v441_v7  ;;  %v1680_v53 = vshrl.u32 %v7547_v37, 16  ;;  %v7678_v44 = vor.u32 %v2782_v57, %v2778_v56 }
  0x66   : > { %v2643_v47 = vor.u32 %v2641_v9, %v2640_v8  ;;  %v7681_v54 = vcombine.low %v7303_v25, %v2555_v17  ;;  %v7688_v16 = vsel %vm9651_vm0, %v7448_v10, 0  ;;  %v7691_v42 = vsel %vm1718_vm11, %v2624_v26, %v2635_v4  ;;  %vm2527_vm2 = vmpackc.low %vm7673_vm15, %vm7673_vm15  ;;  %v7707_v26 = vld [vmem:[%s9620_s2] ss:$0 sm:$0xff] }
  0x67   : > { %9754 = vst [vmem:[#allocation19_spill] sm:$0xff] %v7678_v44  ;;  %v2651_v50 = vor.u32 %v2649_v11, %v2648_v13  ;;  %v2686_v55 = vshrl.u32 %v6273_v14, 16  ;;  %v2659_v37 = vor.u32 %v2657_v12, %v2656_v22  ;;  %v2667_v56 = vor.u32 %v2665_v31, %v7667_v28  ;;  %v7731_v17 = vld [vmem:[%s9621_s3] ss:$0 sm:$0xff] }
  0x68   : > { %v2672_v57 = vrot.slane %v2670_v34, 7  ;;  %v2673_v61 = vshll.u32 %v6271_v1, 16  ;;  %v7697_v62 = vrot.slane %v2678_v27, 7  ;;  %v2681_v63 = vshll.u32 %v6272_v5, 16 }
  0x69   : > { %v2557_v10 = vsel %vm2525_vm6, 65537, %v9630_v23  ;;  %vm7700_vm3 = vcmp.le.s32.totalorder %v639_v41, 14  ;;  %v7710_v1 = vor.u32 %v1680_v53, %v7617_v24  ;;  %v7718_v4 = vsel %vm1718_vm11, %v2632_v43, %v2643_v47 }
  0x6a   : > { %9758 = vst [vmem:[#allocation21_spill] sm:$0xff] %v7718_v4  ;;  %v2694_v5 = vshrl.u32 %v7681_v54, 16  ;;  %v443_v6 = vadd.s32 232, %v7289_v19  ;;  %v7723_v7 = vsel %vm1718_vm11, %v2640_v8, %v2651_v50  ;;  %v7725_v9 = vrot.slane %v2686_v55, 7  ;;  %vm2529_vm4 = vmpackc.low %vm7700_vm3, %vm7700_vm3 }
  0x6b   : > { %9757 = vst [vmem:[#allocation20_spill] sm:$0xff] %v7710_v1  ;;  %9759 = vst [vmem:[#allocation22_spill] sm:$0xff] %v7723_v7  ;;  %v2689_v11 = vshll.u32 %v6273_v14, 16  ;;  %v2559_v24 = vsel %vm2527_vm2, 65537, %v9630_v23  ;;  %v7734_v43 = vsel %vm1718_vm11, %v2648_v13, %v2659_v37  ;;  %v7737_v18 = vsel %vm1718_vm11, %v2656_v22, %v2667_v56 }
  0x6c   : > { %9760 = vst [vmem:[#allocation23_spill] sm:$0xff] %v7725_v9  ;;  %9761 = vst [vmem:[#allocation24_spill] sm:$0xff] %v7734_v43  ;;  %v2675_v31 = vor.u32 %v2673_v61, %v2672_v57  ;;  %v7740_v8 = vcombine.low %v7303_v25, %v2557_v10  ;;  %v7748_v27 = vsel %vm9651_vm0, %v7715_v3, 0  ;;  %v2683_v13 = vor.u32 %v2681_v63, %v7697_v62 }
  0x6d   : > { %9762 = vst [vmem:[#allocation25_spill] sm:$0xff] %v7737_v18  ;;  %9763 = vst [vmem:[#allocation26_spill] sm:$0xff] %v7748_v27  ;;  %v2697_v22 = vshll.u32 %v7681_v54, 16  ;;  %v7753_v53 = vrot.slane %v2694_v5, 7  ;;  %v7756_v47 = vcombine.low %v7303_v25, %v2559_v24  ;;  %v653_v50 = vand.u32 15, %v443_v6 }
  0x6e   : > { %v2691_v61 = vor.u32 %v2689_v11, %v7725_v9  ;;  %v2561_v63 = vsel %vm2529_vm4, 65537, %v9630_v23  ;;  %v2702_v0 = vshrl.u32 %v7740_v8, 16  ;;  %v7767_v6 = vadd.s32 248, %v7289_v19 }
  0x6f   : > { %9764 = vst [vmem:[#allocation27_spill] sm:$0xff] %v7753_v53  ;;  %v7771_v11 = vcombine.low %v7303_v25, %v2561_v63  ;;  %vm7773_vm15 = vcmp.le.s32.totalorder %v653_v50, 14  ;;  %vm9656_vm6 = vcmp.ne.s16.totalorder %v7424_v58, 0  ;;  %v7783_v19 = vsel %vm1718_vm11, %v2672_v57, %v2683_v13 }
  0x70   : > { %9768 = vst [vmem:[#allocation29_spill] sm:$0xff] %v7783_v19  ;;  %vm9657_vm2 = vcmp.ne.s16.totalorder %v7410_v46, 0  ;;  %v7787_v50 = vor.u32 %v2697_v22, %v7753_v53  ;;  %vm2531_vm3 = vmpackc.low %vm7773_vm15, %vm7773_vm15  ;;  %vm9654_vm9 = vcmp.ne.s16.totalorder %v7457_v15, 0  ;;  %vm9655_vm15 = vcmp.ne.s16.totalorder %v7437_v2, 0 }
  0x71   : > { %vm9686_vm8 = vcmp.ne.s16.totalorder %v7512_v60, 0  ;;  %vm9660_vm10 = vcmp.ne.s16.totalorder %v7651_v48, 0 }
  0x72   : > { %9769 = vst [vmem:[#allocation30_spill] sm:$0xff] %v7787_v50 }
  0xf0   : > { %v6622_v12 = vpop.f32.mrb[0].mxu0 }
  0xf1   : > { %v1109_v14 = vadd.f32 %v6622_v12, %v7707_v26  ;;  %v1100_v34 = vpop.f32.mrb[1].mxu0 }
  0xf2   : > { %v1101_v32 = vadd.f32 %v7707_v26, %v1100_v34  ;;  %v6623_v41 = vpop.f32.mrb[2].mxu0  ;;  %v6646_v22 = vpop.f32.mrb[0].mxu1 }
  0xf3   : > { %v1268_v55 = vmul.f32 %v7731_v17, %v1109_v14  ;;  %v1112_v37 = vadd.f32 %v6623_v41, %v7707_v26  ;;  %v1103_v56 = vpop.f32.mrb[3].mxu0  ;;  %vm1229_vm5 = vcmp.ge.f32.partialorder %v1109_v14, 0.0 }
  0xf4   : > { %v1266_v54 = vmul.f32 %v7731_v17, %v1101_v32  ;;  %v1104_v10 = vadd.f32 %v7707_v26, %v1103_v56  ;;  %vm1227_vm7 = vcmp.ge.f32.partialorder %v1101_v32, 0.0  ;;  %v7780_v56 = vsel %vm1718_vm11, %v7667_v28, %v2675_v31 }
  0xf5   : > { %vm1230_vm13 = vcmp.ge.f32.partialorder %v1112_v37, 0.0  ;;  %v1269_v5 = vmul.f32 %v7731_v17, %v1112_v37  ;;  %v1300_v34 = vsel %vm1229_vm5, %v1109_v14, %v1268_v55  ;;  %9767 = vst [vmem:[#allocation28_spill] sm:$0xff] %v7780_v56  ;;  %v7792_v28 = vsel %vm1718_vm11, %v7697_v62, %v2691_v61 }
  0xf6   : > { %vm1228_vm14 = vcmp.ge.f32.partialorder %v1104_v10, 0.0  ;;  %v1267_v24 = vmul.f32 %v7731_v17, %v1104_v10  ;;  %v1298_v23 = vsel %vm1227_vm7, %v1101_v32, %v1266_v54  ;;  %9770 = vst [vmem:[#allocation31_spill] sm:$0xff] %v7792_v28 }
  0xf7   : > { %v1301_v41 = vsel %vm1230_vm13, %v1112_v37, %v1269_v5 }
  0xf8   : > { %v1331_v33 = vpack.c.bf16 %v1301_v41, %v1300_v34  ;;  %v1299_v39 = vsel %vm1228_vm14, %v1104_v10, %v1267_v24  ;;  %v6626_v63 = vpop.f32.mrb[4].mxu0  ;;  %v1196_v10 = vpop.f32.mrb[1].mxu1  ;;  %v9771_v41 = vmov 0  }
  0xf9   : > { %v1330_v14 = vpack.c.bf16 %v1299_v39, %v1298_v23  ;;  %v1125_v55 = vadd.f32 %v6626_v63, %v7707_v26  ;;  %v1116_v37 = vpop.f32.mrb[5].mxu0  ;;  %v7800_v23 = vrot.slane %v2702_v0, 7  ;;  %v1197_v24 = vadd.f32 %v7707_v26, %v1196_v10  ;;  %v6647_v34 = vpop.f32.mrb[2].mxu1 }
  0xfa   : > { %1347 = vst.msk [vmem:[#allocation2 + $0x18] sm:$0xff] %vm408_vm1, %v1331_v33  ;;  %v1117_v31 = vadd.f32 %v7707_v26, %v1116_v37  ;;  %v6627_v13 = vpop.f32.mrb[6].mxu0  ;;  %v1205_v33 = vadd.f32 %v6646_v22, %v7707_v26  ;;  %v7817_v63 = vsel %vm2531_vm3, 65537, %v9771_v41  ;;  %v1199_v37 = vpop.f32.mrb[3].mxu1  ;;  %v1208_v39 = vadd.f32 %v6647_v34, %v7707_v26 }
  0xfb   : > { %1346 = vst.msk [vmem:[#allocation2 + $0x10] sm:$0xff] %vm408_vm1, %v1330_v14  ;;  %vm1233_vm4 = vcmp.ge.f32.partialorder %v1125_v55, 0.0  ;;  %v1272_v62 = vmul.f32 %v7731_v17, %v1125_v55  ;;  %v1128_v61 = vadd.f32 %v6627_v13, %v7707_v26  ;;  %v1119_v54 = vpop.f32.mrb[7].mxu0  ;;  %vm1251_vm12 = vcmp.ge.f32.partialorder %v1197_v24, 0.0 }
  0xfc   : > { %v1270_v5 = vmul.f32 %v7731_v17, %v1117_v31  ;;  %v1120_v0 = vadd.f32 %v7707_v26, %v1119_v54  ;;  %vm1231_vm5 = vcmp.ge.f32.partialorder %v1117_v31, 0.0  ;;  %vm1253_vm13 = vcmp.ge.f32.partialorder %v1205_v33, 0.0 }
  0xfd   : > { %vm1234_vm7 = vcmp.ge.f32.partialorder %v1128_v61, 0.0  ;;  %v1273_v14 = vmul.f32 %v7731_v17, %v1128_v61  ;;  %v1304_v13 = vsel %vm1233_vm4, %v1125_v55, %v1272_v62  ;;  %v1292_v54 = vmul.f32 %v7731_v17, %v1205_v33 }
  0xfe   : > { %vm1232_vm14 = vcmp.ge.f32.partialorder %v1120_v0, 0.0  ;;  %v1271_v22 = vmul.f32 %v7731_v17, %v1120_v0  ;;  %v1290_v12 = vmul.f32 %v7731_v17, %v1197_v24  ;;  %v1302_v57 = vsel %vm1231_vm5, %v1117_v31, %v1270_v5 }
  0xff   : > { %v1305_v10 = vsel %vm1234_vm7, %v1128_v61, %v1273_v14  ;;  %v7826_v28 = vsel %vm1253_vm13, %v1205_v33, %v1292_v54  ;;  %v7835_v14 = vadd.f32 %v7707_v26, %v1199_v37  ;;  %vm1254_vm3 = vcmp.ge.f32.partialorder %v1208_v39, 0.0  ;;  %v7858_v37 = vld [vmem:[%s9622_s4 + $0xa] sm:$0x3] }
 0x100   : > { %v1333_v32 = vpack.c.bf16 %v1305_v10, %v1304_v13  ;;  %v1303_v27 = vsel %vm1232_vm14, %v1120_v0, %v1271_v22  ;;  %v6630_v44 = vpop.f32.mrb[8].mxu0  ;;  %v7832_v61 = vsel %vm1251_vm12, %v1197_v24, %v1290_v12  ;;  %9773 = vst [vmem:[#allocation33_spill] sm:$0xff] %v7858_v37 }
 0x101   : > { %v1332_v55 = vpack.c.bf16 %v1303_v27, %v1302_v57  ;;  %v1141_v62 = vadd.f32 %v6630_v44, %v7707_v26  ;;  %v1132_v19 = vpop.f32.mrb[9].mxu0  ;;  %v7829_v38 = vld [vmem:[#allocation2 + $0x18] sm:$0xff]  ;;  %v1293_v27 = vmul.f32 %v7731_v17, %v1208_v39  ;;  %v6650_v57 = vpop.f32.mrb[4].mxu1  ;;  %vm1252_vm7 = vcmp.ge.f32.partialorder %v7835_v14, 0.0 }
 0x102   : > { %9772 = vst [vmem:[#allocation32_spill] sm:$0xff] %v7829_v38  ;;  %1349 = vst.msk [vmem:[#allocation2 + $0x28] sm:$0xff] %vm408_vm1, %v1333_v32  ;;  %v1133_v31 = vadd.f32 %v7707_v26, %v1132_v19  ;;  %v6631_v5 = vpop.f32.mrb[10].mxu0  ;;  %v7839_v33 = vld [vmem:[#allocation2 + $0x10] sm:$0xff]  ;;  %v1703_v44 = vsel %vm9656_vm6, %v7829_v38, 0  ;;  %v7853_v34 = vpop.f32.mrb[5].mxu1 }
 0x103   : > { %1348 = vst.msk [vmem:[#allocation2 + $0x20] sm:$0xff] %vm408_vm1, %v1332_v55  ;;  %vm1237_vm12 = vcmp.ge.f32.partialorder %v1141_v62, 0.0  ;;  %v1276_v0 = vmul.f32 %v7731_v17, %v1141_v62  ;;  %v1144_v32 = vadd.f32 %v6631_v5, %v7707_v26  ;;  %v1135_v24 = vpop.f32.mrb[11].mxu0  ;;  %6689 = vmatmul.mubr.msk.bf16.vlgmr.msra.gmra.mrb[24].mxu0 %vm408_vm1, %v7839_v33  ;;  %v1702_v19 = vsel %vm9657_vm2, %v7839_v33, 0  ;;  %v7864_v10 = vpop.f32.mrb[6].mxu1 }
 0x104   : > { %vm1235_vm4 = vcmp.ge.f32.partialorder %v1133_v31, 0.0  ;;  %v1274_v13 = vmul.f32 %v7731_v17, %v1133_v31  ;;  %v1136_v22 = vadd.f32 %v7707_v26, %v1135_v24  ;;  %6692 = vmatprep.mubr.msk.bf16.mxu0 %vm408_vm1, %v7829_v38  ;;  %v1732_v54 = vshrl.u32 %v1702_v19, 16  ;;  %6755 = vmatpush3.bf16.msra.mxu0 %v7688_v16  ;;  %v7869_v56 = vpop.f32.mrb[7].mxu1 }
 0x105   : > { %v1308_v12 = vsel %vm1237_vm12, %v1141_v62, %v1276_v0  ;;  %vm1238_vm5 = vcmp.ge.f32.partialorder %v1144_v32, 0.0  ;;  %v1277_v55 = vmul.f32 %v7731_v17, %v1144_v32  ;;  %v1735_v5 = vshll.u32 %v1702_v19, 16  ;;  %6995 = vmatprep.subr.msk.bf16.mxu0 %vm9651_vm0, %v7858_v37 }
 0x106   : > { %v1306_v24 = vsel %vm1235_vm4, %v1133_v31, %v1274_v13  ;;  %vm1236_vm13 = vcmp.ge.f32.partialorder %v1136_v22, 0.0  ;;  %v1275_v18 = vmul.f32 %v7731_v17, %v1136_v22  ;;  %v1734_v58 = vrot.slane %v1732_v54, 7 }
 0x107   : > { %v1309_v53 = vsel %vm1238_vm5, %v1144_v32, %v1277_v55  ;;  %v1740_v9 = vshrl.u32 %v1703_v44, 16  ;;  %v1743_v16 = vshll.u32 %v1703_v44, 16  ;;  %v1325_v62 = vsel %vm1254_vm3, %v1208_v39, %v1293_v27 }
 0x108   : > { %v1335_v0 = vpack.c.bf16 %v1309_v53, %v1308_v12  ;;  %v1307_v50 = vsel %vm1236_vm13, %v1136_v22, %v1275_v18  ;;  %v6634_v19 = vpop.f32.mrb[12].mxu0  ;;  %v1737_v43 = vor.u32 %v1735_v5, %v1734_v58  ;;  %v1343_v46 = vpack.c.bf16 %v1325_v62, %v7826_v28 }
 0x109   : > { %v1334_v38 = vpack.c.bf16 %v1307_v50, %v1306_v24  ;;  %v1157_v7 = vadd.f32 %v6634_v19, %v7707_v26  ;;  %v1148_v37 = vpop.f32.mrb[13].mxu0  ;;  %v7877_v31 = vrot.slane %v1740_v9, 7  ;;  %v7879_v13 = vld [vmem:[#allocation2 + $0x28] sm:$0xff]  ;;  %v1291_v32 = vmul.f32 %v7731_v17, %v7835_v14 }
 0x10a   : > { %1351 = vst.msk [vmem:[#allocation2 + $0x38] sm:$0xff] %vm408_vm1, %v1335_v0  ;;  %v1149_v53 = vadd.f32 %v7707_v26, %v1148_v37  ;;  %v6635_v18 = vpop.f32.mrb[14].mxu0  ;;  %v1738_v39 = vsel %vm1718_vm11, %v7333_v49, %v1737_v43  ;;  %v7887_v28 = vld [vmem:[#allocation2 + $0x20] sm:$0xff]  ;;  %v1705_v9 = vsel %vm9654_vm9, %v7879_v13, 0  ;;  %1359 = vst.msk [vmem:[#allocation2 + $0x78] sm:$0xff] %vm408_vm1, %v1343_v46  ;;  %v7894_v50 = vadd.f32 %v6650_v57, %v7707_v26 }
 0x10b   : > { %1350 = vst.msk [vmem:[#allocation2 + $0x30] sm:$0xff] %vm408_vm1, %v1334_v38  ;;  %vm1241_vm14 = vcmp.ge.f32.partialorder %v1157_v7, 0.0  ;;  %v1280_v44 = vmul.f32 %v7731_v17, %v1157_v7  ;;  %v1160_v27 = vadd.f32 %v6635_v18, %v7707_v26  ;;  %v1151_v37 = vpop.f32.mrb[15].mxu0  ;;  %6655 = vmatmul.mubr.msk.bf16.vlgmr.msra.gmra.mrb[8].mxu1 %vm408_vm1, %v1738_v39  ;;  %6693 = vmatmul.mubr.msk.bf16.gmra.mrb[28].mxu0 %vm408_vm1, %v7887_v28  ;;  %v1704_v38 = vsel %vm9655_vm15, %v7887_v28, 0 }
 0x10c   : > { %v1745_v49 = vor.u32 %v1743_v16, %v7877_v31  ;;  %vm1239_vm3 = vcmp.ge.f32.partialorder %v1149_v53, 0.0  ;;  %v1278_v46 = vmul.f32 %v7731_v17, %v1149_v53  ;;  %v1152_v43 = vadd.f32 %v7707_v26, %v1151_v37  ;;  %6721 = vmatpush3.bf16.msra.mxu1 %v7471_v30  ;;  %6696 = vmatprep.mubr.msk.bf16.mxu0 %vm408_vm1, %v7879_v13 }
 0x10d   : > { %vm9653_vm12 = vcmp.ne.s16.totalorder %v7488_v45, 0  ;;  %v1312_v57 = vsel %vm1241_vm14, %v1157_v7, %v1280_v44  ;;  %vm1242_vm4 = vcmp.ge.f32.partialorder %v1160_v27, 0.0  ;;  %v1281_v22 = vmul.f32 %v7731_v17, %v1160_v27  ;;  %6994 = vmatprep.subr.msk.bf16.mxu1 %vm9651_vm0, %v7715_v3 }
 0x10e   : > { %v1746_v54 = vsel %vm1718_vm11, %v1734_v58, %v1745_v49  ;;  %v1310_v12 = vsel %vm1239_vm3, %v1149_v53, %v1278_v46  ;;  %vm1240_vm5 = vcmp.ge.f32.partialorder %v1152_v43, 0.0  ;;  %v1279_v30 = vmul.f32 %v7731_v17, %v1152_v43 }
 0x10f   : > { %6658 = vmatprep.mubr.msk.bf16.mxu1 %vm408_vm1, %v1746_v54  ;;  %v1748_v55 = vshrl.u32 %v1704_v38, 16  ;;  %v1313_v5 = vsel %vm1242_vm4, %v1160_v27, %v1281_v22  ;;  %v1751_v24 = vshll.u32 %v1704_v38, 16  ;;  %v1756_v16 = vshrl.u32 %v1705_v9, 16 }
 0x110   : > { %v1759_v62 = vshll.u32 %v1705_v9, 16  ;;  %v1337_v7 = vpack.c.bf16 %v1313_v5, %v1312_v57  ;;  %v1311_v0 = vsel %vm1240_vm5, %v1152_v43, %v1279_v30  ;;  %v6638_v19 = vpop.f32.mrb[16].mxu0  ;;  %v1323_v58 = vsel %vm1252_vm7, %v7835_v14, %v1291_v32 }
 0x111   : > { %v1750_v18 = vrot.slane %v1748_v55, 7  ;;  %v1336_v3 = vpack.c.bf16 %v1311_v0, %v1310_v12  ;;  %v1173_v53 = vadd.f32 %v6638_v19, %v7707_v26  ;;  %v1164_v39 = vpop.f32.mrb[17].mxu0  ;;  %v7922_v44 = vrot.slane %v1756_v16, 7  ;;  %v7941_v22 = vld [vmem:[#allocation2 + $0x38] sm:$0xff] }
 0x112   : > { %v1342_v37 = vpack.c.bf16 %v1323_v58, %v7832_v61  ;;  %1353 = vst.msk [vmem:[#allocation2 + $0x48] sm:$0xff] %vm408_vm1, %v1337_v7  ;;  %v1165_v9 = vadd.f32 %v7707_v26, %v1164_v39  ;;  %v6639_v27 = vpop.f32.mrb[18].mxu0  ;;  %v7927_v46 = vld [vmem:[#allocation2 + $0x30] sm:$0xff]  ;;  %v1296_v43 = vmul.f32 %v7731_v17, %v7894_v50  ;;  %v7933_v14 = vcombine.low %v7303_v25, %v7817_v63 }
 0x113   : > { %v1753_v49 = vor.u32 %v1751_v24, %v1750_v18  ;;  %1352 = vst.msk [vmem:[#allocation2 + $0x40] sm:$0xff] %vm408_vm1, %v1336_v3  ;;  %vm1245_vm7 = vcmp.ge.f32.partialorder %v1173_v53, 0.0  ;;  %v1284_v61 = vmul.f32 %v7731_v17, %v1173_v53  ;;  %v1176_v32 = vadd.f32 %v6639_v27, %v7707_v26  ;;  %v1167_v38 = vpop.f32.mrb[19].mxu0  ;;  %6697 = vmatmul.mubr.msk.bf16.gmra.mrb[32].mxu0 %vm408_vm1, %v7927_v46 }
 0x114   : > { %v1761_v57 = vor.u32 %v1759_v62, %v7922_v44  ;;  %1358 = vst.msk [vmem:[#allocation2 + $0x70] sm:$0xff] %vm408_vm1, %v1342_v37  ;;  %vm1243_vm13 = vcmp.ge.f32.partialorder %v1165_v9, 0.0  ;;  %v1282_v63 = vmul.f32 %v7731_v17, %v1165_v9  ;;  %v1168_v54 = vadd.f32 %v7707_v26, %v1167_v38  ;;  %6700 = vmatprep.mubr.msk.bf16.mxu0 %vm408_vm1, %v7941_v22 }
 0x115   : > { %v1754_v12 = vsel %vm1718_vm11, %v7877_v31, %v1753_v49  ;;  %vm9685_vm14 = vcmp.ne.s16.totalorder %v7491_v51, 0  ;;  %vm9687_vm3 = vcmp.ne.s16.totalorder %v7494_v52, 0  ;;  %vm1246_vm4 = vcmp.ge.f32.partialorder %v1176_v32, 0.0 }
 0x116   : > { %v1285_v30 = vmul.f32 %v7731_v17, %v1176_v32  ;;  %6659 = vmatmul.mubr.msk.bf16.gmra.mrb[12].mxu1 %vm408_vm1, %v1754_v12  ;;  %v1762_v55 = vsel %vm1718_vm11, %v1750_v18, %v1761_v57  ;;  %vm1257_vm5 = vcmp.ge.f32.partialorder %v7894_v50, 0.0  ;;  %v1316_v5 = vsel %vm1245_vm7, %v1173_v53, %v1284_v61 }
 0x117   : > { %v1314_v24 = vsel %vm1243_vm13, %v1165_v9, %v1282_v63  ;;  %vm1244_vm0 = vcmp.ge.f32.partialorder %v1168_v54, 0.0  ;;  %v1283_v31 = vmul.f32 %v7731_v17, %v1168_v54  ;;  %6662 = vmatprep.mubr.msk.bf16.mxu1 %vm408_vm1, %v1762_v55  ;;  %v1213_v62 = vadd.f32 %v7707_v26, %v7853_v34 }
 0x118   : > { %v1317_v16 = vsel %vm1246_vm4, %v1176_v32, %v1285_v30  ;;  %v1224_v7 = vadd.f32 %v7864_v10, %v7707_v26  ;;  %v1706_v0 = vsel %vm9653_vm12, %v7927_v46, 0  ;;  %v9774_v19 = vand.u32 15, %v7767_v6  ;;  %v6642_v53 = vpop.f32.mrb[20].mxu0 }
 0x119   : > { %v1339_v58 = vpack.c.bf16 %v1317_v16, %v1316_v5  ;;  %v1315_v3 = vsel %vm1244_vm0, %v1168_v54, %v1283_v31  ;;  %v1328_v34 = vsel %vm1257_vm5, %v7894_v50, %v1296_v43  ;;  %v1764_v39 = vshrl.u32 %v1706_v0, 16  ;;  %v1180_v9 = vpop.f32.mrb[21].mxu0  ;;  %v7990_v54 = vld [vmem:[#allocation2 + $0x48] sm:$0xff] }
 0x11a   : > { %vm7969_vm7 = vcmp.le.s32.totalorder %v9774_v19, 14  ;;  %vm1693_vm13 = vcmp.ne.s16.totalorder %v7531_v20, 0  ;;  %v1338_v10 = vpack.c.bf16 %v1315_v3, %v1314_v24  ;;  %v1189_v37 = vadd.f32 %v6642_v53, %v7707_v26  ;;  %v6643_v49 = vpop.f32.mrb[22].mxu0  ;;  %v7981_v50 = vld [vmem:[#allocation2 + $0x40] sm:$0xff] }
 0x11b   : > { %vm1255_vm4 = vcmp.ge.f32.partialorder %v1213_v62, 0.0  ;;  %v1767_v27 = vshll.u32 %v1706_v0, 16  ;;  %1355 = vst.msk [vmem:[#allocation2 + $0x58] sm:$0xff] %vm408_vm1, %v1339_v58  ;;  %v1181_v6 = vadd.f32 %v7707_v26, %v1180_v9  ;;  %vm1258_vm12 = vcmp.ge.f32.partialorder %v1224_v7, 0.0  ;;  %v1183_v63 = vpop.f32.mrb[23].mxu0  ;;  %6701 = vmatmul.mubr.msk.bf16.gmra.mrb[36].mxu0 %vm408_vm1, %v7981_v50 }
 0x11c   : > { %v1297_v61 = vmul.f32 %v7731_v17, %v1224_v7  ;;  %v7979_v32 = vrot.slane %v1764_v39, 7  ;;  %vm9691_vm0 = vcmp.ne.s16.totalorder %v7534_v21, 0  ;;  %1354 = vst.msk [vmem:[#allocation2 + $0x50] sm:$0xff] %vm408_vm1, %v1338_v10  ;;  %vm1249_vm5 = vcmp.ge.f32.partialorder %v1189_v37, 0.0  ;;  %6704 = vmatprep.mubr.msk.bf16.mxu0 %vm408_vm1, %v7990_v54 }
 0x11d   : > { %v1288_v43 = vmul.f32 %v7731_v17, %v1189_v37  ;;  %v1192_v38 = vadd.f32 %v6643_v49, %v7707_v26  ;;  %v1294_v57 = vmul.f32 %v7731_v17, %v1213_v62  ;;  %vm1247_vm9 = vcmp.ge.f32.partialorder %v1181_v6, 0.0 }
 0x11e   : > { %v1286_v12 = vmul.f32 %v7731_v17, %v1181_v6  ;;  %v1184_v30 = vadd.f32 %v7707_v26, %v1183_v63  ;;  %v1329_v55 = vsel %vm1258_vm12, %v1224_v7, %v1297_v61  ;;  %vm9663_vm6 = vcmp.ne.s16.totalorder %v7636_v35, 0  ;;  %vm2533_vm12 = vmpackc.low %vm7969_vm7, %vm7969_vm7  ;;  %v8167_v35 = vld [vmem:[#allocation2 + $0x10] sm:$0xff] }
 0x11f   : > { %v1320_v5 = vsel %vm1249_vm5, %v1189_v37, %v1288_v43  ;;  %vm1250_vm15 = vcmp.ge.f32.partialorder %v1192_v38, 0.0  ;;  %v1289_v24 = vmul.f32 %v7731_v17, %v1192_v38  ;;  %v1345_v31 = vpack.c.bf16 %v1329_v55, %v1328_v34 }
 0x120   : > { %v1318_v16 = vsel %vm1247_vm9, %v1181_v6, %v1286_v12  ;;  %vm1248_vm2 = vcmp.ge.f32.partialorder %v1184_v30, 0.0  ;;  %v1287_v0 = vmul.f32 %v7731_v17, %v1184_v30  ;;  %v1769_v19 = vor.u32 %v1767_v27, %v7979_v32 }
 0x121   : > { %v1321_v58 = vsel %vm1250_vm15, %v1192_v38, %v1289_v24  ;;  %1361 = vst.msk [vmem:[#allocation2 + $0x88] sm:$0xff] %vm408_vm1, %v1345_v31  ;;  %v1216_v7 = vadd.f32 %v7707_v26, %v7869_v56  ;;  %v1707_v3 = vsel %vm9685_vm14, %v7941_v22, 0  ;;  %v1708_v53 = vsel %vm9687_vm3, %v7981_v50, 0 }
 0x122   : > { %v1341_v34 = vpack.c.bf16 %v1321_v58, %v1320_v5  ;;  %v1319_v39 = vsel %vm1248_vm2, %v1184_v30, %v1287_v0  ;;  %v1770_v10 = vsel %vm1718_vm11, %v7922_v44, %v1769_v19  ;;  %v1772_v37 = vshrl.u32 %v1707_v3, 16 }
 0x123   : > { %v1326_v9 = vsel %vm1255_vm4, %v1213_v62, %v1294_v57  ;;  %v1340_v27 = vpack.c.bf16 %v1319_v39, %v1318_v16  ;;  %6663 = vmatmul.mubr.msk.bf16.gmra.mrb[16].mxu1 %vm408_vm1, %v1770_v10  ;;  %vm1256_vm9 = vcmp.ge.f32.partialorder %v1216_v7, 0.0  ;;  %v1295_v26 = vmul.f32 %v7731_v17, %v1216_v7  ;;  %v8018_v61 = vld [vmem:[#allocation2 + $0x50] sm:$0xff]  ;;  %v8023_v62 = vld [vmem:[#allocation2 + $0x58] sm:$0xff] }
 0x124   : > { %vm9673_vm15 = vcmp.ne.s16.totalorder %v7628_v29, 0  ;;  %1357 = vst.msk [vmem:[#allocation2 + $0x68] sm:$0xff] %vm408_vm1, %v1341_v34  ;;  %v1774_v56 = vrot.slane %v1772_v37, 7  ;;  %v1775_v6 = vshll.u32 %v1707_v3, 16  ;;  %v1780_v49 = vshrl.u32 %v1708_v53, 16  ;;  %6705 = vmatmul.mubr.msk.bf16.gmra.mrb[40].mxu0 %vm408_vm1, %v8018_v61  ;;  %v8040_v16 = vld [vmem:[#allocation2 + $0x70] sm:$0xff] }
 0x125   : > { %v1709_v44 = vsel %vm9686_vm8, %v7990_v54, 0  ;;  %vm9689_vm2 = vcmp.ne.s16.totalorder %v7576_v59, 0  ;;  %1356 = vst.msk [vmem:[#allocation2 + $0x60] sm:$0xff] %vm408_vm1, %v1340_v27  ;;  %v1327_v17 = vsel %vm1256_vm9, %v1216_v7, %v1295_v26  ;;  %v1783_v43 = vshll.u32 %v1708_v53, 16  ;;  %6708 = vmatprep.mubr.msk.bf16.mxu0 %vm408_vm1, %v8023_v62  ;;  %v8052_v53 = vld [vmem:[#allocation2 + $0x78] sm:$0xff] }
 0x126   : > { %v1788_v38 = vshrl.u32 %v1709_v44, 16  ;;  %v1710_v57 = vsel %vm1693_vm13, %v8018_v61, 0  ;;  %v1344_v63 = vpack.c.bf16 %v1327_v17, %v1326_v9  ;;  %v1777_v12 = vor.u32 %v1775_v6, %v1774_v56 }
 0x127   : > { %v1782_v30 = vrot.slane %v1780_v49, 7  ;;  %v1796_v55 = vshrl.u32 %v1710_v57, 16  ;;  %v1791_v24 = vshll.u32 %v1709_v44, 16  ;;  %v1711_v31 = vsel %vm9691_vm0, %v8023_v62, 0 }
 0x128   : > { %v1790_v5 = vrot.slane %v1788_v38, 7  ;;  %vm9666_vm4 = vcmp.ne.s16.totalorder %v7710_v1, 0  ;;  %v2565_v0 = vsel %vm2533_vm12, 65537, %v9771_v41  ;;  %1360 = vst.msk [vmem:[#allocation2 + $0x80] sm:$0xff] %vm408_vm1, %v1344_v63  ;;  %v1778_v19 = vsel %vm1718_vm11, %v7979_v32, %v1777_v12 }
 0x129   : > { %v1785_v58 = vor.u32 %v1783_v43, %v1782_v30  ;;  %v1798_v7 = vrot.slane %v1796_v55, 7  ;;  %v1804_v3 = vshrl.u32 %v1711_v31, 16  ;;  %6666 = vmatprep.mubr.msk.bf16.mxu1 %vm408_vm1, %v1778_v19  ;;  %v2705_v39 = vshll.u32 %v7740_v8, 16 }
 0x12a   : > { %v1793_v34 = vor.u32 %v1791_v24, %v1790_v5  ;;  %v9777_v10 = vshrl.u32 %v7756_v47, 16  ;;  %v2713_v41 = vshll.u32 %v7756_v47, 16  ;;  %v1799_v9 = vshll.u32 %v1710_v57, 16 }
 0x12b   : > { %v1786_v37 = vsel %vm1718_vm11, %v1774_v56, %v1785_v58  ;;  %v8065_v32 = vsel %vm9663_vm6, %v8040_v16, 0  ;;  %v2721_v27 = vshll.u32 %v7771_v11, 16  ;;  %v8070_v26 = vrot.slane %v1804_v3, 7  ;;  %v8072_v6 = vld [vmem:[#allocation2 + $0x68] sm:$0xff] }
 0x12c   : > { %v8058_v18 = vrot.slane %v9777_v10, 7  ;;  %6667 = vmatmul.mubr.msk.bf16.gmra.mrb[20].mxu1 %vm408_vm1, %v1786_v37  ;;  %v1794_v8 = vsel %vm1718_vm11, %v1782_v30, %v1793_v34  ;;  %v1715_v47 = vsel %vm9660_vm10, %v8052_v53, 0  ;;  %v8078_v56 = vcombine.low %v7303_v25, %v2565_v0  ;;  %v8081_v44 = vld [vmem:[#allocation2 + $0x60] sm:$0xff] }
 0x12d   : > { %6670 = vmatprep.mubr.msk.bf16.mxu1 %vm408_vm1, %v1794_v8  ;;  %v1801_v49 = vor.u32 %v1799_v9, %v1798_v7  ;;  %v1713_v17 = vsel %vm9673_vm15, %v8072_v6, 0  ;;  %v9778_v43 = vshrl.u32 %v7771_v11, 16  ;;  %v2726_v57 = vshrl.u32 %v7933_v14, 16  ;;  %6709 = vmatmul.mubr.msk.bf16.gmra.mrb[44].mxu0 %vm408_vm1, %v8081_v44 }
 0x12e   : > { %v1807_v25 = vshll.u32 %v1711_v31, 16  ;;  %v1712_v63 = vsel %vm9689_vm2, %v8081_v44, 0  ;;  %v1828_v12 = vshrl.u32 %v8065_v32, 16  ;;  %v2707_v30 = vor.u32 %v2705_v39, %v7800_v23  ;;  %6712 = vmatprep.mubr.msk.bf16.mxu0 %vm408_vm1, %v8072_v6 }
 0x12f   : > { %v8088_v38 = vrot.slane %v9778_v43, 7  ;;  %v1812_v11 = vshrl.u32 %v1712_v63, 16  ;;  %v1836_v55 = vshrl.u32 %v1715_v47, 16  ;;  %vm9779_vm7 = vcmp.ne.s16.totalorder %v7319_v40, 0  ;;  %v8106_v58 = vld [vmem:[#allocation2 + $0x80] sm:$0xff]  ;;  %v9780_v43 = vld [vmem:[#allocation22_spill] sm:$0xff] }
 0x130   : > { %v3235_v24 = vsel %vm9779_vm7, %v7839_v33, 0  ;;  %vm9674_vm5 = vcmp.ne.s16.totalorder %v7718_v4, 0  ;;  %v2715_v31 = vor.u32 %v2713_v41, %v8058_v18  ;;  %v1809_v0 = vor.u32 %v1807_v25, %v8070_v26 }
 0x131   : > { %v1820_v19 = vshrl.u32 %v1713_v17, 16  ;;  %v2729_v3 = vshll.u32 %v7933_v14, 16  ;;  %v2734_v34 = vshrl.u32 %v8078_v56, 16  ;;  %v1802_v39 = vsel %vm1718_vm11, %v1790_v5, %v1801_v49 }
 0x132   : > { %v1814_v10 = vrot.slane %v1812_v11, 7  ;;  %vm9690_vm9 = vcmp.ne.s16.totalorder %v7671_v36, 0  ;;  %vm9682_vm12 = vcmp.ne.s16.totalorder %v7691_v42, 0  ;;  %v2723_v33 = vor.u32 %v2721_v27, %v8088_v38 }
 0x133   : > { %v8114_v37 = vrot.slane %v2726_v57, 7  ;;  %v1830_v41 = vrot.slane %v1828_v12, 7  ;;  %v1831_v9 = vshll.u32 %v8065_v32, 16  ;;  %v3258_v8 = vshrl.u32 %v3235_v24, 16  ;;  %v9781_v12 = vld [vmem:[#allocation32_spill] sm:$0xff]  ;;  %v9782_v32 = vld [vmem:[#allocation9_spill] sm:$0xff] }
 0x134   : > { %vm9679_vm7 = vcmp.ne.s16.totalorder %v9780_v43, 0  ;;  %v2737_v14 = vshll.u32 %v8078_v56, 16  ;;  %v1815_v25 = vshll.u32 %v1712_v63, 16  ;;  %v8119_v40 = vrot.slane %v1836_v55, 7  ;;  %6671 = vmatmul.mubr.msk.bf16.gmra.mrb[24].mxu1 %vm408_vm1, %v1802_v39  ;;  %v9785_v63 = vld [vmem:[#allocation24_spill] sm:$0xff]  ;;  %v9787_v55 = vld [vmem:[#allocation23_spill] sm:$0xff] }
 0x135   : > { %v1839_v5 = vshll.u32 %v1715_v47, 16  ;;  %v1716_v49 = vsel %vm9666_vm4, %v8106_v58, 0  ;;  %v1810_v27 = vsel %vm1718_vm11, %v1798_v7, %v1809_v0  ;;  %v1822_v57 = vrot.slane %v1820_v19, 7  ;;  %v9786_v47 = vld [vmem:[#allocation30_spill] sm:$0xff]  ;;  %v9788_v39 = vld [vmem:[#allocation27_spill] sm:$0xff]  ;;  %6713 = vmatmul.mubr.msk.bf16.gmra.mrb[48].mxu0 %vm408_vm1, %v8040_v16 }
 0x136   : > { %vm9783_vm10 = vcmp.ne.s16.totalorder %v9782_v32, 0  ;;  %v8129_v48 = vrot.slane %v2734_v34, 7  ;;  %6674 = vmatprep.mubr.msk.bf16.mxu1 %vm408_vm1, %v1810_v27  ;;  %v1817_v56 = vor.u32 %v1815_v25, %v1814_v10  ;;  %vm9681_vm6 = vcmp.ne.s16.totalorder %v9785_v63, 0  ;;  %v9789_v27 = vld [vmem:[#allocation10_spill] sm:$0xff]  ;;  %6716 = vmatprep.mubr.msk.bf16.mxu0 %vm408_vm1, %v8052_v53 }
 0x137   : > { %v3236_v11 = vsel %vm9783_vm10, %v9781_v12, 0  ;;  %v8136_v1 = vsel %vm1718_vm11, %v9787_v55, %v9786_v47  ;;  %v8140_v7 = vsel %vm1718_vm11, %v9788_v39, %v2707_v30  ;;  %v2731_v0 = vor.u32 %v2729_v3, %v8114_v37 }
 0x138   : > { %9784 = vst [vmem:[#allocation32_spill] sm:$0xff] %v8129_v48  ;;  %v1823_v19 = vshll.u32 %v1713_v17, 16  ;;  %v8145_v34 = vrot.slane %v3258_v8, 7  ;;  %v1844_v25 = vshrl.u32 %v1716_v49, 16  ;;  %vm9790_vm10 = vcmp.ne.s16.totalorder %v9789_v27, 0  ;;  %v9791_v8 = vld [vmem:[#allocation25_spill] sm:$0xff] }
 0x139   : > { %v3237_v12 = vsel %vm9790_vm10, %v7887_v28, 0  ;;  %v1833_v47 = vor.u32 %v1831_v9, %v1830_v41  ;;  %v1841_v30 = vor.u32 %v1839_v5, %v8119_v40  ;;  %v3266_v55 = vshrl.u32 %v3236_v11, 16 }
 0x13a   : > { %v8155_v3 = vsel %vm1718_vm11, %v7800_v23, %v2715_v31  ;;  %v1825_v39 = vor.u32 %v1823_v19, %v1822_v57  ;;  %v3261_v17 = vshll.u32 %v3235_v24, 16  ;;  %vm9683_vm4 = vcmp.ne.s16.totalorder %v9791_v8, 0  ;;  %v8169_v23 = vld [vmem:[#allocation2 + $0x18] sm:$0xff] }
 0x13b   : > { %v8160_v32 = vsel %vm1718_vm11, %v8058_v18, %v2723_v33  ;;  %v8163_v27 = vor.u32 %v2737_v14, %v8129_v48  ;;  %v1818_v9 = vsel %vm1718_vm11, %v8070_v26, %v1817_v56  ;;  %v1847_v5 = vshll.u32 %v1716_v49, 16  ;;  %v9793_v48 = vld [vmem:[#allocation28_spill] sm:$0xff] }
 0x13c   : > { %v3274_v29 = vshrl.u32 %v3237_v12, 16  ;;  %v8173_v24 = vsel %vm1718_vm11, %v8088_v38, %v2731_v0  ;;  %v3263_v31 = vor.u32 %v3261_v17, %v8145_v34  ;;  %v1846_v18 = vrot.slane %v1844_v25, 7  ;;  %6675 = vmatmul.mubr.msk.bf16.gmra.mrb[28].mxu1 %vm408_vm1, %v1818_v9  ;;  %v9795_v9 = vld [vmem:[#allocation29_spill] sm:$0xff] }
 0x13d   : > { %vm9792_vm10 = vcmp.ne.s16.totalorder %v7437_v2, 0  ;;  %v2761_v26 = vsel %vm9674_vm5, %v7887_v28, 0  ;;  %v1834_v14 = vsel %vm1718_vm11, %v1822_v57, %v1833_v47  ;;  %v1842_v49 = vsel %vm1718_vm11, %v1830_v41, %v1841_v30  ;;  %6717 = vmatmul.mubr.msk.bf16.gmra.mrb[52].mxu0 %vm408_vm1, %v8106_v58 }
 0x13e   : > { %v3238_v33 = vsel %vm9792_vm10, %v7879_v13, 0  ;;  %v3268_v56 = vrot.slane %v3266_v55, 7  ;;  %v2801_v19 = vshll.u32 %v2761_v26, 16  ;;  %vm2748_vm15 = vcmp.ne.s16.totalorder %v9793_v48, 0 }
 0x13f   : > { %v1826_v38 = vsel %vm1718_vm11, %v1814_v10, %v1825_v39  ;;  %v3269_v0 = vshll.u32 %v3236_v11, 16  ;;  %v2759_v25 = vsel %vm9690_vm9, %v8167_v35, 0  ;;  %v8193_v28 = vsel %vm9682_vm12, %v8169_v23, 0  ;;  %v9794_v11 = vld [vmem:[#allocation15_spill] sm:$0xff] }
 0x140   : > { %6678 = vmatprep.mubr.msk.bf16.mxu1 %vm408_vm1, %v1826_v38  ;;  %v8196_v41 = vrot.slane %v3274_v29, 7  ;;  %v3282_v57 = vshrl.u32 %v3238_v33, 16  ;;  %v8198_v47 = vrot.slane %v2801_v19, 1  ;;  %v2762_v10 = vsel %vm9679_vm7, %v7879_v13, 0 }
 0x141   : > { %v3264_v30 = vsel %vm1718_vm11, %v9794_v11, %v3263_v31  ;;  %v1849_v55 = vor.u32 %v1847_v5, %v1846_v18  ;;  %v2805_v39 = vshrl.u32 %v2761_v26, 16  ;;  %v2809_v17 = vshll.u32 %v2762_v10, 16  ;;  %v9797_v11 = vld [vmem:[#allocation31_spill] sm:$0xff] }
 0x142   : > { %vm2749_vm10 = vcmp.ne.s16.totalorder %v9795_v9, 0  ;;  %6756 = vmatprep.mubr.msk.bf16.mxu0 %vm408_vm1, %v3264_v30  ;;  %v3271_v29 = vor.u32 %v3269_v0, %v3268_v56  ;;  %v2785_v19 = vshll.u32 %v2759_v25, 16  ;;  %v3277_v38 = vshll.u32 %v3237_v12, 16 }
 0x143   : > { %vm9796_vm5 = vcmp.ne.s16.totalorder %v7457_v15, 0  ;;  %v2789_v2 = vshrl.u32 %v2759_v25, 16  ;;  %v2807_v43 = vor.u32 %v2805_v39, %v8198_v47  ;;  %v2811_v4 = vrot.slane %v2809_v17, 1 }
 0x144   : > { %v3239_v13 = vsel %vm9796_vm5, %v7927_v46, 0  ;;  %v2763_v5 = vsel %vm9681_vm6, %v7927_v46, 0  ;;  %v3279_v31 = vor.u32 %v3277_v38, %v8196_v41  ;;  %v8217_v18 = vrot.slane %v3282_v57, 7  ;;  %6679 = vmatmul.mubr.msk.bf16.gmra.mrb[32].mxu1 %vm408_vm1, %v1834_v14 }
 0x145   : > { %v2813_v26 = vshrl.u32 %v2762_v10, 16  ;;  %v2817_v0 = vshll.u32 %v2763_v5, 16  ;;  %vm2750_vm7 = vcmp.ne.s16.totalorder %v9797_v11, 0  ;;  %v1850_v12 = vsel %vm1718_vm11, %v8119_v40, %v1849_v55  ;;  %6682 = vmatprep.mubr.msk.bf16.mxu1 %vm408_vm1, %v1842_v49 }
 0x146   : > { %v2793_v25 = vshll.u32 %v8193_v28, 16  ;;  %v3290_v30 = vshrl.u32 %v3239_v13, 16  ;;  %vm9798_vm5 = vsmask.f32 7424  ;;  %v3285_v17 = vshll.u32 %v3238_v33, 16 }
 0x147   : > { %v8224_v39 = vsel %vm9798_vm5, %v2807_v43, %v2811_v4  ;;  %v2815_v15 = vor.u32 %v2813_v26, %v2811_v4  ;;  %v2819_v46 = vrot.slane %v2817_v0, 1  ;;  %v2764_v57 = vsel %vm9683_vm4, %v7941_v22, 0  ;;  %vm9801_vm4 = vmmov %vm9798_vm5 }
 0x148   : > { %v2787_v10 = vrot.slane %v2785_v19, 1  ;;  %vm9799_vm6 = vcmp.ne.s16.totalorder %v7488_v45, 0  ;;  %v2821_v55 = vshrl.u32 %v2763_v5, 16  ;;  %v2825_v38 = vshll.u32 %v2764_v57, 16 }
 0x149   : > { %v3240_v40 = vsel %vm9799_vm6, %v7941_v22, 0  ;;  %vm9688_vm12 = vcmp.ne.s16.totalorder %v8136_v1, 0  ;;  %v3272_v4 = vsel %vm1718_vm11, %v8145_v34, %v3271_v29  ;;  %v3280_v43 = vsel %vm1718_vm11, %v3268_v56, %v3279_v31  ;;  %v9800_v31 = vld [vmem:[#allocation19_spill] sm:$0xff] }
 0x14a   : > { %v3287_v33 = vor.u32 %v3285_v17, %v8217_v18  ;;  %v8240_v14 = vsel %vm9798_vm5, %v2815_v15, %v2819_v46  ;;  %6757 = vmatmul.mubr.msk.bf16.vlgmr.msra.gmra.mrb[56].mxu0 %vm408_vm1, %v3272_v4  ;;  %v8243_v19 = vrot.slane %v3290_v30, 7  ;;  %v2823_v22 = vor.u32 %v2821_v55, %v2819_v46 }
 0x14b   : > { %v2827_v5 = vrot.slane %v2825_v38, 1  ;;  %v2765_v49 = vsel %vm2748_vm15, %v7981_v50, 0  ;;  %6760 = vmatprep.mubr.msk.bf16.mxu0 %vm408_vm1, %v3280_v43  ;;  %v3298_v34 = vshrl.u32 %v3240_v40, 16  ;;  %v3241_v56 = vsel %vm9685_vm14, %v7981_v50, 0 }
 0x14c   : > { %v2829_v29 = vshrl.u32 %v2764_v57, 16  ;;  %v2833_v15 = vshll.u32 %v2765_v49, 16  ;;  %vm2752_vm6 = vcmp.ne.s16.totalorder %v8140_v7, 0  ;;  %v2788_v26 = vsel %vm9798_vm5, %v9800_v31, %v2787_v10  ;;  %6683 = vmatmul.mubr.msk.bf16.gmra.mrb[36].mxu1 %vm408_vm1, %v1850_v12 }
 0x14d   : > { %v2795_v0 = vrot.slane %v2793_v25, 1  ;;  %v3293_v30 = vshll.u32 %v3239_v13, 16  ;;  %v8256_v17 = vsel %vm9801_vm4, %v2823_v22, %v2827_v5  ;;  %v2791_v46 = vor.u32 %v2789_v2, %v2787_v10  ;;  %6722 = vmatprep.mubr.msk.bf16.mxu1 %vm408_vm1, %v2788_v26 }
 0x14e   : > { %v2831_v55 = vor.u32 %v2829_v29, %v2827_v5  ;;  %v2835_v38 = vrot.slane %v2833_v15, 1  ;;  %v2766_v4 = vsel %vm2749_vm10, %v7990_v54, 0  ;;  %v3306_v57 = vshrl.u32 %v3241_v56, 16 }
 0x14f   : > { %v3295_v50 = vor.u32 %v3293_v30, %v8243_v19  ;;  %v2837_v43 = vshrl.u32 %v2765_v49, 16  ;;  %v2841_v51 = vshll.u32 %v2766_v4, 16  ;;  %vm2753_vm14 = vcmp.ne.s16.totalorder %v8155_v3, 0 }
 0x150   : > { %v3288_v13 = vsel %vm1718_vm11, %v8196_v41, %v3287_v33  ;;  %v2797_v25 = vshrl.u32 %v8193_v28, 16  ;;  %v3300_v22 = vrot.slane %v3298_v34, 7  ;;  %v8267_v2 = vsel %vm9801_vm4, %v2831_v55, %v2835_v38 }
 0x151   : > { %v3242_v10 = vsel %vm9687_vm3, %v7990_v54, 0  ;;  %v2839_v5 = vor.u32 %v2837_v43, %v2835_v38  ;;  %v2843_v49 = vrot.slane %v2841_v51, 1  ;;  %v2767_v29 = vsel %vm2750_vm7, %v8018_v61, 0  ;;  %vm9803_vm3 = vmmov %vm9801_vm4 }
 0x152   : > { %v3301_v41 = vshll.u32 %v3240_v40, 16  ;;  %v3243_v28 = vsel %vm9686_vm8, %v8018_v61, 0  ;;  %v2845_v33 = vshrl.u32 %v2766_v4, 16  ;;  %v2849_v34 = vshll.u32 %v2767_v29, 16  ;;  %6761 = vmatmul.mubr.msk.bf16.gmra.mrb[60].mxu0 %vm408_vm1, %v3288_v13  ;;  %vm9802_vm8 = vmmov %vm9801_vm4 }
 0x153   : > { %vm2754_vm5 = vcmp.ne.s16.totalorder %v8160_v32, 0  ;;  %v3296_v51 = vsel %vm1718_vm11, %v8217_v18, %v3295_v50  ;;  %v3308_v54 = vrot.slane %v3306_v57, 7  ;;  %v3309_v12 = vshll.u32 %v3241_v56, 16 }
 0x154   : > { %v8285_v15 = vsel %vm9801_vm4, %v2839_v5, %v2843_v49  ;;  %6764 = vmatprep.mubr.msk.bf16.mxu0 %vm408_vm1, %v3296_v51  ;;  %v3314_v40 = vshrl.u32 %v3242_v10, 16  ;;  %v2847_v31 = vor.u32 %v2845_v33, %v2843_v49  ;;  %v2851_v26 = vrot.slane %v2849_v34, 1 }
 0x155   : > { %v2768_v61 = vsel %vm9688_vm12, %v8023_v62, 0  ;;  %v3303_v30 = vor.u32 %v3301_v41, %v3300_v22  ;;  %v3322_v55 = vshrl.u32 %v3243_v28, 16  ;;  %v2853_v38 = vshrl.u32 %v2767_v29, 16  ;;  %vm9804_vm12 = vmmov %vm9803_vm3 }
 0x156   : > { %v2857_v4 = vshll.u32 %v2768_v61, 16  ;;  %v2796_v18 = vsel %vm9802_vm8, %v2791_v46, %v2795_v0  ;;  %v2799_v50 = vor.u32 %v2797_v25, %v2795_v0  ;;  %v8293_v56 = vsel %vm9803_vm3, %v2847_v31, %v2851_v26  ;;  %v8304_v0 = vld [vmem:[%s9622_s4 + $0xc] sm:$0x3]  ;;  %vm9805_vm8 = vmmov %vm9803_vm3 }
 0x157   : > { %vm2755_vm4 = vcmp.ne.s16.totalorder %v8173_v24, 0  ;;  %v3311_v57 = vor.u32 %v3309_v12, %v3308_v54  ;;  %v2855_v43 = vor.u32 %v2853_v38, %v2851_v26  ;;  %v2769_v5 = vsel %vm2752_vm6, %v8081_v44, 0  ;;  %6723 = vmatmul.mubr.msk.bf16.vlgmr.msra.gmra.mrb[40].mxu1 %vm408_vm1, %v2796_v18 }
 0x158   : > { %v2859_v13 = vrot.slane %v2857_v4, 1  ;;  %v2804_v49 = vsel %vm9804_vm12, %v2799_v50, %v8198_v47  ;;  %v3316_v29 = vrot.slane %v3314_v40, 7  ;;  %v2861_v41 = vshrl.u32 %v2768_v61, 16  ;;  %v9806_v47 = vld [vmem:[#allocation26_spill] sm:$0xff]  ;;  %vm9808_vm12 = vmmov %vm9805_vm8 }
 0x159   : > { %v2865_v33 = vshll.u32 %v2769_v5, 16  ;;  %v3304_v46 = vsel %vm1718_vm11, %v8243_v19, %v3303_v30  ;;  %v3317_v25 = vshll.u32 %v3242_v10, 16  ;;  %v8309_v34 = vrot.slane %v3322_v55, 7  ;;  %6789 = vmatpush3.bf16.msra.mxu1 %v9806_v47  ;;  %6726 = vmatprep.mubr.msk.bf16.mxu1 %vm408_vm1, %v2804_v49 }
 0x15a   : > { %v8312_v51 = vsel %vm9805_vm8, %v2855_v43, %v2859_v13  ;;  %v3244_v12 = vsel %vm1693_vm13, %v8023_v62, 0  ;;  %v2863_v40 = vor.u32 %v2861_v41, %v2859_v13  ;;  %v2770_v19 = vsel %vm2753_vm14, %v8072_v6, 0  ;;  %6765 = vmatmul.mubr.msk.bf16.gmra.mrb[64].mxu0 %vm408_vm1, %v3304_v46 }
 0x15b   : > { %v2867_v31 = vrot.slane %v2865_v33, 1  ;;  %v3312_v10 = vsel %vm1718_vm11, %v3300_v22, %v3311_v57  ;;  %v3245_v26 = vsel %vm9691_vm0, %v8081_v44, 0  ;;  %v2869_v61 = vshrl.u32 %v2769_v5, 16 }
 0x15c   : > { %v2873_v30 = vshll.u32 %v2770_v19, 16  ;;  %vm9807_vm3 = vcmask 1041408   ;;  %6768 = vmatprep.mubr.msk.bf16.mxu0 %vm408_vm1, %v3312_v10  ;;  %v3319_v62 = vor.u32 %v3317_v25, %v3316_v29  ;;  %v3325_v55 = vshll.u32 %v3243_v28, 16 }
 0x15d   : > { %6996 = vmatprep.subr.msk.bf16.mxu1 %vm9807_vm3, %v8304_v0  ;;  %v8331_v38 = vsel %vm9808_vm12, %v2863_v40, %v2867_v31  ;;  %v8336_v22 = vsel %vm1718_vm11, %v8114_v37, %v8163_v27  ;;  %v3330_v4 = vshrl.u32 %v3244_v12, 16  ;;  %v2871_v18 = vor.u32 %v2869_v61, %v2867_v31  ;;  %vm9809_vm12 = vmmov %vm9805_vm8 }
 0x15e   : > { %v2875_v44 = vrot.slane %v2873_v30, 1  ;;  %v2771_v50 = vsel %vm2754_vm5, %v8040_v16, 0  ;;  %v3327_v57 = vor.u32 %v3325_v55, %v8309_v34  ;;  %v3338_v43 = vshrl.u32 %v3245_v26, 16 }
 0x15f   : > { %v2877_v13 = vshrl.u32 %v2770_v19, 16  ;;  %v2881_v28 = vshll.u32 %v2771_v50, 16  ;;  %v2772_v37 = vsel %vm2755_vm4, %v8052_v53, 0  ;;  %vm2756_vm3 = vcmp.ne.s16.totalorder %v8336_v22, 0  ;;  %6727 = vmatmul.mubr.msk.bf16.gmra.mrb[44].mxu1 %vm408_vm1, %v8224_v39 }
 0x160   : > { %v8343_v5 = vsel %vm9805_vm8, %v2871_v18, %v2875_v44  ;;  %v3320_v27 = vsel %vm1718_vm11, %v3308_v54, %v3319_v62  ;;  %v2885_v33 = vshrl.u32 %v2771_v50, 16  ;;  %v2889_v46 = vshll.u32 %v2772_v37, 16  ;;  %6730 = vmatprep.mubr.msk.bf16.mxu1 %vm408_vm1, %v8240_v14 }
 0x161   : > { %v2879_v49 = vor.u32 %v2877_v13, %v2875_v44  ;;  %v2883_v41 = vrot.slane %v2881_v28, 1  ;;  %v3328_v25 = vsel %vm1718_vm11, %v3316_v29, %v3327_v57  ;;  %v3332_v47 = vrot.slane %v3330_v4, 7  ;;  %v9810_v29 = vld [vmem:[#allocation16_spill] sm:$0xff] }
 0x162   : > { %v3340_v40 = vrot.slane %v3338_v43, 7  ;;  %6769 = vmatmul.mubr.msk.bf16.gmra.mrb[68].mxu0 %vm408_vm1, %v3320_v27  ;;  %v3246_v39 = vsel %vm9689_vm2, %v8072_v6, 0  ;;  %v2891_v54 = vrot.slane %v2889_v46, 1  ;;  %v8365_v10 = vsel %vm2756_vm3, %v8106_v58, 0  ;;  %vm9814_vm2 = vmmov %vm9809_vm12 }
 0x163   : > { %v8356_v31 = vsel %vm9809_vm12, %v2879_v49, %v2883_v41  ;;  %v2887_v19 = vor.u32 %v2885_v33, %v2883_v41  ;;  %6772 = vmatprep.mubr.msk.bf16.mxu0 %vm408_vm1, %v3328_v25  ;;  %v3333_v14 = vshll.u32 %v3244_v12, 16  ;;  %vm9811_vm8 = vcmp.ne.s16.totalorder %v9810_v29, 0  ;;  %v8380_v12 = vld [vmem:[%s9622_s4 + $0xe] sm:$0x3]  ;;  %v9816_v33 = vld [vmem:[#allocation17_spill] sm:$0xff]  ;;  %v9818_v25 = vld [vmem:[#allocation18_spill] sm:$0xff] }
 0x164   : > { %v3247_v61 = vsel %vm9811_vm8, %v8040_v16, 0  ;;  %v2893_v30 = vshrl.u32 %v2772_v37, 16  ;;  %v2897_v62 = vshll.u32 %v8365_v10, 16  ;;  %v3341_v55 = vshll.u32 %v3245_v26, 16  ;;  %v9812_v16 = vld [vmem:[#allocation33_spill] sm:$0xff] }
 0x165   : > { %v8373_v6 = vsel %vm9809_vm12, %v2887_v19, %v2891_v54  ;;  %v3335_v4 = vor.u32 %v3333_v14, %v3332_v47  ;;  %v3346_v18 = vshrl.u32 %v3246_v39, 16  ;;  %v3354_v43 = vshrl.u32 %v3247_v61, 16 }
 0x166   : > { %v2895_v44 = vor.u32 %v2893_v30, %v2891_v54  ;;  %v8375_v50 = vrot.slane %v2897_v62, 1  ;;  %v3343_v57 = vor.u32 %v3341_v55, %v3340_v40  ;;  %vm9813_vm8 = vcmask 1041408   ;;  %v8405_v30 = vld [vmem:[#allocation2 + $0x88] sm:$0xff] }
 0x167   : > { %v4236_v13 = vsel %vm9813_vm8, %v9812_v16, 0  ;;  %6731 = vmatmul.mubr.msk.bf16.gmra.mrb[48].mxu1 %vm408_vm1, %v8256_v17  ;;  %vm9815_vm12 = vmmov %vm9813_vm8  ;;  %v3336_v28 = vsel %vm1718_vm11, %v8309_v34, %v3335_v4  ;;  %v3348_v49 = vrot.slane %v3346_v18, 7  ;;  %v3356_v37 = vrot.slane %v3354_v43, 7  ;;  %v9820_v55 = vld [vmem:[#allocation20_spill] sm:$0xff]  ;;  %v8423_v43 = vld [vmem:[#allocation2 + $0x20] sm:$0xff] }
 0x168   : > { %v8386_v26 = vsel %vm9814_vm2, %v2895_v44, %v8375_v50  ;;  %6823 = vmatpush3.bf16.msra.mxu0 %v4236_v13  ;;  %6734 = vmatprep.mubr.msk.bf16.mxu1 %vm408_vm1, %v8267_v2  ;;  %v3344_v41 = vsel %vm1718_vm11, %v3332_v47, %v3343_v57  ;;  %v3357_v27 = vshll.u32 %v3247_v61, 16  ;;  %vm9817_vm2 = vcmp.ne.s16.totalorder %v9816_v33, 0 }
 0x169   : > { %6997 = vmatprep.subr.msk.bf16.mxu0 %vm9815_vm12, %v8380_v12  ;;  %v3248_v17 = vsel %vm9817_vm2, %v8052_v53, 0  ;;  %v3349_v46 = vshll.u32 %v3246_v39, 16  ;;  %vm9819_vm8 = vcmp.ne.s16.totalorder %v9818_v25, 0  ;;  %vm9821_vm12 = vcmp.ne.s16.totalorder %v9820_v55, 0 }
 0x16a   : > { %6773 = vmatmul.mubr.msk.bf16.gmra.mrb[72].mxu0 %vm408_vm1, %v3336_v28  ;;  %v3249_v2 = vsel %vm9819_vm8, %v8106_v58, 0  ;;  %v3362_v34 = vshrl.u32 %v3248_v17, 16  ;;  %v3359_v54 = vor.u32 %v3357_v27, %v3356_v37  ;;  %v3365_v39 = vshll.u32 %v3248_v17, 16 }
 0x16b   : > { %6776 = vmatprep.mubr.msk.bf16.mxu0 %vm408_vm1, %v3344_v41  ;;  %v3351_v19 = vor.u32 %v3349_v46, %v3348_v49  ;;  %v3370_v14 = vshrl.u32 %v3249_v2, 16  ;;  %v3373_v62 = vshll.u32 %v3249_v2, 16  ;;  %v3250_v4 = vsel %vm9821_vm12, %v8405_v30, 0 }
 0x16c   : > { %v3364_v47 = vrot.slane %v3362_v34, 7  ;;  %v3360_v58 = vsel %vm1718_vm11, %v3348_v49, %v3359_v54  ;;  %v3381_v28 = vshll.u32 %v3250_v4, 16  ;;  %v4037_v49 = vsel %vm9690_vm9, %v8169_v23, 0  ;;  %v8441_v54 = vld [vmem:[#allocation2 + $0x30] sm:$0xff] }
 0x16d   : > { %v3352_v53 = vsel %vm1718_vm11, %v3340_v40, %v3351_v19  ;;  %v3372_v61 = vrot.slane %v3370_v14, 7  ;;  %v3378_v40 = vshrl.u32 %v3250_v4, 16  ;;  %vm9824_vm8 = vcmp.ne.s16.totalorder %v7691_v42, 0  ;;  %v8437_v19 = vld [vmem:[#allocation2 + $0x28] sm:$0xff]  ;;  %v9829_v4 = vld [vmem:[#allocation22_spill] sm:$0xff] }
 0x16e   : > { %v3367_v18 = vor.u32 %v3365_v39, %v3364_v47  ;;  %v4063_v17 = vshll.u32 %v4037_v49, 16  ;;  %v9826_v39 = vld [vmem:[#allocation21_spill] sm:$0xff]  ;;  %vm9830_vm9 = vcmp.ne.s16.totalorder %v9829_v4, 0 }
 0x16f   : > { %6735 = vmatmul.mubr.msk.bf16.gmra.mrb[52].mxu1 %vm408_vm1, %v8285_v15  ;;  %v9822_v15 = vld [vmem:[#allocation14_spill] sm:$0xff]  ;;  %v3375_v44 = vor.u32 %v3373_v62, %v3372_v61  ;;  %v3380_v13 = vrot.slane %v3378_v40, 7  ;;  %v4067_v40 = vshrl.u32 %v4037_v49, 16 }
 0x170   : > { %6738 = vmatprep.mubr.msk.bf16.mxu1 %vm408_vm1, %v8293_v56  ;;  %vm9823_vm2 = vcmp.ne.s16.totalorder %v9822_v15, 0  ;;  %v3368_v16 = vsel %vm1718_vm11, %v3356_v37, %v3367_v18  ;;  %v4065_v34 = vrot.slane %v4063_v17, 1 }
 0x171   : > { %v4036_v56 = vsel %vm9823_vm2, %v8167_v35, 0  ;;  %v3376_v41 = vsel %vm1718_vm11, %v3364_v47, %v3375_v44  ;;  %v3383_v37 = vor.u32 %v3381_v28, %v3380_v13  ;;  %v9825_v47 = vld [vmem:[#allocation32_spill] sm:$0xff]  ;;  %vm9827_vm2 = vcmp.ne.s16.totalorder %v9826_v39, 0 }
 0x172   : > { %6777 = vmatmul.mubr.msk.bf16.gmra.mrb[76].mxu0 %vm408_vm1, %v3352_v53  ;;  %v4058_v57 = vshll.u32 %v4036_v56, 16  ;;  %v2437_v53 = vld [vmem:[#allocation2 + $0x88] sm:$0x1]  ;;  %vm2757_vm12 = vcmp.ne.s16.totalorder %v9825_v47, 0  ;;  %v4069_v13 = vor.u32 %v4067_v40, %v4065_v34  ;;  %v2901_v28 = vshrl.u32 %v8365_v10, 16 }
 0x173   : > { %6780 = vmatprep.mubr.msk.bf16.mxu0 %vm408_vm1, %v3360_v58  ;;  %v3384_v14 = vsel %vm1718_vm11, %v3372_v61, %v3383_v37  ;;  %v4039_v58 = vsel %vm9827_vm2, %v8437_v19, 0  ;;  %v2774_v61 = vsel %vm2757_vm12, %v2437_v53, 0 }
 0x174   : > { %v4060_v27 = vrot.slane %v4058_v57, 1  ;;  %v4079_v18 = vshll.u32 %v4039_v58, 16  ;;  %v2903_v37 = vor.u32 %v2901_v28, %v8375_v50 }
 0x177   : > { %6739 = vmatmul.mubr.msk.bf16.gmra.mrb[56].mxu1 %vm408_vm1, %v8312_v51  ;;  %v4038_v51 = vsel %vm9824_vm8, %v8423_v43, 0  ;;  %vm9828_vm8 = vsmask.f32 7424 }
 0x178   : > { %6742 = vmatprep.mubr.msk.bf16.mxu1 %vm408_vm1, %v8331_v38  ;;  %v4056_v38 = vshrl.u32 %v4036_v56, 16  ;;  %v4071_v2 = vshll.u32 %v4038_v51, 16  ;;  %v4075_v56 = vshrl.u32 %v4038_v51, 16  ;;  %vm9832_vm2 = vmmov %vm9828_vm8 }
 0x179   : > { %vm9834_vm0 = vmmov %vm9832_vm2 }
 0x17a   : > { %6781 = vmatmul.mubr.msk.bf16.gmra.mrb[80].mxu0 %vm408_vm1, %v3368_v16  ;;  %v4061_v46 = vor.u32 %v4060_v27, %v4056_v38  ;;  %v8458_v16 = vld [vmem:[#allocation2 + $0x38] sm:$0xff]  ;;  %v4081_v27 = vrot.slane %v4079_v18, 1  ;;  %v8463_v38 = vld [vmem:[#allocation2 + $0x40] sm:$0xff] }
 0x17b   : > { %6784 = vmatprep.mubr.msk.bf16.mxu0 %vm408_vm1, %v3376_v41  ;;  %v2905_v41 = vshll.u32 %v2774_v61, 16 }
 0x17c   : > { %v4066_v62 = vsel %vm9828_vm8, %v4061_v46, %v4065_v34  ;;  %vm9833_vm8 = vcmp.ne.s16.totalorder %v9785_v63, 0  ;;  %v4083_v34 = vshrl.u32 %v4039_v58, 16 }
 0x17d   : > { %v4041_v51 = vsel %vm9833_vm8, %v8458_v16, 0  ;;  %v2907_v46 = vrot.slane %v2905_v41, 1  ;;  %vm9837_vm8 = vmmov %vm9834_vm0 }
 0x17e   : > { %v4085_v61 = vor.u32 %v4083_v34, %v4081_v27 }
 0x17f   : > { %6743 = vmatmul.mubr.msk.bf16.gmra.mrb[60].mxu1 %vm408_vm1, %v8343_v5  ;;  %v4073_v5 = vrot.slane %v4071_v2, 1  ;;  %v4095_v2 = vshll.u32 %v4041_v51, 16 }
 0x180   : > { %6746 = vmatprep.mubr.msk.bf16.mxu1 %vm408_vm1, %v8356_v31  ;;  %v4040_v31 = vsel %vm9830_vm9, %v8441_v54, 0  ;;  %vm9831_vm9 = vcmask 1041408  }
 0x181   : > { %v4077_v44 = vor.u32 %v4075_v56, %v4073_v5  ;;  %v4087_v57 = vshll.u32 %v4040_v31, 16  ;;  %v5038_v17 = vsel %vm9831_vm9, %v8380_v12, 0  ;;  %v4074_v49 = vsel %vm9832_vm2, %v4069_v13, %v4073_v5  ;;  %vm9836_vm2 = vmmov %vm9834_vm0  ;;  %v8484_v56 = vld [vmem:[#allocation2 + $0x50] sm:$0xff] }
 0x182   : > { %6785 = vmatmul.mubr.msk.bf16.gmra.mrb[84].mxu0 %vm408_vm1, %v3384_v14  ;;  %vm9835_vm9 = vcmp.ne.s16.totalorder %v9791_v8, 0  ;;  %v2908_v5 = vsel %vm9836_vm2, %v2903_v37, %v2907_v46  ;;  %v4097_v50 = vrot.slane %v4095_v2, 1  ;;  %v8509_v37 = vld [vmem:[#allocation2 + $0x60] sm:$0xff]  ;;  %vm9839_vm2 = vmmov %vm9834_vm0 }
 0x183   : > { %6824 = vmatprep.mubr.msk.bf16.mxu0 %vm408_vm1, %v4066_v62  ;;  %v4082_v10 = vsel %vm9834_vm0, %v4077_v44, %v4081_v27  ;;  %v4042_v12 = vsel %vm9835_vm9, %v8463_v38, 0  ;;  %v8480_v62 = vld [vmem:[#allocation2 + $0x48] sm:$0xff]  ;;  %v4044_v44 = vsel %vm2749_vm10, %v8484_v56, 0  ;;  %vm9838_vm9 = vcmask 1041408  }
 0x184   : > { %v4103_v53 = vshll.u32 %v4042_v12, 16  ;;  %v4043_v58 = vsel %vm2748_vm15, %v8480_v62, 0  ;;  %v4712_v28 = vsel %vm9838_vm9, %v8304_v0, 0  ;;  %v4119_v27 = vshll.u32 %v4044_v44, 16 }
 0x185   : > { %v4111_v13 = vshll.u32 %v4043_v58, 16  ;;  %v4115_v34 = vshrl.u32 %v4043_v58, 16 }
 0x186   : > { %v4105_v40 = vrot.slane %v4103_v53, 1 }
 0x187   : > { %6747 = vmatmul.mubr.msk.bf16.gmra.mrb[64].mxu1 %vm408_vm1, %v8373_v6  ;;  %v4089_v6 = vrot.slane %v4087_v57, 1  ;;  %v4107_v57 = vshrl.u32 %v4042_v12, 16  ;;  %v4121_v12 = vrot.slane %v4119_v27, 1 }
 0x188   : > { %6750 = vmatprep.mubr.msk.bf16.mxu1 %vm408_vm1, %v8386_v26  ;;  %v4091_v26 = vshrl.u32 %v4040_v31, 16 }
 0x189   : > { %v4090_v18 = vsel %vm9834_vm0, %v4085_v61, %v4089_v6  ;;  %v4109_v41 = vor.u32 %v4107_v57, %v4105_v40 }
 0x18a   : > { %6825 = vmatmul.mubr.msk.bf16.vlgmr.msra.gmra.mrb[88].mxu0 %vm408_vm1, %v4074_v49  ;;  %v4093_v14 = vor.u32 %v4091_v26, %v4089_v6  ;;  %v4113_v6 = vrot.slane %v4111_v13, 1  ;;  %v4123_v26 = vshrl.u32 %v4044_v44, 16  ;;  %v8537_v44 = vld [vmem:[#allocation2 + $0x70] sm:$0xff] }
 0x18b   : > { %6828 = vmatprep.mubr.msk.bf16.mxu0 %vm408_vm1, %v4082_v10  ;;  %6891 = vmatpush3.bf16.msra.mxu0 %v5038_v17  ;;  %v8500_v17 = vld [vmem:[#allocation2 + $0x58] sm:$0xff]  ;;  %v8505_v10 = vld [vmem:[%s9622_s4 + $0x10] sm:$0x3]  ;;  %v4048_v57 = vsel %vm2753_vm14, %v8537_v44, 0 }
 0x18c   : > { %v4098_v31 = vsel %vm9837_vm8, %v4093_v14, %v4097_v50  ;;  %v4114_v46 = vsel %vm9834_vm0, %v4109_v41, %v4113_v6  ;;  %vm9840_vm8 = vmmov %vm9838_vm9  ;;  %vm9841_vm9 = vcmp.ne.s16.totalorder %v8136_v1, 0  ;;  %v4125_v14 = vor.u32 %v4123_v26, %v4121_v12 }
 0x18d   : > { %v4117_v61 = vor.u32 %v4115_v34, %v4113_v6  ;;  %v4151_v27 = vshll.u32 %v4048_v57, 16  ;;  %v4155_v26 = vshrl.u32 %v4048_v57, 16  ;;  %v4051_v57 = vsel %vm2756_vm3, %v8405_v30, 0 }
 0x18f   : > { %6751 = vmatmul.mubr.msk.bf16.gmra.mrb[68].mxu1 %vm408_vm1, %v2908_v5  ;;  %v8525_v5 = vld [vmem:[#allocation2 + $0x68] sm:$0xff] }
 0x190   : > { %6790 = vmatprep.mubr.msk.bf16.mxu1 %vm408_vm1, %v8167_v35  ;;  %v4099_v35 = vshrl.u32 %v4041_v51, 16  ;;  %v4045_v51 = vsel %vm2750_vm7, %v8500_v17, 0 }
 0x191   : > { %v4127_v2 = vshll.u32 %v4045_v51, 16 }
 0x192   : > { %6829 = vmatmul.mubr.msk.bf16.gmra.mrb[92].mxu0 %vm408_vm1, %v4090_v18  ;;  %v4101_v49 = vor.u32 %v4099_v35, %v4097_v50 }
 0x193   : > { %6832 = vmatprep.mubr.msk.bf16.mxu0 %vm408_vm1, %v4098_v31  ;;  %v4129_v50 = vrot.slane %v4127_v2, 1  ;;  %v4047_v31 = vsel %vm2752_vm6, %v8525_v5, 0 }
 0x194   : > { %v4106_v0 = vsel %vm9839_vm2, %v4101_v49, %v4105_v40  ;;  %vm9842_vm2 = vmmov %vm9834_vm0  ;;  %v4143_v35 = vshll.u32 %v4047_v31, 16  ;;  %v8543_v49 = vld [vmem:[#allocation2 + $0x78] sm:$0xff]  ;;  %v4147_v2 = vshrl.u32 %v4047_v31, 16 }
 0x195   : > { %v4122_v18 = vsel %vm9842_vm2, %v4117_v61, %v4121_v12  ;;  %v4130_v58 = vsel %vm9834_vm0, %v4125_v14, %v4129_v50  ;;  %v4049_v12 = vsel %vm2754_vm5, %v8543_v49, 0  ;;  %v8556_v14 = vld [vmem:[#allocation2 + $0x80] sm:$0xff]  ;;  %vm9845_vm2 = vmmov %vm9834_vm0 }
 0x196   : > { %v4159_v34 = vshll.u32 %v4049_v12, 16  ;;  %v4050_v61 = vsel %vm2755_vm4, %v8556_v14, 0  ;;  %v4163_v31 = vshrl.u32 %v4049_v12, 16 }
 0x197   : > { %6791 = vmatmul.mubr.msk.bf16.vlgmr.msra.gmra.mrb[72].mxu1 %vm408_vm1, %v8169_v23  ;;  %v4046_v23 = vsel %vm9841_vm9, %v8509_v37, 0  ;;  %vm9844_vm9 = vmmov %vm9834_vm0 }
 0x198   : > { %6857 = vmatpush3.bf16.msra.mxu1 %v4712_v28  ;;  %6794 = vmatprep.mubr.msk.bf16.mxu1 %vm408_vm1, %v8423_v43  ;;  %v4135_v53 = vshll.u32 %v4046_v23, 16  ;;  %v4139_v13 = vshrl.u32 %v4046_v23, 16  ;;  %v4131_v28 = vshrl.u32 %v4045_v51, 16  ;;  %v4153_v23 = vrot.slane %v4151_v27, 1 }
 0x199   : > { %6998 = vmatprep.subr.msk.bf16.mxu1 %vm9840_vm8, %v8505_v10  ;;  %vm9843_vm8 = vmmov %vm9834_vm0  ;;  %v4175_v27 = vshll.u32 %v4051_v57, 16 }
 0x19a   : > { %6833 = vmatmul.mubr.msk.bf16.gmra.mrb[96].mxu0 %vm408_vm1, %v4106_v0  ;;  %v4137_v40 = vrot.slane %v4135_v53, 1  ;;  %v4133_v6 = vor.u32 %v4131_v28, %v4129_v50  ;;  %v4145_v0 = vrot.slane %v4143_v35, 1  ;;  %v4157_v50 = vor.u32 %v4155_v26, %v4153_v23  ;;  %v4035_v28 = vld [vmem:[#allocation2 + $0x90] sm:$0x1] }
 0x19b   : > { %6836 = vmatprep.mubr.msk.bf16.mxu0 %vm408_vm1, %v4114_v46  ;;  %v4171_v35 = vshrl.u32 %v4050_v61, 16  ;;  %v4177_v12 = vrot.slane %v4175_v27, 1 }
 0x19c   : > { %v4141_v41 = vor.u32 %v4139_v13, %v4137_v40  ;;  %v4138_v46 = vsel %vm9843_vm8, %v4133_v6, %v4137_v40  ;;  %v4149_v53 = vor.u32 %v4147_v2, %v4145_v0  ;;  %vm9846_vm8 = vmmov %vm9834_vm0 }
 0x19e   : > { %v4146_v51 = vsel %vm9844_vm9, %v4141_v41, %v4145_v0  ;;  %v4154_v40 = vsel %vm9845_vm2, %v4149_v53, %v4153_v23  ;;  %v4179_v23 = vshrl.u32 %v4051_v57, 16  ;;  %vm9847_vm9 = vmmov %vm9834_vm0  ;;  %v9851_v57 = vld [vmem:[#allocation7_spill] sm:$0xff] }
 0x19f   : > { %6795 = vmatmul.mubr.msk.bf16.gmra.mrb[76].mxu1 %vm408_vm1, %v8437_v19  ;;  %vm9848_vm2 = vmmov %vm9834_vm0 }
 0x1a0   : > { %6798 = vmatprep.mubr.msk.bf16.mxu1 %vm408_vm1, %v8441_v54 }
 0x1a2   : > { %6837 = vmatmul.mubr.msk.bf16.gmra.mrb[100].mxu0 %vm408_vm1, %v4122_v18  ;;  %v4161_v18 = vrot.slane %v4159_v34, 1  ;;  %v4181_v34 = vor.u32 %v4179_v23, %v4177_v12 }
 0x1a3   : > { %6840 = vmatprep.mubr.msk.bf16.mxu0 %vm408_vm1, %v4130_v58  ;;  %v4167_v58 = vshll.u32 %v4050_v61, 16  ;;  %v8582_v61 = vld [vmem:[#allocation2 + $0x18] sm:$0xff] }
 0x1a4   : > { %v4162_v13 = vsel %vm9834_vm0, %v4157_v50, %v4161_v18  ;;  %v4165_v6 = vor.u32 %v4163_v31, %v4161_v18  ;;  %v9849_v18 = vld [vmem:[#allocation8_spill] sm:$0xff] }
 0x1a5   : > { %v4169_v41 = vrot.slane %v4167_v58, 1  ;;  %vm9850_vm0 = vcmp.ne.s16.totalorder %v9849_v18, 0 }
 0x1a6   : > { %v4513_v58 = vsel %vm9850_vm0, %v8582_v61, 0 }
 0x1a7   : > { %6799 = vmatmul.mubr.msk.bf16.gmra.mrb[80].mxu1 %vm408_vm1, %v8458_v16  ;;  %v4173_v0 = vor.u32 %v4171_v35, %v4169_v41  ;;  %v4536_v31 = vshrl.u32 %v4513_v58, 16 }
 0x1a8   : > { %6802 = vmatprep.mubr.msk.bf16.mxu1 %vm408_vm1, %v8463_v38 }
 0x1a9   : > { %v4178_v2 = vsel %vm9847_vm9, %v4173_v0, %v4177_v12 }
 0x1aa   : > { %6841 = vmatmul.mubr.msk.bf16.gmra.mrb[104].mxu0 %vm408_vm1, %v4138_v46  ;;  %v4052_v46 = vsel %vm2757_vm12, %v4035_v28, 0  ;;  %v4538_v28 = vrot.slane %v4536_v31, 7 }
 0x1ab   : > { %6844 = vmatprep.mubr.msk.bf16.mxu0 %vm408_vm1, %v4146_v51  ;;  %v4170_v51 = vsel %vm9846_vm8, %v4165_v6, %v4169_v41  ;;  %v4183_v26 = vshll.u32 %v4052_v46, 16  ;;  %vm9852_vm8 = vcmp.ne.s16.totalorder %v9851_v57, 0  ;;  %v9853_v41 = vld [vmem:[#allocation9_spill] sm:$0xff]  ;;  %v9855_v6 = vld [vmem:[#allocation10_spill] sm:$0xff]  ;;  %v4539_v46 = vshll.u32 %v4513_v58, 16 }
 0x1ac   : > { %vm9854_vm9 = vcmp.ne.s16.totalorder %v9853_v41, 0 }
 0x1ad   : > { %v4185_v53 = vrot.slane %v4183_v26, 1  ;;  %v4514_v27 = vsel %vm9854_vm9, %v8423_v43, 0  ;;  %v4541_v23 = vor.u32 %v4539_v46, %v4538_v28  ;;  %vm9861_vm9 = vcmask 1041408  }
 0x1ae   : > { %v4544_v12 = vshrl.u32 %v4514_v27, 16  ;;  %v4547_v58 = vshll.u32 %v4514_v27, 16  ;;  %v5514_v46 = vsel %vm9861_vm9, %v8505_v10, 0  ;;  %vm9866_vm9 = vcmp.ne.s16.totalorder %v7512_v60, 0 }
 0x1af   : > { %6803 = vmatmul.mubr.msk.bf16.gmra.mrb[84].mxu1 %vm408_vm1, %v8480_v62  ;;  %v4186_v50 = vsel %vm9848_vm2, %v4181_v34, %v4185_v53  ;;  %vm9856_vm2 = vcmp.ne.s16.totalorder %v9855_v6, 0 }
 0x1b0   : > { %6806 = vmatprep.mubr.msk.bf16.mxu1 %vm408_vm1, %v8484_v56  ;;  %v4515_v0 = vsel %vm9856_vm2, %v8437_v19, 0  ;;  %vm9862_vm2 = vcmp.ne.s16.totalorder %v7488_v45, 0 }
 0x1b1   : > { %v4552_v26 = vshrl.u32 %v4515_v0, 16  ;;  %v4555_v57 = vshll.u32 %v4515_v0, 16  ;;  %v4518_v0 = vsel %vm9862_vm2, %v8463_v38, 0  ;;  %vm9867_vm2 = vcmp.ne.s16.totalorder %v7534_v21, 0 }
 0x1b2   : > { %6845 = vmatmul.mubr.msk.bf16.gmra.mrb[108].mxu0 %vm408_vm1, %v4154_v40  ;;  %v4495_v40 = vld [vmem:[#allocation2 + $0x10] sm:$0x80] }
 0x1b3   : > { %6848 = vmatprep.mubr.msk.bf16.mxu0 %vm408_vm1, %v4162_v13  ;;  %v4512_v13 = vsel %vm9852_vm8, %v4495_v40, 0  ;;  %v4554_v53 = vrot.slane %v4552_v26, 7  ;;  %v9859_v40 = vld [vmem:[#allocation12_spill] sm:$0xff] }
 0x1b4   : > { %v4532_v35 = vshrl.u32 %v4512_v13, 16  ;;  %vm9860_vm8 = vcmp.ne.s16.totalorder %v9859_v40, 0 }
 0x1b5   : > { %v4517_v31 = vsel %vm9860_vm8, %v8458_v16, 0  ;;  %v4557_v41 = vor.u32 %v4555_v57, %v4554_v53  ;;  %vm9865_vm8 = vcmp.ne.s16.totalorder %v7494_v52, 0 }
 0x1b6   : > { %v4568_v6 = vshrl.u32 %v4517_v31, 16 }
 0x1b7   : > { %6807 = vmatmul.mubr.msk.bf16.gmra.mrb[88].mxu1 %vm408_vm1, %v8500_v17 }
 0x1b8   : > { %6810 = vmatprep.mubr.msk.bf16.mxu1 %vm408_vm1, %v8509_v37 }
 0x1ba   : > { %6849 = vmatmul.mubr.msk.bf16.gmra.mrb[112].mxu0 %vm408_vm1, %v4170_v51  ;;  %v4534_v51 = vrot.slane %v4532_v35, 7 }
 0x1bb   : > { %6852 = vmatprep.mubr.msk.bf16.mxu0 %vm408_vm1, %v4178_v2  ;;  %v4546_v2 = vrot.slane %v4544_v12, 7 }
 0x1bc   : > { %v4542_v34 = vsel %vm1718_vm11, %v4534_v51, %v4541_v23  ;;  %v4570_v23 = vrot.slane %v4568_v6, 7 }
 0x1bd   : > { %v4549_v13 = vor.u32 %v4547_v58, %v4546_v2  ;;  %v4558_v51 = vsel %vm1718_vm11, %v4546_v2, %v4557_v41  ;;  %v4576_v2 = vshrl.u32 %v4518_v0, 16 }
 0x1bf   : > { %6811 = vmatmul.mubr.msk.bf16.gmra.mrb[92].mxu1 %vm408_vm1, %v8525_v5  ;;  %v4550_v27 = vsel %vm1718_vm11, %v4538_v28, %v4549_v13  ;;  %v4571_v28 = vshll.u32 %v4517_v31, 16 }
 0x1c0   : > { %6814 = vmatprep.mubr.msk.bf16.mxu1 %vm408_vm1, %v8537_v44 }
 0x1c1   : > { %v4573_v58 = vor.u32 %v4571_v28, %v4570_v23 }
 0x1c2   : > { %6853 = vmatmul.mubr.msk.bf16.gmra.mrb[116].mxu0 %vm408_vm1, %v4186_v50  ;;  %v9857_v50 = vld [vmem:[#allocation11_spill] sm:$0xff] }
 0x1c3   : > { %6892 = vmatprep.mubr.msk.bf16.mxu0 %vm408_vm1, %v8582_v61  ;;  %vm9858_vm0 = vcmp.ne.s16.totalorder %v9857_v50, 0 }
 0x1c4   : > { %v4516_v18 = vsel %vm9858_vm0, %v8441_v54, 0 }
 0x1c5   : > { %v4560_v35 = vshrl.u32 %v4516_v18, 16  ;;  %v4563_v26 = vshll.u32 %v4516_v18, 16 }
 0x1c7   : > { %6815 = vmatmul.mubr.msk.bf16.gmra.mrb[96].mxu1 %vm408_vm1, %v8543_v49  ;;  %v4562_v12 = vrot.slane %v4560_v35, 7  ;;  %v4578_v35 = vrot.slane %v4576_v2, 7 }
 0x1c8   : > { %6818 = vmatprep.mubr.msk.bf16.mxu1 %vm408_vm1, %v8556_v14 }
 0x1c9   : > { %v4565_v50 = vor.u32 %v4563_v26, %v4562_v12  ;;  %v4574_v41 = vsel %vm1718_vm11, %v4562_v12, %v4573_v58 }
 0x1ca   : > { %6893 = vmatmul.mubr.msk.bf16.vlgmr.msra.gmra.mrb[120].mxu0 %vm408_vm1, %v8423_v43 }
 0x1cb   : > { %6896 = vmatprep.mubr.msk.bf16.mxu0 %vm408_vm1, %v8437_v19  ;;  %v4566_v13 = vsel %vm1718_vm11, %v4554_v53, %v4565_v50  ;;  %v4521_v53 = vsel %vm9866_vm9, %v8500_v17, 0  ;;  %vm9871_vm9 = vcmp.ne.s16.totalorder %v9818_v25, 0 }
 0x1cf   : > { %6819 = vmatmul.mubr.msk.bf16.gmra.mrb[100].mxu1 %vm408_vm1, %v8405_v30 }
 0x1d0   : > { %6858 = vmatprep.mubr.msk.bf16.mxu1 %vm408_vm1, %v4542_v34  ;;  %v9863_v34 = vld [vmem:[#allocation13_spill] sm:$0xff] }
 0x1d1   : > { %vm9864_vm0 = vcmp.ne.s16.totalorder %v9863_v34, 0  ;;  %v4600_v34 = vshrl.u32 %v4521_v53, 16 }
 0x1d2   : > { %6897 = vmatmul.mubr.msk.bf16.gmra.mrb[124].mxu0 %vm408_vm1, %v8441_v54  ;;  %v4519_v10 = vsel %vm9864_vm0, %v8480_v62, 0  ;;  %vm9869_vm0 = vcmp.ne.s16.totalorder %v9810_v29, 0 }
 0x1d3   : > { %6900 = vmatprep.mubr.msk.bf16.mxu0 %vm408_vm1, %v8458_v16  ;;  %v4584_v45 = vshrl.u32 %v4519_v10, 16 }
 0x1d5   : > { %v4586_v31 = vrot.slane %v4584_v45, 7 }
 0x1d6   : > { %v6690_v40 = vpop.f32.mrb[24].mxu0 }
 0x1d7   : > { %6859 = vmatmul.mubr.msk.bf16.vlgmr.msra.gmra.mrb[104].mxu1 %vm408_vm1, %v4550_v27  ;;  %v2198_v57 = vpop.f32.mrb[25].mxu0  ;;  %v4587_v27 = vshll.u32 %v4519_v10, 16 }
 0x1d8   : > { %6925 = vmatpush3.bf16.msra.mxu1 %v5514_v46  ;;  %6862 = vmatprep.mubr.msk.bf16.mxu1 %vm408_vm1, %v4558_v51  ;;  %v6691_v18 = vpop.f32.mrb[26].mxu0  ;;  %v4579_v46 = vshll.u32 %v4518_v0, 16 }
 0x1d9   : > { %v8644_v6 = vpop.f32.mrb[27].mxu0  ;;  %v4589_v26 = vor.u32 %v4587_v27, %v4586_v31  ;;  %v4523_v27 = vsel %vm9867_vm2, %v8525_v5, 0  ;;  %vm9872_vm2 = vcmp.ne.s16.totalorder %v9820_v55, 0 }
 0x1da   : > { %6901 = vmatmul.mubr.msk.bf16.gmra.mrb[128].mxu0 %vm408_vm1, %v8463_v38  ;;  %v4581_v51 = vor.u32 %v4579_v46, %v4578_v35 }
 0x1db   : > { %6904 = vmatprep.mubr.msk.bf16.mxu0 %vm408_vm1, %v8480_v62  ;;  %v4520_v62 = vsel %vm9865_vm8, %v8484_v56, 0  ;;  %vm9870_vm8 = vcmp.ne.s16.totalorder %v9816_v33, 0 }
 0x1dc   : > { %v4592_v12 = vshrl.u32 %v4520_v62, 16  ;;  %v4582_v60 = vsel %vm1718_vm11, %v4570_v23, %v4581_v51  ;;  %v4522_v23 = vsel %vm1693_vm13, %v8509_v37, 0  ;;  %v4595_v46 = vshll.u32 %v4520_v62, 16 }
 0x1dd   : > { %vm9868_vm13 = vcmp.ne.s16.totalorder %v7576_v59, 0 }
 0x1de   : > { %v6656_v52 = vpop.f32.mrb[8].mxu1  ;;  %v8657_v28 = vpop.f32.mrb[28].mxu0  ;;  %v4594_v58 = vrot.slane %v4592_v12, 7  ;;  %v4608_v12 = vshrl.u32 %v4522_v23, 16 }
 0x1df   : > { %6863 = vmatmul.mubr.msk.bf16.gmra.mrb[108].mxu1 %vm408_vm1, %v4566_v13  ;;  %2065 = vst.msk [vmem:[#allocation3 + $0x10] sm:$0xff] %vm408_vm1, %v6656_v52  ;;  %v1936_v0 = vpop.f32.mrb[9].mxu1  ;;  %v8660_v50 = vpop.f32.mrb[29].mxu0 }
 0x1e0   : > { %6866 = vmatprep.mubr.msk.bf16.mxu1 %vm408_vm1, %v4574_v41  ;;  %2063 = vst.msk [vmem:[#allocation3] sm:$0xff] %vm408_vm1, %v1936_v0  ;;  %v6657_v10 = vpop.f32.mrb[10].mxu1  ;;  %v8664_v2 = vpop.f32.mrb[30].mxu0  ;;  %v4602_v41 = vrot.slane %v4600_v34, 7  ;;  %v4597_v51 = vor.u32 %v4595_v46, %v4594_v58 }
 0x1e1   : > { %2066 = vst.msk [vmem:[#allocation3 + $0x18] sm:$0xff] %vm408_vm1, %v6657_v10  ;;  %v1939_v45 = vpop.f32.mrb[11].mxu1  ;;  %v8669_v13 = vpop.f32.mrb[31].mxu0 }
 0x1e2   : > { %6905 = vmatmul.mubr.msk.bf16.gmra.mrb[132].mxu0 %vm408_vm1, %v8484_v56  ;;  %2064 = vst.msk [vmem:[#allocation3 + $0x8] sm:$0xff] %vm408_vm1, %v1939_v45  ;;  %v4610_v45 = vrot.slane %v4608_v12, 7  ;;  %v4525_v12 = vsel %vm9869_vm0, %v8543_v49, 0  ;;  %vm9874_vm0 = vcmp.ne.s16.totalorder %v7671_v36, 0 }
 0x1e3   : > { %6908 = vmatprep.mubr.msk.bf16.mxu0 %vm408_vm1, %v8500_v17  ;;  %v4590_v17 = vsel %vm1718_vm11, %v4578_v35, %v4589_v26  ;;  %v4603_v35 = vshll.u32 %v4521_v53, 16  ;;  %v4616_v26 = vshrl.u32 %v4523_v27, 16 }
 0x1e5   : > { %v4605_v20 = vor.u32 %v4603_v35, %v4602_v41 }
 0x1e6   : > { %v2327_v34 = vld [vmem:[#allocation3 + $0x10] sm:$0xff]  ;;  %v8683_v52 = vpop.f32.mrb[32].mxu0 }
 0x1e7   : > { %6867 = vmatmul.mubr.msk.bf16.gmra.mrb[112].mxu1 %vm408_vm1, %v4582_v60  ;;  %v2359_v0 = vadd.f32 %v6690_v40, %v2327_v34  ;;  %v2325_v62 = vld [vmem:[#allocation3] sm:$0xff]  ;;  %v8685_v60 = vpop.f32.mrb[33].mxu0  ;;  %v4606_v35 = vsel %vm1718_vm11, %v4594_v58, %v4605_v20  ;;  %v4619_v20 = vshll.u32 %v4523_v27, 16 }
 0x1e8   : > { %6870 = vmatprep.mubr.msk.bf16.mxu1 %vm408_vm1, %v4590_v17  ;;  %v2357_v21 = vadd.f32 %v2325_v62, %v2198_v57  ;;  %v2328_v10 = vld [vmem:[#allocation3 + $0x18] sm:$0xff]  ;;  %v4598_v17 = vsel %vm1718_vm11, %v4586_v31, %v4597_v51  ;;  %v8688_v53 = vpop.f32.mrb[34].mxu0  ;;  %v8696_v57 = vrot.slane %v4616_v26, 7  ;;  %v4524_v31 = vsel %vm9868_vm13, %v8537_v44, 0 }
 0x1e9   : > { %2391 = vst.msk [vmem:[#allocation3 + $0x10] sm:$0xff] %vm408_vm1, %v2359_v0  ;;  %v2326_v46 = vld [vmem:[#allocation3 + $0x8] sm:$0xff]  ;;  %v8694_v34 = vpop.f32.mrb[35].mxu0  ;;  %v4611_v51 = vshll.u32 %v4522_v23, 16  ;;  %v4624_v23 = vshrl.u32 %v4524_v31, 16  ;;  %v4632_v26 = vshrl.u32 %v4525_v12, 16 }
 0x1ea   : > { %6909 = vmatmul.mubr.msk.bf16.gmra.mrb[136].mxu0 %vm408_vm1, %v8509_v37  ;;  %v6660_v37 = vpop.f32.mrb[12].mxu1  ;;  %2389 = vst.msk [vmem:[#allocation3] sm:$0xff] %vm408_vm1, %v2357_v21  ;;  %v4621_v29 = vor.u32 %v4619_v20, %v8696_v57  ;;  %v8754_v20 = vld [vmem:[#allocation2 + $0x90] sm:$0xff]  ;;  %vm9873_vm13 = vcmp.ne.s16.totalorder %v9822_v15, 0  ;;  %v8789_v15 = vsel %vm9874_vm0, %v8423_v43, 0 }
 0x1eb   : > { %6912 = vmatprep.mubr.msk.bf16.mxu0 %vm408_vm1, %v8525_v5  ;;  %v2360_v5 = vadd.f32 %v6691_v18, %v2328_v10  ;;  %2069 = vst.msk [vmem:[#allocation3 + $0x30] sm:$0xff] %vm408_vm1, %v6660_v37  ;;  %v1952_v40 = vpop.f32.mrb[13].mxu1  ;;  %v2358_v18 = vadd.f32 %v2326_v46, %v8644_v6  ;;  %v4613_v6 = vor.u32 %v4611_v51, %v4610_v45  ;;  %v4626_v10 = vrot.slane %v4624_v23, 7 }
 0x1ec   : > { %2067 = vst.msk [vmem:[#allocation3 + $0x20] sm:$0xff] %vm408_vm1, %v1952_v40  ;;  %v6661_v58 = vpop.f32.mrb[14].mxu1  ;;  %v4635_v37 = vshll.u32 %v4525_v12, 16  ;;  %v8729_v40 = vrot.slane %v4632_v26, 7 }
 0x1ed   : > { %2392 = vst.msk [vmem:[#allocation3 + $0x18] sm:$0xff] %vm408_vm1, %v2360_v5  ;;  %2070 = vst.msk [vmem:[#allocation3 + $0x38] sm:$0xff] %vm408_vm1, %v6661_v58  ;;  %v1955_v59 = vpop.f32.mrb[15].mxu1 }
 0x1ee   : > { %2390 = vst.msk [vmem:[#allocation3 + $0x8] sm:$0xff] %vm408_vm1, %v2358_v18  ;;  %2068 = vst.msk [vmem:[#allocation3 + $0x28] sm:$0xff] %vm408_vm1, %v1955_v59  ;;  %v8717_v0 = vpop.f32.mrb[36].mxu0 }
 0x1ef   : > { %6871 = vmatmul.mubr.msk.bf16.gmra.mrb[116].mxu1 %vm408_vm1, %v4598_v17  ;;  %v8719_v62 = vpop.f32.mrb[37].mxu0  ;;  %v4627_v17 = vshll.u32 %v4524_v31, 16 }
 0x1f0   : > { %6874 = vmatprep.mubr.msk.bf16.mxu1 %vm408_vm1, %v4606_v35  ;;  %v8722_v27 = vpop.f32.mrb[38].mxu0 }
 0x1f1   : > { %v8727_v35 = vpop.f32.mrb[39].mxu0  ;;  %v4629_v51 = vor.u32 %v4627_v17, %v4626_v10 }
 0x1f2   : > { %6913 = vmatmul.mubr.msk.bf16.gmra.mrb[140].mxu0 %vm408_vm1, %v8537_v44  ;;  %v2331_v21 = vld [vmem:[#allocation3 + $0x30] sm:$0xff]  ;;  %v4614_v44 = vsel %vm1718_vm11, %v4602_v41, %v4613_v6  ;;  %v4526_v41 = vsel %vm9870_vm8, %v8556_v14, 0  ;;  %vm9875_vm8 = vcmp.ne.s16.totalorder %v7691_v42, 0 }
 0x1f3   : > { %6916 = vmatprep.mubr.msk.bf16.mxu0 %vm408_vm1, %v8543_v49  ;;  %v2363_v5 = vadd.f32 %v8657_v28, %v2331_v21  ;;  %v2329_v46 = vld [vmem:[#allocation3 + $0x20] sm:$0xff]  ;;  %v4622_v49 = vsel %vm1718_vm11, %v4610_v45, %v4621_v29  ;;  %v4527_v28 = vsel %vm9871_vm9, %v8405_v30, 0  ;;  %v4640_v12 = vshrl.u32 %v4526_v41, 16 }
 0x1f4   : > { %v2361_v18 = vadd.f32 %v2329_v46, %v8660_v50  ;;  %v2332_v58 = vld [vmem:[#allocation3 + $0x38] sm:$0xff]  ;;  %v4648_v59 = vshrl.u32 %v4527_v28, 16  ;;  %v4630_v23 = vsel %vm1718_vm11, %v8696_v57, %v4629_v51  ;;  %v4643_v21 = vshll.u32 %v4526_v41, 16 }
 0x1f5   : > { %2395 = vst.msk [vmem:[#allocation3 + $0x30] sm:$0xff] %vm408_vm1, %v2363_v5  ;;  %v2364_v45 = vadd.f32 %v8664_v2, %v2332_v58  ;;  %v2330_v31 = vld [vmem:[#allocation3 + $0x28] sm:$0xff]  ;;  %v4637_v2 = vor.u32 %v4635_v37, %v8729_v40  ;;  %v4642_v26 = vrot.slane %v4640_v12, 7  ;;  %v4651_v5 = vshll.u32 %v4527_v28, 16 }
 0x1f6   : > { %2393 = vst.msk [vmem:[#allocation3 + $0x20] sm:$0xff] %vm408_vm1, %v2361_v18  ;;  %v2362_v33 = vadd.f32 %v2330_v31, %v8669_v13  ;;  %v6664_v50 = vpop.f32.mrb[16].mxu1  ;;  %v8768_v37 = vrot.slane %v4648_v59, 7  ;;  %v4528_v46 = vsel %vm9872_vm2, %v8754_v20, 0  ;;  %vm9876_vm9 = vcmp.ne.s16.totalorder %v9826_v39, 0 }
 0x1f7   : > { %6875 = vmatmul.mubr.msk.bf16.gmra.mrb[120].mxu1 %vm408_vm1, %v4614_v44  ;;  %2396 = vst.msk [vmem:[#allocation3 + $0x38] sm:$0xff] %vm408_vm1, %v2364_v45  ;;  %2073 = vst.msk [vmem:[#allocation3 + $0x50] sm:$0xff] %vm408_vm1, %v6664_v50  ;;  %v1968_v25 = vpop.f32.mrb[17].mxu1  ;;  %v8752_v13 = vpop.f32.mrb[40].mxu0  ;;  %v4638_v44 = vsel %vm1718_vm11, %v4626_v10, %v4637_v2  ;;  %v4645_v41 = vor.u32 %v4643_v21, %v4642_v26  ;;  %v4656_v18 = vshrl.u32 %v4528_v46, 16  ;;  %v5314_v10 = vsel %vm9873_vm13, %v8582_v61, 0 }
 0x1f8   : > { %6878 = vmatprep.mubr.msk.bf16.mxu1 %vm408_vm1, %v4622_v49  ;;  %2394 = vst.msk [vmem:[#allocation3 + $0x28] sm:$0xff] %vm408_vm1, %v2362_v33  ;;  %2071 = vst.msk [vmem:[#allocation3 + $0x40] sm:$0xff] %vm408_vm1, %v1968_v25  ;;  %v8757_v6 = vpop.f32.mrb[41].mxu0  ;;  %v4653_v45 = vor.u32 %v4651_v5, %v8768_v37  ;;  %v5336_v25 = vshll.u32 %v5314_v10, 16  ;;  %v5316_v5 = vsel %vm9875_vm8, %v8437_v19, 0  ;;  %v8823_v42 = vsel %vm9876_vm9, %v8441_v54, 0 }
 0x1f9   : > { %v8762_v29 = vpop.f32.mrb[42].mxu0  ;;  %v4646_v36 = vsel %vm1718_vm11, %v8729_v40, %v4645_v41  ;;  %v4658_v59 = vrot.slane %v4656_v18, 7  ;;  %vm9877_vm2 = vsmask.f32 7424  ;;  %vm9879_vm13 = vcmp.ne.s16.totalorder %v9785_v63, 0 }
 0x1fa   : > { %6917 = vmatmul.mubr.msk.bf16.gmra.mrb[144].mxu0 %vm408_vm1, %v8556_v14  ;;  %v6665_v14 = vpop.f32.mrb[18].mxu1  ;;  %v8766_v17 = vpop.f32.mrb[43].mxu0  ;;  %vm9880_vm0 = vmmov %vm9877_vm2  ;;  %vm9882_vm9 = vcmp.ne.s16.totalorder %v9791_v8, 0  ;;  %v8891_v8 = vsel %vm2748_vm15, %v8484_v56, 0 }
 0x1fb   : > { %6920 = vmatprep.mubr.msk.bf16.mxu0 %vm408_vm1, %v8405_v30  ;;  %2074 = vst.msk [vmem:[#allocation3 + $0x58] sm:$0xff] %vm408_vm1, %v6665_v14  ;;  %v1971_v30 = vpop.f32.mrb[19].mxu1  ;;  %v4654_v14 = vsel %vm1718_vm11, %v4642_v26, %v4653_v45  ;;  %vm9881_vm8 = vmmov %vm9880_vm0 }
 0x1fc   : > { %2072 = vst.msk [vmem:[#allocation3 + $0x48] sm:$0xff] %vm408_vm1, %v1971_v30  ;;  %vm9883_vm15 = vmmov %vm9880_vm0 }
 0x1fe   : > { %v2335_v57 = vld [vmem:[#allocation3 + $0x50] sm:$0xff] }
 0x1ff   : > { %6879 = vmatmul.mubr.msk.bf16.gmra.mrb[124].mxu1 %vm408_vm1, %v4630_v23  ;;  %v6668_v49 = vpop.f32.mrb[20].mxu1  ;;  %v2367_v58 = vadd.f32 %v8683_v52, %v2335_v57  ;;  %v2333_v28 = vld [vmem:[#allocation3 + $0x40] sm:$0xff]  ;;  %v5341_v23 = vshll.u32 %v8789_v15, 16 }
 0x200   : > { %6882 = vmatprep.mubr.msk.bf16.mxu1 %vm408_vm1, %v4638_v44  ;;  %2077 = vst.msk [vmem:[#allocation3 + $0x70] sm:$0xff] %vm408_vm1, %v6668_v49  ;;  %v1984_v55 = vpop.f32.mrb[21].mxu1  ;;  %v2365_v31 = vadd.f32 %v2333_v28, %v8685_v60  ;;  %v8784_v51 = vpop.f32.mrb[44].mxu0  ;;  %v5334_v49 = vshrl.u32 %v5314_v10, 16 }
 0x201   : > { %2075 = vst.msk [vmem:[#allocation3 + $0x60] sm:$0xff] %vm408_vm1, %v1984_v55  ;;  %v6669_v50 = vpop.f32.mrb[22].mxu1  ;;  %2399 = vst.msk [vmem:[#allocation3 + $0x50] sm:$0xff] %vm408_vm1, %v2367_v58  ;;  %v8794_v60 = vpop.f32.mrb[45].mxu0  ;;  %v5343_v41 = vrot.slane %v5341_v23, 1 }
 0x202   : > { %6921 = vmatmul.mubr.msk.bf16.gmra.mrb[148].mxu0 %vm408_vm1, %v8754_v20  ;;  %v2336_v33 = vld [vmem:[#allocation3 + $0x58] sm:$0xff]  ;;  %2078 = vst.msk [vmem:[#allocation3 + $0x78] sm:$0xff] %vm408_vm1, %v6669_v50  ;;  %v1987_v12 = vpop.f32.mrb[23].mxu1  ;;  %2397 = vst.msk [vmem:[#allocation3 + $0x40] sm:$0xff] %vm408_vm1, %v2365_v31  ;;  %v8801_v43 = vpop.f32.mrb[46].mxu0  ;;  %v5349_v31 = vshll.u32 %v5316_v5, 16 }
 0x203   : > { %v2368_v61 = vadd.f32 %v8688_v53, %v2336_v33  ;;  %v2334_v52 = vld [vmem:[#allocation3 + $0x48] sm:$0xff]  ;;  %2076 = vst.msk [vmem:[#allocation3 + $0x68] sm:$0xff] %vm408_vm1, %v1987_v12  ;;  %v4659_v53 = vshll.u32 %v4528_v46, 16  ;;  %v8806_v30 = vpop.f32.mrb[47].mxu0 }
 0x204   : > { %v2366_v2 = vadd.f32 %v2334_v52, %v8694_v34  ;;  %v5338_v34 = vrot.slane %v5336_v25, 1  ;;  %v5351_v52 = vrot.slane %v5349_v31, 1 }
 0x205   : > { %2400 = vst.msk [vmem:[#allocation3 + $0x58] sm:$0xff] %vm408_vm1, %v2368_v61  ;;  %v4661_v44 = vor.u32 %v4659_v53, %v4658_v59  ;;  %v5357_v61 = vshll.u32 %v8823_v42, 16 }
 0x206   : > { %2398 = vst.msk [vmem:[#allocation3 + $0x48] sm:$0xff] %vm408_vm1, %v2366_v2 }
 0x207   : > { %6883 = vmatmul.mubr.msk.bf16.gmra.mrb[128].mxu1 %vm408_vm1, %v4646_v36  ;;  %v2339_v40 = vld [vmem:[#allocation3 + $0x70] sm:$0xff]  ;;  %v6672_v21 = vpop.f32.mrb[24].mxu1  ;;  %v4662_v54 = vsel %vm1718_vm11, %v8768_v37, %v4661_v44  ;;  %vm9878_vm11 = vcmp.ne.s16.totalorder %v9829_v4, 0  ;;  %v5359_v23 = vrot.slane %v5357_v61, 1  ;;  %v8858_v4 = vsel %vm9879_vm13, %v8463_v38, 0  ;;  %vm9889_vm13 = vmmov %vm9880_vm0 }
 0x208   : > { %6886 = vmatprep.mubr.msk.bf16.mxu1 %vm408_vm1, %v4654_v14  ;;  %v2371_v46 = vadd.f32 %v8717_v0, %v2339_v40  ;;  %v2337_v57 = vld [vmem:[#allocation3 + $0x60] sm:$0xff]  ;;  %2081 = vst.msk [vmem:[#allocation3 + $0x90] sm:$0xff] %vm408_vm1, %v6672_v21  ;;  %v2000_v26 = vpop.f32.mrb[25].mxu1  ;;  %v8818_v55 = vpop.f32.mrb[48].mxu0  ;;  %v5318_v2 = vsel %vm9878_vm11, %v8458_v16, 0  ;;  %v5353_v14 = vshrl.u32 %v5316_v5, 16 }
 0x209   : > { %v2369_v18 = vadd.f32 %v2337_v57, %v8719_v62  ;;  %v2340_v58 = vld [vmem:[#allocation3 + $0x78] sm:$0xff]  ;;  %2079 = vst.msk [vmem:[#allocation3 + $0x80] sm:$0xff] %vm408_vm1, %v2000_v26  ;;  %v6673_v28 = vpop.f32.mrb[26].mxu1  ;;  %v5339_v62 = vor.u32 %v5338_v34, %v5334_v49  ;;  %v8828_v45 = vpop.f32.mrb[49].mxu0  ;;  %v5373_v49 = vshll.u32 %v8858_v4, 16  ;;  %vm9887_vm11 = vcmp.ne.s16.totalorder %v8136_v1, 0 }
 0x20a   : > { %2403 = vst.msk [vmem:[#allocation3 + $0x70] sm:$0xff] %vm408_vm1, %v2371_v46  ;;  %v2372_v19 = vadd.f32 %v8722_v27, %v2340_v58  ;;  %v2338_v0 = vld [vmem:[#allocation3 + $0x68] sm:$0xff]  ;;  %2082 = vst.msk [vmem:[#allocation3 + $0x98] sm:$0xff] %vm408_vm1, %v6673_v28  ;;  %v2003_v10 = vpop.f32.mrb[27].mxu1  ;;  %v8835_v39 = vpop.f32.mrb[50].mxu0  ;;  %v5365_v46 = vshll.u32 %v5318_v2, 16 }
 0x20b   : > { %2401 = vst.msk [vmem:[#allocation3 + $0x60] sm:$0xff] %vm408_vm1, %v2369_v18  ;;  %v2370_v33 = vadd.f32 %v2338_v0, %v8727_v35  ;;  %2080 = vst.msk [vmem:[#allocation3 + $0x88] sm:$0xff] %vm408_vm1, %v2003_v10  ;;  %v5344_v27 = vsel %vm9877_vm2, %v5339_v62, %v5343_v41  ;;  %v8840_v50 = vpop.f32.mrb[51].mxu0  ;;  %v5345_v35 = vshrl.u32 %v8789_v15, 16 }
 0x20c   : > { %2404 = vst.msk [vmem:[#allocation3 + $0x78] sm:$0xff] %vm408_vm1, %v2372_v19  ;;  %v5367_v18 = vrot.slane %v5365_v46, 1  ;;  %vm9884_vm2 = vmmov %vm9880_vm0 }
 0x20d   : > { %2402 = vst.msk [vmem:[#allocation3 + $0x68] sm:$0xff] %vm408_vm1, %v2370_v33  ;;  %v5347_v12 = vor.u32 %v5345_v35, %v5343_v41  ;;  %v5303_v41 = vld [vmem:[#allocation2 + $0x48] sm:$0xff]  ;;  %v5369_v33 = vshrl.u32 %v5318_v2, 16 }
 0x20e   : > { %v5320_v0 = vsel %vm9882_vm9, %v5303_v41, 0  ;;  %vm9896_vm9 = vcmask 1041408  }
 0x20f   : > { %6887 = vmatmul.mubr.msk.bf16.gmra.mrb[132].mxu1 %vm408_vm1, %v4662_v54  ;;  %v2343_v37 = vld [vmem:[#allocation3 + $0x90] sm:$0xff]  ;;  %v6676_v25 = vpop.f32.mrb[28].mxu1  ;;  %v5352_v63 = vsel %vm9880_vm0, %v5347_v12, %v5351_v52  ;;  %v5375_v54 = vrot.slane %v5373_v49, 1  ;;  %v5385_v46 = vshrl.u32 %v5320_v0, 16 }
 0x210   : > { %6926 = vmatprep.mubr.msk.bf16.mxu1 %vm408_vm1, %v5344_v27  ;;  %v2375_v36 = vadd.f32 %v8752_v13, %v2343_v37  ;;  %v2341_v59 = vld [vmem:[#allocation3 + $0x80] sm:$0xff]  ;;  %2085 = vst.msk [vmem:[#allocation3 + $0xb0] sm:$0xff] %vm408_vm1, %v6676_v25  ;;  %v2016_v53 = vpop.f32.mrb[29].mxu1  ;;  %v8853_v21 = vpop.f32.mrb[52].mxu0  ;;  %v5381_v25 = vshll.u32 %v5320_v0, 16 }
 0x211   : > { %v2373_v15 = vadd.f32 %v2341_v59, %v8757_v6  ;;  %v2344_v34 = vld [vmem:[#allocation3 + $0x98] sm:$0xff]  ;;  %2083 = vst.msk [vmem:[#allocation3 + $0xa0] sm:$0xff] %vm408_vm1, %v2016_v53  ;;  %v6677_v40 = vpop.f32.mrb[30].mxu1  ;;  %v5355_v6 = vor.u32 %v5353_v14, %v5351_v52  ;;  %v8863_v5 = vpop.f32.mrb[53].mxu0  ;;  %v5389_v59 = vshll.u32 %v8891_v8, 16 }
 0x212   : > { %2407 = vst.msk [vmem:[#allocation3 + $0x90] sm:$0xff] %vm408_vm1, %v2375_v36  ;;  %v2376_v16 = vadd.f32 %v8762_v29, %v2344_v34  ;;  %v2342_v13 = vld [vmem:[#allocation3 + $0x88] sm:$0xff]  ;;  %2086 = vst.msk [vmem:[#allocation3 + $0xb8] sm:$0xff] %vm408_vm1, %v6677_v40  ;;  %v2019_v44 = vpop.f32.mrb[31].mxu1  ;;  %v8869_v38 = vpop.f32.mrb[54].mxu0  ;;  %v5305_v53 = vld [vmem:[#allocation2 + $0x58] sm:$0xff] }
 0x213   : > { %2405 = vst.msk [vmem:[#allocation3 + $0x80] sm:$0xff] %vm408_vm1, %v2373_v15  ;;  %v2374_v57 = vadd.f32 %v2342_v13, %v8766_v17  ;;  %2084 = vst.msk [vmem:[#allocation3 + $0xa8] sm:$0xff] %vm408_vm1, %v2019_v44  ;;  %v5360_v29 = vsel %vm9881_vm8, %v5355_v6, %v5359_v23  ;;  %v8874_v26 = vpop.f32.mrb[55].mxu0  ;;  %v5361_v17 = vshrl.u32 %v8823_v42, 16  ;;  %v5383_v14 = vrot.slane %v5381_v25, 1 }
 0x214   : > { %2408 = vst.msk [vmem:[#allocation3 + $0x98] sm:$0xff] %vm408_vm1, %v2376_v16  ;;  %v8915_v16 = vsel %vm2749_vm10, %v5305_v53, 0  ;;  %vm9886_vm10 = vmmov %vm9880_vm0 }
 0x215   : > { %2406 = vst.msk [vmem:[#allocation3 + $0x88] sm:$0xff] %vm408_vm1, %v2374_v57  ;;  %v5363_v19 = vor.u32 %v5361_v17, %v5359_v23  ;;  %v5306_v23 = vld [vmem:[#allocation2 + $0x60] sm:$0xff]  ;;  %v5391_v57 = vrot.slane %v5389_v59, 1  ;;  %vm9895_vm8 = vmmov %vm9880_vm0 }
 0x216   : > { %v8925_v9 = vsel %vm2750_vm7, %v5306_v23, 0  ;;  %vm9885_vm7 = vmmov %vm9880_vm0 }
 0x217   : > { %6927 = vmatmul.mubr.msk.bf16.vlgmr.msra.gmra.mrb[136].mxu1 %vm408_vm1, %v5352_v63  ;;  %v2347_v58 = vld [vmem:[#allocation3 + $0xb0] sm:$0xff]  ;;  %v6680_v28 = vpop.f32.mrb[32].mxu1  ;;  %v5368_v48 = vsel %vm9883_vm15, %v5363_v19, %v5367_v18  ;;  %vm9897_vm15 = vmmov %vm9896_vm9 }
 0x218   : > { %6930 = vmatprep.mubr.msk.bf16.mxu1 %vm408_vm1, %v5360_v29  ;;  %v2379_v10 = vadd.f32 %v8784_v51, %v2347_v58  ;;  %v2345_v62 = vld [vmem:[#allocation3 + $0xa0] sm:$0xff]  ;;  %2089 = vst.msk [vmem:[#allocation3 + $0xd0] sm:$0xff] %vm408_vm1, %v6680_v28  ;;  %v2032_v31 = vpop.f32.mrb[33].mxu1  ;;  %v5397_v58 = vshll.u32 %v8915_v16, 16  ;;  %v5307_v28 = vld [vmem:[#allocation2 + $0x68] sm:$0xff] }
 0x219   : > { %v2377_v27 = vadd.f32 %v2345_v62, %v8794_v60  ;;  %v2348_v61 = vld [vmem:[#allocation3 + $0xb8] sm:$0xff]  ;;  %2087 = vst.msk [vmem:[#allocation3 + $0xc0] sm:$0xff] %vm408_vm1, %v2032_v31  ;;  %v6681_v42 = vpop.f32.mrb[34].mxu1  ;;  %v5371_v60 = vor.u32 %v5369_v33, %v5367_v18  ;;  %v5387_v18 = vor.u32 %v5385_v46, %v5383_v14  ;;  %v5405_v62 = vshll.u32 %v8925_v9, 16 }
 0x21a   : > { %2411 = vst.msk [vmem:[#allocation3 + $0xb0] sm:$0xff] %vm408_vm1, %v2379_v10  ;;  %v2380_v51 = vadd.f32 %v8801_v43, %v2348_v61  ;;  %v2346_v52 = vld [vmem:[#allocation3 + $0xa8] sm:$0xff]  ;;  %2090 = vst.msk [vmem:[#allocation3 + $0xd8] sm:$0xff] %vm408_vm1, %v6681_v42  ;;  %v2035_v37 = vpop.f32.mrb[35].mxu1  ;;  %v5324_v31 = vsel %vm9887_vm11, %v5307_v28, 0  ;;  %v5399_v33 = vrot.slane %v5397_v58, 1 }
 0x21b   : > { %2409 = vst.msk [vmem:[#allocation3 + $0xa0] sm:$0xff] %vm408_vm1, %v2377_v27  ;;  %v2378_v2 = vadd.f32 %v2346_v52, %v8806_v30  ;;  %2088 = vst.msk [vmem:[#allocation3 + $0xc8] sm:$0xff] %vm408_vm1, %v2035_v37  ;;  %v5376_v43 = vsel %vm9884_vm2, %v5371_v60, %v5375_v54  ;;  %v5377_v30 = vshrl.u32 %v8858_v4, 16  ;;  %v3123_v42 = vld [vmem:[#allocation3 + $0x10] sm:$0xff]  ;;  %v5401_v52 = vshrl.u32 %v8915_v16, 16 }
 0x21c   : > { %2412 = vst.msk [vmem:[#allocation3 + $0xb8] sm:$0xff] %vm408_vm1, %v2380_v51  ;;  %v5413_v59 = vshll.u32 %v5324_v31, 16  ;;  %v3127_v28 = vld [vmem:[#allocation3 + $0x30] sm:$0xff]  ;;  %vm9898_vm2 = vmmov %vm9896_vm9 }
 0x21d   : > { %v8886_v35 = vpop.f32.mrb[56].mxu0  ;;  %2410 = vst.msk [vmem:[#allocation3 + $0xa8] sm:$0xff] %vm408_vm1, %v2378_v2  ;;  %v5379_v40 = vor.u32 %v5377_v30, %v5375_v54  ;;  %v5308_v54 = vld [vmem:[#allocation2 + $0x70] sm:$0xff] }
 0x21e   : > { %v8896_v12 = vpop.f32.mrb[57].mxu0 }
 0x21f   : > { %v8902_v56 = vpop.f32.mrb[58].mxu0  ;;  %6931 = vmatmul.mubr.msk.bf16.gmra.mrb[140].mxu1 %vm408_vm1, %v5368_v48  ;;  %v2351_v15 = vld [vmem:[#allocation3 + $0xd0] sm:$0xff]  ;;  %v6684_v34 = vpop.f32.mrb[36].mxu1  ;;  %v5384_v19 = vsel %vm9885_vm7, %v5379_v40, %v5383_v14  ;;  %v3121_v48 = vld [vmem:[#allocation3] sm:$0xff]  ;;  %v3124_v14 = vld [vmem:[#allocation3 + $0x18] sm:$0xff] }
 0x220   : > { %v8907_v36 = vpop.f32.mrb[59].mxu0  ;;  %6934 = vmatprep.mubr.msk.bf16.mxu1 %vm408_vm1, %v5376_v43  ;;  %v2383_v13 = vadd.f32 %v8818_v55, %v2351_v15  ;;  %v2349_v44 = vld [vmem:[#allocation3 + $0xc0] sm:$0xff]  ;;  %2093 = vst.msk [vmem:[#allocation3 + $0xf0] sm:$0xff] %vm408_vm1, %v6684_v34  ;;  %v2048_v6 = vpop.f32.mrb[37].mxu1  ;;  %v5407_v43 = vrot.slane %v5405_v62, 1  ;;  %v8957_v15 = vsel %vm2752_vm6, %v5308_v54, 0  ;;  %vm9888_vm6 = vmmov %vm9880_vm0 }
 0x221   : > { %v2381_v63 = vadd.f32 %v2349_v44, %v8828_v45  ;;  %v2352_v4 = vld [vmem:[#allocation3 + $0xd8] sm:$0xff]  ;;  %2091 = vst.msk [vmem:[#allocation3 + $0xe0] sm:$0xff] %vm408_vm1, %v2048_v6  ;;  %v6685_v29 = vpop.f32.mrb[38].mxu1  ;;  %v3125_v62 = vld [vmem:[#allocation3 + $0x20] sm:$0xff]  ;;  %vm9899_vm7 = vmmov %vm9898_vm2 }
 0x222   : > { %2415 = vst.msk [vmem:[#allocation3 + $0xd0] sm:$0xff] %vm408_vm1, %v2383_v13  ;;  %v2384_v55 = vadd.f32 %v8835_v39, %v2352_v4  ;;  %v2350_v41 = vld [vmem:[#allocation3 + $0xc8] sm:$0xff]  ;;  %2094 = vst.msk [vmem:[#allocation3 + $0xf8] sm:$0xff] %vm408_vm1, %v6685_v29  ;;  %v2051_v17 = vpop.f32.mrb[39].mxu1  ;;  %v5392_v39 = vsel %vm9886_vm10, %v5387_v18, %v5391_v57  ;;  %v5403_v13 = vor.u32 %v5401_v52, %v5399_v33  ;;  %v5309_v6 = vld [vmem:[#allocation2 + $0x78] sm:$0xff]  ;;  %v5415_v29 = vrot.slane %v5413_v59, 1 }
 0x223   : > { %2413 = vst.msk [vmem:[#allocation3 + $0xc0] sm:$0xff] %vm408_vm1, %v2381_v63  ;;  %v2382_v11 = vadd.f32 %v2350_v41, %v8840_v50  ;;  %2092 = vst.msk [vmem:[#allocation3 + $0xe8] sm:$0xff] %vm408_vm1, %v2051_v17  ;;  %v5393_v50 = vshrl.u32 %v8891_v8, 16  ;;  %v5326_v41 = vsel %vm2753_vm14, %v5309_v6, 0  ;;  %v5417_v17 = vshrl.u32 %v5324_v31, 16  ;;  %v5310_v18 = vld [vmem:[#allocation2 + $0x80] sm:$0xff] }
 0x224   : > { %2416 = vst.msk [vmem:[#allocation3 + $0xd8] sm:$0xff] %vm408_vm1, %v2384_v55  ;;  %v5408_v63 = vsel %vm9889_vm13, %v5403_v13, %v5407_v43  ;;  %v5409_v55 = vshrl.u32 %v8925_v9, 16  ;;  %v5429_v54 = vshll.u32 %v5326_v41, 16  ;;  %v8987_v3 = vsel %vm2754_vm5, %v5310_v18, 0  ;;  %vm9890_vm14 = vmmov %vm9880_vm0  ;;  %v3131_v13 = vld [vmem:[#allocation3 + $0x50] sm:$0xff] }
 0x225   : > { %v8921_v49 = vpop.f32.mrb[60].mxu0  ;;  %2414 = vst.msk [vmem:[#allocation3 + $0xc8] sm:$0xff] %vm408_vm1, %v2382_v11  ;;  %v5395_v51 = vor.u32 %v5393_v50, %v5391_v57  ;;  %v5419_v50 = vor.u32 %v5417_v17, %v5415_v29  ;;  %vm9891_vm5 = vmmov %vm9880_vm0 }
 0x226   : > { %v8930_v45 = vpop.f32.mrb[61].mxu0  ;;  %v5411_v11 = vor.u32 %v5409_v55, %v5407_v43  ;;  %v3132_v55 = vld [vmem:[#allocation3 + $0x58] sm:$0xff] }
 0x227   : > { %v8937_v0 = vpop.f32.mrb[62].mxu0  ;;  %6935 = vmatmul.mubr.msk.bf16.gmra.mrb[144].mxu1 %vm408_vm1, %v5384_v19  ;;  %v2355_v27 = vld [vmem:[#allocation3 + $0xf0] sm:$0xff]  ;;  %v5400_v57 = vsel %vm9888_vm6, %v5395_v51, %v5399_v33 }
 0x228   : > { %v8942_v10 = vpop.f32.mrb[63].mxu0  ;;  %6938 = vmatprep.mubr.msk.bf16.mxu1 %vm408_vm1, %v5392_v39  ;;  %v2387_v37 = vadd.f32 %v8853_v21, %v2355_v27  ;;  %v2353_v60 = vld [vmem:[#allocation3 + $0xe0] sm:$0xff]  ;;  %v5416_v32 = vsel %vm9890_vm14, %v5411_v11, %v5415_v29 }
 0x229   : > { %v2385_v8 = vadd.f32 %v2353_v60, %v8863_v5  ;;  %v2356_v1 = vld [vmem:[#allocation3 + $0xf8] sm:$0xff]  ;;  %v3122_v5 = vld [vmem:[#allocation3 + $0x8] sm:$0xff] }
 0x22a   : > { %v6724_v61 = vpop.f32.mrb[40].mxu1  ;;  %2419 = vst.msk [vmem:[#allocation3 + $0xf0] sm:$0xff] %vm408_vm1, %v2387_v37  ;;  %v2388_v21 = vadd.f32 %v8869_v38, %v2356_v1  ;;  %v2354_v34 = vld [vmem:[#allocation3 + $0xe8] sm:$0xff]  ;;  %v5433_v1 = vshrl.u32 %v5326_v41, 16 }
 0x22b   : > { %v3155_v25 = vadd.f32 %v6724_v61, %v3123_v42  ;;  %v2994_v2 = vpop.f32.mrb[41].mxu1  ;;  %2417 = vst.msk [vmem:[#allocation3 + $0xe0] sm:$0xff] %vm408_vm1, %v2385_v8  ;;  %v2386_v7 = vadd.f32 %v2354_v34, %v8874_v26  ;;  %v5421_v26 = vshll.u32 %v8957_v15, 16  ;;  %v3128_v42 = vld [vmem:[#allocation3 + $0x38] sm:$0xff]  ;;  %v3126_v37 = vld [vmem:[#allocation3 + $0x28] sm:$0xff] }
 0x22c   : > { %v3153_v53 = vadd.f32 %v3121_v48, %v2994_v2  ;;  %v6725_v30 = vpop.f32.mrb[42].mxu1  ;;  %2420 = vst.msk [vmem:[#allocation3 + $0xf8] sm:$0xff] %vm408_vm1, %v2388_v21  ;;  %v5311_v2 = vld [vmem:[#allocation2 + $0x88] sm:$0xff]  ;;  %v5437_v21 = vshll.u32 %v8987_v3, 16 }
 0x22d   : > { %v8953_v23 = vpop.f32.mrb[64].mxu0  ;;  %3187 = vst.msk [vmem:[#allocation3 + $0x10] sm:$0xff] %vm408_vm1, %v3155_v25  ;;  %v3156_v40 = vadd.f32 %v6725_v30, %v3124_v14  ;;  %v2997_v16 = vpop.f32.mrb[43].mxu1  ;;  %2418 = vst.msk [vmem:[#allocation3 + $0xe8] sm:$0xff] %vm408_vm1, %v2386_v7  ;;  %v5423_v33 = vrot.slane %v5421_v26, 1  ;;  %v5425_v25 = vshrl.u32 %v8957_v15, 16 }
 0x22e   : > { %v8962_v44 = vpop.f32.mrb[65].mxu0  ;;  %3185 = vst.msk [vmem:[#allocation3] sm:$0xff] %vm408_vm1, %v3153_v53  ;;  %v3154_v46 = vadd.f32 %v3122_v5, %v2997_v16 }
 0x22f   : > { %v8968_v38 = vpop.f32.mrb[66].mxu0  ;;  %3188 = vst.msk [vmem:[#allocation3 + $0x18] sm:$0xff] %vm408_vm1, %v3156_v40  ;;  %6939 = vmatmul.mubr.msk.bf16.gmra.mrb[148].mxu1 %vm408_vm1, %v5400_v57  ;;  %v5424_v14 = vsel %vm9891_vm5, %v5419_v50, %v5423_v33  ;;  %v5427_v6 = vor.u32 %v5425_v25, %v5423_v33 }
 0x230   : > { %v8974_v4 = vpop.f32.mrb[67].mxu0  ;;  %3186 = vst.msk [vmem:[#allocation3 + $0x8] sm:$0xff] %vm408_vm1, %v3154_v46  ;;  %6942 = vmatprep.mubr.msk.bf16.mxu1 %vm408_vm1, %v5408_v63  ;;  %v3129_v46 = vld [vmem:[#allocation3 + $0x40] sm:$0xff]  ;;  %v5439_v63 = vrot.slane %v5437_v21, 1 }
 0x232   : > { %v6728_v58 = vpop.f32.mrb[44].mxu1 }
 0x233   : > { %v3159_v19 = vadd.f32 %v6728_v58, %v3127_v28  ;;  %v3010_v39 = vpop.f32.mrb[45].mxu1  ;;  %v3130_v28 = vld [vmem:[#allocation3 + $0x48] sm:$0xff] }
 0x234   : > { %v3157_v27 = vadd.f32 %v3125_v62, %v3010_v39  ;;  %v6729_v61 = vpop.f32.mrb[46].mxu1  ;;  %v3599_v9 = vld [vmem:[#allocation3 + $0x10] sm:$0xff] }
 0x235   : > { %v8983_v51 = vpop.f32.mrb[68].mxu0  ;;  %3191 = vst.msk [vmem:[#allocation3 + $0x30] sm:$0xff] %vm408_vm1, %v3159_v19  ;;  %v3160_v31 = vadd.f32 %v6729_v61, %v3128_v42  ;;  %v3013_v52 = vpop.f32.mrb[47].mxu1  ;;  %v3631_v48 = vadd.f32 %v8886_v35, %v3599_v9  ;;  %v3597_v43 = vld [vmem:[#allocation3] sm:$0xff]  ;;  %v5431_v35 = vrot.slane %v5429_v54, 1  ;;  %v5441_v19 = vshrl.u32 %v8987_v3, 16 }
 0x236   : > { %v8990_v60 = vpop.f32.mrb[69].mxu0  ;;  %3189 = vst.msk [vmem:[#allocation3 + $0x20] sm:$0xff] %vm408_vm1, %v3157_v27  ;;  %v3158_v59 = vadd.f32 %v3126_v37, %v3013_v52  ;;  %v3629_v53 = vadd.f32 %v3597_v43, %v8896_v12  ;;  %v3600_v30 = vld [vmem:[#allocation3 + $0x18] sm:$0xff]  ;;  %v5328_v12 = vsel %vm2755_vm4, %v5311_v2, 0  ;;  %vm9892_vm4 = vmmov %vm9880_vm0  ;;  %v3135_v2 = vld [vmem:[#allocation3 + $0x70] sm:$0xff] }
 0x237   : > { %v8996_v8 = vpop.f32.mrb[70].mxu0  ;;  %3192 = vst.msk [vmem:[#allocation3 + $0x38] sm:$0xff] %vm408_vm1, %v3160_v31  ;;  %6943 = vmatmul.mubr.msk.bf16.gmra.mrb[152].mxu1 %vm408_vm1, %v5416_v32  ;;  %3663 = vst.msk [vmem:[#allocation3 + $0x10] sm:$0xff] %vm408_vm1, %v3631_v48  ;;  %v3632_v34 = vadd.f32 %v8902_v56, %v3600_v30  ;;  %v3598_v40 = vld [vmem:[#allocation3 + $0x8] sm:$0xff]  ;;  %v5435_v57 = vor.u32 %v5433_v1, %v5431_v35  ;;  %v5445_v29 = vshll.u32 %v5328_v12, 16  ;;  %v5449_v33 = vshrl.u32 %v5328_v12, 16 }
 0x238   : > { %v9002_v15 = vpop.f32.mrb[71].mxu0  ;;  %3190 = vst.msk [vmem:[#allocation3 + $0x28] sm:$0xff] %vm408_vm1, %v3158_v59  ;;  %6946 = vmatprep.mubr.msk.bf16.mxu1 %vm408_vm1, %v5424_v14  ;;  %3661 = vst.msk [vmem:[#allocation3] sm:$0xff] %vm408_vm1, %v3629_v53  ;;  %v3630_v16 = vadd.f32 %v3598_v40, %v8907_v36  ;;  %v9020_v36 = vsel %vm2756_vm3, %v8754_v20, 0  ;;  %v5432_v22 = vsel %vm9892_vm4, %v5427_v6, %v5431_v35  ;;  %v5313_v54 = vld [vmem:[#allocation2 + $0x98] sm:$0x1] }
 0x239   : > { %3664 = vst.msk [vmem:[#allocation3 + $0x18] sm:$0xff] %vm408_vm1, %v3632_v34  ;;  %vm9893_vm3 = vmmov %vm9880_vm0  ;;  %v5447_v3 = vrot.slane %v5445_v29, 1  ;;  %v5453_v9 = vshll.u32 %v9020_v36, 16  ;;  %v5330_v37 = vsel %vm2757_vm12, %v5313_v54, 0  ;;  %v5443_v48 = vor.u32 %v5441_v19, %v5439_v63  ;;  %v3133_v59 = vld [vmem:[#allocation3 + $0x60] sm:$0xff]  ;;  %v3136_v14 = vld [vmem:[#allocation3 + $0x78] sm:$0xff] }
 0x23a   : > { %v6732_v5 = vpop.f32.mrb[48].mxu1  ;;  %3662 = vst.msk [vmem:[#allocation3 + $0x8] sm:$0xff] %vm408_vm1, %v3630_v16  ;;  %v5440_v42 = vsel %vm9893_vm3, %v5435_v57, %v5439_v63  ;;  %v5457_v47 = vshrl.u32 %v9020_v36, 16  ;;  %v3134_v12 = vld [vmem:[#allocation3 + $0x68] sm:$0xff]  ;;  %vm9894_vm12 = vmmov %vm9880_vm0 }
 0x23b   : > { %v3163_v56 = vadd.f32 %v6732_v5, %v3131_v13  ;;  %v3026_v7 = vpop.f32.mrb[49].mxu1  ;;  %v5451_v32 = vor.u32 %v5449_v33, %v5447_v3  ;;  %v5455_v1 = vrot.slane %v5453_v9, 1  ;;  %v3138_v54 = vld [vmem:[#allocation3 + $0x88] sm:$0xff] }
 0x23c   : > { %v3161_v26 = vadd.f32 %v3129_v46, %v3026_v7  ;;  %v6733_v24 = vpop.f32.mrb[50].mxu1  ;;  %v3603_v17 = vld [vmem:[#allocation3 + $0x30] sm:$0xff] }
 0x23d   : > { %v9015_v41 = vpop.f32.mrb[72].mxu0  ;;  %3195 = vst.msk [vmem:[#allocation3 + $0x50] sm:$0xff] %vm408_vm1, %v3163_v56  ;;  %v3164_v18 = vadd.f32 %v6733_v24, %v3132_v55  ;;  %v3029_v58 = vpop.f32.mrb[51].mxu1  ;;  %v3635_v39 = vadd.f32 %v8921_v49, %v3603_v17  ;;  %v3601_v62 = vld [vmem:[#allocation3 + $0x20] sm:$0xff]  ;;  %v5448_v56 = vsel %vm9894_vm12, %v5443_v48, %v5447_v3  ;;  %v5456_v63 = vsel %vm9880_vm0, %v5451_v32, %v5455_v1  ;;  %v3139_v17 = vld [vmem:[#allocation3 + $0x90] sm:$0xff] }
 0x23e   : > { %v9023_v11 = vpop.f32.mrb[73].mxu0  ;;  %3193 = vst.msk [vmem:[#allocation3 + $0x40] sm:$0xff] %vm408_vm1, %v3161_v26  ;;  %v3162_v50 = vadd.f32 %v3130_v28, %v3029_v58  ;;  %v3633_v27 = vadd.f32 %v3601_v62, %v8930_v45  ;;  %v3604_v61 = vld [vmem:[#allocation3 + $0x38] sm:$0xff]  ;;  %v5459_v24 = vor.u32 %v5457_v47, %v5455_v1  ;;  %vm6075_vm12 = vcmask 125952  }
 0x23f   : > { %v9029_v20 = vpop.f32.mrb[74].mxu0  ;;  %3196 = vst.msk [vmem:[#allocation3 + $0x58] sm:$0xff] %vm408_vm1, %v3164_v18  ;;  %6947 = vmatmul.mubr.msk.bf16.gmra.mrb[156].mxu1 %vm408_vm1, %v5432_v22  ;;  %3667 = vst.msk [vmem:[#allocation3 + $0x30] sm:$0xff] %vm408_vm1, %v3635_v39  ;;  %v3636_v31 = vadd.f32 %v8937_v0, %v3604_v61  ;;  %v3602_v52 = vld [vmem:[#allocation3 + $0x28] sm:$0xff]  ;;  %v3140_v39 = vld [vmem:[#allocation3 + $0x98] sm:$0xff] }
 0x240   : > { %v9035_v49 = vpop.f32.mrb[75].mxu0  ;;  %3194 = vst.msk [vmem:[#allocation3 + $0x48] sm:$0xff] %vm408_vm1, %v3162_v50  ;;  %6950 = vmatprep.mubr.msk.bf16.mxu1 %vm408_vm1, %v5440_v42  ;;  %3665 = vst.msk [vmem:[#allocation3 + $0x20] sm:$0xff] %vm408_vm1, %v3633_v27  ;;  %v3634_v45 = vadd.f32 %v3602_v52, %v8942_v10  ;;  %v5461_v10 = vshll.u32 %v5330_v37, 16  ;;  %v3144_v1 = vld [vmem:[#allocation3 + $0xb8] sm:$0xff] }
 0x241   : > { %3668 = vst.msk [vmem:[#allocation3 + $0x38] sm:$0xff] %vm408_vm1, %v3636_v31 }
 0x242   : > { %v6736_v25 = vpop.f32.mrb[52].mxu1  ;;  %3666 = vst.msk [vmem:[#allocation3 + $0x28] sm:$0xff] %vm408_vm1, %v3634_v45 }
 0x243   : > { %v3167_v0 = vadd.f32 %v6736_v25, %v3135_v2  ;;  %v3042_v43 = vpop.f32.mrb[53].mxu1  ;;  %v3143_v2 = vld [vmem:[#allocation3 + $0xb0] sm:$0xff] }
 0x244   : > { %v3165_v53 = vadd.f32 %v3133_v59, %v3042_v43  ;;  %v6737_v30 = vpop.f32.mrb[54].mxu1  ;;  %v3607_v21 = vld [vmem:[#allocation3 + $0x50] sm:$0xff]  ;;  %v3141_v43 = vld [vmem:[#allocation3 + $0xa0] sm:$0xff] }
 0x245   : > { %v9048_v35 = vpop.f32.mrb[76].mxu0  ;;  %3199 = vst.msk [vmem:[#allocation3 + $0x70] sm:$0xff] %vm408_vm1, %v3167_v0  ;;  %v3168_v34 = vadd.f32 %v6737_v30, %v3136_v14  ;;  %v3045_v40 = vpop.f32.mrb[55].mxu1  ;;  %v3639_v5 = vadd.f32 %v8953_v23, %v3607_v21  ;;  %v3605_v13 = vld [vmem:[#allocation3 + $0x40] sm:$0xff] }
 0x246   : > { %v9052_v16 = vpop.f32.mrb[77].mxu0  ;;  %3197 = vst.msk [vmem:[#allocation3 + $0x60] sm:$0xff] %vm408_vm1, %v3165_v53  ;;  %v3166_v6 = vadd.f32 %v3134_v12, %v3045_v40  ;;  %v3637_v46 = vadd.f32 %v3605_v13, %v8962_v44  ;;  %v3608_v57 = vld [vmem:[#allocation3 + $0x58] sm:$0xff]  ;;  %v5463_v44 = vrot.slane %v5461_v10, 1 }
 0x247   : > { %v9057_v7 = vpop.f32.mrb[78].mxu0  ;;  %3200 = vst.msk [vmem:[#allocation3 + $0x78] sm:$0xff] %vm408_vm1, %v3168_v34  ;;  %6951 = vmatmul.mubr.msk.bf16.gmra.mrb[160].mxu1 %vm408_vm1, %v5448_v56  ;;  %3671 = vst.msk [vmem:[#allocation3 + $0x50] sm:$0xff] %vm408_vm1, %v3639_v5  ;;  %v3640_v23 = vadd.f32 %v8968_v38, %v3608_v57  ;;  %v3606_v26 = vld [vmem:[#allocation3 + $0x48] sm:$0xff]  ;;  %v3137_v38 = vld [vmem:[#allocation3 + $0x80] sm:$0xff] }
 0x248   : > { %v9063_v29 = vpop.f32.mrb[79].mxu0  ;;  %3198 = vst.msk [vmem:[#allocation3 + $0x68] sm:$0xff] %vm408_vm1, %v3166_v6  ;;  %6954 = vmatprep.mubr.msk.bf16.mxu1 %vm408_vm1, %v5456_v63  ;;  %3669 = vst.msk [vmem:[#allocation3 + $0x40] sm:$0xff] %vm408_vm1, %v3637_v46  ;;  %v3638_v55 = vadd.f32 %v3606_v26, %v8974_v4  ;;  %v5464_v62 = vsel %vm9895_vm8, %v5459_v24, %v5463_v44  ;;  %v3148_v44 = vld [vmem:[#allocation3 + $0xd8] sm:$0xff] }
 0x249   : > { %3672 = vst.msk [vmem:[#allocation3 + $0x58] sm:$0xff] %vm408_vm1, %v3640_v23  ;;  %v3145_v23 = vld [vmem:[#allocation3 + $0xc0] sm:$0xff] }
 0x24a   : > { %v6740_v36 = vpop.f32.mrb[56].mxu1  ;;  %3670 = vst.msk [vmem:[#allocation3 + $0x48] sm:$0xff] %vm408_vm1, %v3638_v55 }
 0x24b   : > { %v3171_v18 = vadd.f32 %v6740_v36, %v3139_v17  ;;  %v3058_v58 = vpop.f32.mrb[57].mxu1 }
 0x24c   : > { %v3169_v28 = vadd.f32 %v3137_v38, %v3058_v58  ;;  %v6741_v19 = vpop.f32.mrb[58].mxu1  ;;  %v3611_v22 = vld [vmem:[#allocation3 + $0x70] sm:$0xff] }
 0x24d   : > { %v9074_v50 = vpop.f32.mrb[80].mxu0  ;;  %3203 = vst.msk [vmem:[#allocation3 + $0x90] sm:$0xff] %vm408_vm1, %v3171_v18  ;;  %v3172_v4 = vadd.f32 %v6741_v19, %v3140_v39  ;;  %v3061_v33 = vpop.f32.mrb[59].mxu1  ;;  %v3643_v61 = vadd.f32 %v8983_v51, %v3611_v22  ;;  %v3609_v42 = vld [vmem:[#allocation3 + $0x60] sm:$0xff] }
 0x24e   : > { %v9077_v27 = vpop.f32.mrb[81].mxu0  ;;  %3201 = vst.msk [vmem:[#allocation3 + $0x80] sm:$0xff] %vm408_vm1, %v3169_v28  ;;  %v3170_v3 = vadd.f32 %v3138_v54, %v3061_v33  ;;  %v3641_v31 = vadd.f32 %v3609_v42, %v8990_v60  ;;  %v3612_v52 = vld [vmem:[#allocation3 + $0x78] sm:$0xff]  ;;  %v3151_v42 = vld [vmem:[#allocation3 + $0xf0] sm:$0xff] }
 0x24f   : > { %v9081_v9 = vpop.f32.mrb[82].mxu0  ;;  %3204 = vst.msk [vmem:[#allocation3 + $0x98] sm:$0xff] %vm408_vm1, %v3172_v4  ;;  %6955 = vmatmul.mubr.msk.bf16.gmra.mrb[164].mxu1 %vm408_vm1, %v5464_v62  ;;  %3675 = vst.msk [vmem:[#allocation3 + $0x70] sm:$0xff] %vm408_vm1, %v3643_v61  ;;  %v3644_v37 = vadd.f32 %v8996_v8, %v3612_v52  ;;  %v3610_v51 = vld [vmem:[#allocation3 + $0x68] sm:$0xff] }
 0x250   : > { %v9086_v45 = vpop.f32.mrb[83].mxu0  ;;  %3202 = vst.msk [vmem:[#allocation3 + $0x88] sm:$0xff] %vm408_vm1, %v3170_v3  ;;  %3673 = vst.msk [vmem:[#allocation3 + $0x60] sm:$0xff] %vm408_vm1, %v3641_v31  ;;  %v3642_v25 = vadd.f32 %v3610_v51, %v9002_v15  ;;  %v3142_v15 = vld [vmem:[#allocation3 + $0xa8] sm:$0xff]  ;;  %v3149_v31 = vld [vmem:[#allocation3 + $0xe0] sm:$0xff] }
 0x251   : > { %3676 = vst.msk [vmem:[#allocation3 + $0x78] sm:$0xff] %vm408_vm1, %v3644_v37  ;;  %v3152_v37 = vld [vmem:[#allocation3 + $0xf8] sm:$0xff] }
 0x252   : > { %v6744_v60 = vpop.f32.mrb[60].mxu1  ;;  %3674 = vst.msk [vmem:[#allocation3 + $0x68] sm:$0xff] %vm408_vm1, %v3642_v25 }
 0x253   : > { %v3175_v48 = vadd.f32 %v6744_v60, %v3143_v2  ;;  %v3074_v0 = vpop.f32.mrb[61].mxu1 }
 0x254   : > { %v3173_v59 = vadd.f32 %v3141_v43, %v3074_v0  ;;  %v6745_v32 = vpop.f32.mrb[62].mxu1  ;;  %v3615_v53 = vld [vmem:[#allocation3 + $0x90] sm:$0xff] }
 0x255   : > { %v9095_v8 = vpop.f32.mrb[84].mxu0  ;;  %3207 = vst.msk [vmem:[#allocation3 + $0xb0] sm:$0xff] %vm408_vm1, %v3175_v48  ;;  %v3176_v30 = vadd.f32 %v6745_v32, %v3144_v1  ;;  %v3077_v14 = vpop.f32.mrb[63].mxu1  ;;  %v3647_v10 = vadd.f32 %v9015_v41, %v3615_v53  ;;  %v3613_v21 = vld [vmem:[#allocation3 + $0x80] sm:$0xff]  ;;  %v3150_v48 = vld [vmem:[#allocation3 + $0xe8] sm:$0xff] }
 0x256   : > { %v9098_v47 = vpop.f32.mrb[85].mxu0  ;;  %3205 = vst.msk [vmem:[#allocation3 + $0xa0] sm:$0xff] %vm408_vm1, %v3173_v59  ;;  %v3174_v34 = vadd.f32 %v3142_v15, %v3077_v14  ;;  %v3645_v12 = vadd.f32 %v3613_v21, %v9023_v11  ;;  %v3616_v5 = vld [vmem:[#allocation3 + $0x98] sm:$0xff]  ;;  %v3147_v11 = vld [vmem:[#allocation3 + $0xd0] sm:$0xff] }
 0x257   : > { %v9102_v40 = vpop.f32.mrb[86].mxu0  ;;  %3208 = vst.msk [vmem:[#allocation3 + $0xb8] sm:$0xff] %vm408_vm1, %v3176_v30  ;;  %3679 = vst.msk [vmem:[#allocation3 + $0x90] sm:$0xff] %vm408_vm1, %v3647_v10  ;;  %v3648_v6 = vadd.f32 %v9029_v20, %v3616_v5  ;;  %v3614_v56 = vld [vmem:[#allocation3 + $0x88] sm:$0xff]  ;;  %v3923_v5 = vld [vmem:[#allocation3] sm:$0xff] }
 0x258   : > { %v9106_v13 = vpop.f32.mrb[87].mxu0  ;;  %3206 = vst.msk [vmem:[#allocation3 + $0xa8] sm:$0xff] %vm408_vm1, %v3174_v34  ;;  %3677 = vst.msk [vmem:[#allocation3 + $0x80] sm:$0xff] %vm408_vm1, %v3645_v12  ;;  %v3646_v41 = vadd.f32 %v3614_v56, %v9035_v49  ;;  %v3146_v49 = vld [vmem:[#allocation3 + $0xc8] sm:$0xff] }
 0x259   : > { %3680 = vst.msk [vmem:[#allocation3 + $0x98] sm:$0xff] %vm408_vm1, %v3648_v6 }
 0x25a   : > { %v6748_v46 = vpop.f32.mrb[64].mxu1  ;;  %3678 = vst.msk [vmem:[#allocation3 + $0x88] sm:$0xff] %vm408_vm1, %v3646_v41  ;;  %v3926_v41 = vld [vmem:[#allocation3 + $0x18] sm:$0xff] }
 0x25b   : > { %v3179_v57 = vadd.f32 %v6748_v46, %v3147_v11  ;;  %v3090_v63 = vpop.f32.mrb[65].mxu1 }
 0x25c   : > { %v3177_v26 = vadd.f32 %v3145_v23, %v3090_v63  ;;  %v6749_v24 = vpop.f32.mrb[66].mxu1  ;;  %v3619_v55 = vld [vmem:[#allocation3 + $0xb0] sm:$0xff] }
 0x25d   : > { %v9115_v20 = vpop.f32.mrb[88].mxu0  ;;  %3211 = vst.msk [vmem:[#allocation3 + $0xd0] sm:$0xff] %vm408_vm1, %v3179_v57  ;;  %v3180_v36 = vadd.f32 %v6749_v24, %v3148_v44  ;;  %v3093_v17 = vpop.f32.mrb[67].mxu1  ;;  %v3651_v58 = vadd.f32 %v9048_v35, %v3619_v55  ;;  %v3617_v38 = vld [vmem:[#allocation3 + $0xa0] sm:$0xff] }
 0x25e   : > { %v9118_v18 = vpop.f32.mrb[89].mxu0  ;;  %3209 = vst.msk [vmem:[#allocation3 + $0xc0] sm:$0xff] %vm408_vm1, %v3177_v26  ;;  %v3178_v28 = vadd.f32 %v3146_v49, %v3093_v17  ;;  %v3649_v39 = vadd.f32 %v3617_v38, %v9052_v16  ;;  %v3620_v62 = vld [vmem:[#allocation3 + $0xb8] sm:$0xff]  ;;  %v5847_v16 = vld [vmem:[%s9627_s9] sm:$0x3] }
 0x25f   : > { %v9122_v19 = vpop.f32.mrb[90].mxu0  ;;  %3212 = vst.msk [vmem:[#allocation3 + $0xd8] sm:$0xff] %vm408_vm1, %v3180_v36  ;;  %3683 = vst.msk [vmem:[#allocation3 + $0xb0] sm:$0xff] %vm408_vm1, %v3651_v58  ;;  %v3652_v4 = vadd.f32 %v9057_v7, %v3620_v62  ;;  %v3618_v33 = vld [vmem:[#allocation3 + $0xa8] sm:$0xff]  ;;  %6999 = vmatprep.subr.msk.bf16.mxu0 %vm9896_vm9, %v5847_v16  ;;  %v5881_v54 = vsel %vm9897_vm15, %v5847_v16, 0  ;;  %v3927_v62 = vld [vmem:[#allocation3 + $0x20] sm:$0xff] }
 0x260   : > { %v9126_v22 = vpop.f32.mrb[91].mxu0  ;;  %3210 = vst.msk [vmem:[#allocation3 + $0xc8] sm:$0xff] %vm408_vm1, %v3178_v28  ;;  %3681 = vst.msk [vmem:[#allocation3 + $0xa0] sm:$0xff] %vm408_vm1, %v3649_v39  ;;  %v3650_v35 = vadd.f32 %v3618_v33, %v9063_v29  ;;  %6959 = vmatpush3.bf16.msra.mxu0 %v5881_v54 }
 0x261   : > { %3684 = vst.msk [vmem:[#allocation3 + $0xb8] sm:$0xff] %vm408_vm1, %v3652_v4 }
 0x262   : > { %v6752_v61 = vpop.f32.mrb[68].mxu1  ;;  %3682 = vst.msk [vmem:[#allocation3 + $0xa8] sm:$0xff] %vm408_vm1, %v3650_v35  ;;  %v3930_v35 = vld [vmem:[#allocation3 + $0x38] sm:$0xff] }
 0x263   : > { %v3183_v7 = vadd.f32 %v6752_v61, %v3151_v42  ;;  %v3106_v3 = vpop.f32.mrb[69].mxu1 }
 0x264   : > { %v3181_v52 = vadd.f32 %v3149_v31, %v3106_v3  ;;  %v6753_v29 = vpop.f32.mrb[70].mxu1  ;;  %v3623_v25 = vld [vmem:[#allocation3 + $0xd0] sm:$0xff] }
 0x265   : > { %v9140_v51 = vpop.f32.mrb[92].mxu0  ;;  %3215 = vst.msk [vmem:[#allocation3 + $0xf0] sm:$0xff] %vm408_vm1, %v3183_v7  ;;  %v3184_v60 = vadd.f32 %v6753_v29, %v3152_v37  ;;  %v3109_v2 = vpop.f32.mrb[71].mxu1  ;;  %v3655_v43 = vadd.f32 %v9074_v50, %v3623_v25  ;;  %v3621_v59 = vld [vmem:[#allocation3 + $0xc0] sm:$0xff] }
 0x266   : > { %v9143_v0 = vpop.f32.mrb[93].mxu0  ;;  %3213 = vst.msk [vmem:[#allocation3 + $0xe0] sm:$0xff] %vm408_vm1, %v3181_v52  ;;  %v3182_v32 = vadd.f32 %v3150_v48, %v3109_v2  ;;  %v3653_v53 = vadd.f32 %v3621_v59, %v9077_v27  ;;  %v3624_v30 = vld [vmem:[#allocation3 + $0xd8] sm:$0xff]  ;;  %v3925_v27 = vld [vmem:[#allocation3 + $0x10] sm:$0xff] }
 0x267   : > { %v9147_v1 = vpop.f32.mrb[94].mxu0  ;;  %3216 = vst.msk [vmem:[#allocation3 + $0xf8] sm:$0xff] %vm408_vm1, %v3184_v60  ;;  %3687 = vst.msk [vmem:[#allocation3 + $0xd0] sm:$0xff] %vm408_vm1, %v3655_v43  ;;  %v3656_v15 = vadd.f32 %v9081_v9, %v3624_v30  ;;  %v3622_v10 = vld [vmem:[#allocation3 + $0xc8] sm:$0xff] }
 0x268   : > { %v9151_v14 = vpop.f32.mrb[95].mxu0  ;;  %3214 = vst.msk [vmem:[#allocation3 + $0xe8] sm:$0xff] %vm408_vm1, %v3182_v32  ;;  %3685 = vst.msk [vmem:[#allocation3 + $0xc0] sm:$0xff] %vm408_vm1, %v3653_v53  ;;  %v3654_v50 = vadd.f32 %v3622_v10, %v9086_v45  ;;  %v3924_v45 = vld [vmem:[#allocation3 + $0x8] sm:$0xff]  ;;  %v3931_v32 = vld [vmem:[#allocation3 + $0x40] sm:$0xff] }
 0x269   : > { %3688 = vst.msk [vmem:[#allocation3 + $0xd8] sm:$0xff] %vm408_vm1, %v3656_v15  ;;  %v3934_v15 = vld [vmem:[#allocation3 + $0x58] sm:$0xff] }
 0x26a   : > { %v6792_v21 = vpop.f32.mrb[72].mxu1  ;;  %3686 = vst.msk [vmem:[#allocation3 + $0xc8] sm:$0xff] %vm408_vm1, %v3654_v50 }
 0x26b   : > { %v3957_v34 = vadd.f32 %v6792_v21, %v3925_v27  ;;  %v3796_v12 = vpop.f32.mrb[73].mxu1 }
 0x26c   : > { %v3955_v6 = vadd.f32 %v3923_v5, %v3796_v12  ;;  %v6793_v56 = vpop.f32.mrb[74].mxu1  ;;  %v3627_v46 = vld [vmem:[#allocation3 + $0xf0] sm:$0xff] }
 0x26d   : > { %v9160_v9 = vpop.f32.mrb[96].mxu0  ;;  %3989 = vst.msk [vmem:[#allocation3 + $0x10] sm:$0xff] %vm408_vm1, %v3957_v34  ;;  %v3958_v11 = vadd.f32 %v6793_v56, %v3926_v41  ;;  %v3799_v57 = vpop.f32.mrb[75].mxu1  ;;  %v3659_v23 = vadd.f32 %v9095_v8, %v3627_v46  ;;  %v3625_v26 = vld [vmem:[#allocation3 + $0xe0] sm:$0xff] }
 0x26e   : > { %v9163_v63 = vpop.f32.mrb[97].mxu0  ;;  %3987 = vst.msk [vmem:[#allocation3] sm:$0xff] %vm408_vm1, %v3955_v6  ;;  %v3956_v24 = vadd.f32 %v3924_v45, %v3799_v57  ;;  %v3657_v55 = vadd.f32 %v3625_v26, %v9098_v47  ;;  %v3628_v36 = vld [vmem:[#allocation3 + $0xf8] sm:$0xff]  ;;  %v3929_v47 = vld [vmem:[#allocation3 + $0x30] sm:$0xff] }
 0x26f   : > { %v9167_v44 = vpop.f32.mrb[98].mxu0  ;;  %3990 = vst.msk [vmem:[#allocation3 + $0x18] sm:$0xff] %vm408_vm1, %v3958_v11  ;;  %3691 = vst.msk [vmem:[#allocation3 + $0xf0] sm:$0xff] %vm408_vm1, %v3659_v23  ;;  %v3660_v49 = vadd.f32 %v9102_v40, %v3628_v36  ;;  %v3626_v58 = vld [vmem:[#allocation3 + $0xe8] sm:$0xff]  ;;  %v3937_v45 = vld [vmem:[#allocation3 + $0x70] sm:$0xff] }
 0x270   : > { %v9171_v17 = vpop.f32.mrb[99].mxu0  ;;  %3988 = vst.msk [vmem:[#allocation3 + $0x8] sm:$0xff] %vm408_vm1, %v3956_v24  ;;  %3689 = vst.msk [vmem:[#allocation3 + $0xe0] sm:$0xff] %vm408_vm1, %v3657_v55  ;;  %v3658_v8 = vadd.f32 %v3626_v58, %v9106_v13  ;;  %v3928_v13 = vld [vmem:[#allocation3 + $0x28] sm:$0xff]  ;;  %v3935_v23 = vld [vmem:[#allocation3 + $0x60] sm:$0xff] }
 0x271   : > { %3692 = vst.msk [vmem:[#allocation3 + $0xf8] sm:$0xff] %vm408_vm1, %v3660_v49  ;;  %v7061_v55 = vld [vmem:[%s9223_s22 + $0x8] sm:$0xff]   ;;  %v3938_v49 = vld [vmem:[#allocation3 + $0x78] sm:$0xff] }
 0x272   : > { %v6796_v38 = vpop.f32.mrb[76].mxu1  ;;  %3690 = vst.msk [vmem:[#allocation3 + $0xe8] sm:$0xff] %vm408_vm1, %v3658_v8 }
 0x273   : > { %v3961_v28 = vadd.f32 %v6796_v38, %v3929_v47  ;;  %v3812_v39 = vpop.f32.mrb[77].mxu1 }
 0x274   : > { %v3959_v4 = vadd.f32 %v3927_v62, %v3812_v39  ;;  %v6797_v33 = vpop.f32.mrb[78].mxu1  ;;  %v4401_v16 = vld [vmem:[#allocation3 + $0x10] sm:$0xff] }
 0x275   : > { %v9180_v40 = vpop.f32.mrb[100].mxu0  ;;  %3993 = vst.msk [vmem:[#allocation3 + $0x30] sm:$0xff] %vm408_vm1, %v3961_v28  ;;  %v3962_v54 = vadd.f32 %v6797_v33, %v3930_v35  ;;  %v3815_v61 = vpop.f32.mrb[79].mxu1  ;;  %v4433_v7 = vadd.f32 %v9115_v20, %v4401_v16  ;;  %v4399_v3 = vld [vmem:[#allocation3] sm:$0xff]  ;;  %v3936_v28 = vld [vmem:[#allocation3 + $0x68] sm:$0xff] }
 0x276   : > { %v9183_v42 = vpop.f32.mrb[101].mxu0  ;;  %3991 = vst.msk [vmem:[#allocation3 + $0x20] sm:$0xff] %vm408_vm1, %v3959_v4  ;;  %v3960_v31 = vadd.f32 %v3928_v13, %v3815_v61  ;;  %v4431_v29 = vadd.f32 %v4399_v3, %v9118_v18  ;;  %v4402_v37 = vld [vmem:[#allocation3 + $0x18] sm:$0xff]  ;;  %v3933_v18 = vld [vmem:[#allocation3 + $0x50] sm:$0xff] }
 0x277   : > { %v9187_v52 = vpop.f32.mrb[102].mxu0  ;;  %3994 = vst.msk [vmem:[#allocation3 + $0x38] sm:$0xff] %vm408_vm1, %v3962_v54  ;;  %4465 = vst.msk [vmem:[#allocation3 + $0x10] sm:$0xff] %vm408_vm1, %v4433_v7  ;;  %v4434_v60 = vadd.f32 %v9122_v19, %v4402_v37  ;;  %v4400_v2 = vld [vmem:[#allocation3 + $0x8] sm:$0xff]  ;;  %v7062_v3 = vld [vmem:[%s9223_s22 + $0x10] sm:$0xff]  }
 0x278   : > { %v9191_v25 = vpop.f32.mrb[103].mxu0  ;;  %3992 = vst.msk [vmem:[#allocation3 + $0x28] sm:$0xff] %vm408_vm1, %v3960_v31  ;;  %4463 = vst.msk [vmem:[#allocation3] sm:$0xff] %vm408_vm1, %v4431_v29  ;;  %v4432_v20 = vadd.f32 %v4400_v2, %v9126_v22  ;;  %v3932_v22 = vld [vmem:[#allocation3 + $0x48] sm:$0xff]  ;;  %v3941_v29 = vld [vmem:[#allocation3 + $0x90] sm:$0xff] }
 0x279   : > { %4466 = vst.msk [vmem:[#allocation3 + $0x18] sm:$0xff] %vm408_vm1, %v4434_v60 }
 0x27a   : > { %v6800_v48 = vpop.f32.mrb[80].mxu1  ;;  %4464 = vst.msk [vmem:[#allocation3 + $0x8] sm:$0xff] %vm408_vm1, %v4432_v20 }
 0x27b   : > { %v3965_v43 = vadd.f32 %v6800_v48, %v3933_v18  ;;  %v3828_v59 = vpop.f32.mrb[81].mxu1  ;;  %v3942_v48 = vld [vmem:[#allocation3 + $0x98] sm:$0xff] }
 0x27c   : > { %v3963_v53 = vadd.f32 %v3931_v32, %v3828_v59  ;;  %v6801_v30 = vpop.f32.mrb[82].mxu1  ;;  %v4405_v10 = vld [vmem:[#allocation3 + $0x30] sm:$0xff]  ;;  %v3940_v32 = vld [vmem:[#allocation3 + $0x88] sm:$0xff] }
 0x27d   : > { %v9200_v19 = vpop.f32.mrb[104].mxu0  ;;  %3997 = vst.msk [vmem:[#allocation3 + $0x50] sm:$0xff] %vm408_vm1, %v3965_v43  ;;  %v3966_v50 = vadd.f32 %v6801_v30, %v3934_v15  ;;  %v3831_v21 = vpop.f32.mrb[83].mxu1  ;;  %v4437_v34 = vadd.f32 %v9140_v51, %v4405_v10  ;;  %v4403_v12 = vld [vmem:[#allocation3 + $0x20] sm:$0xff] }
 0x27e   : > { %v9203_v27 = vpop.f32.mrb[105].mxu0  ;;  %3995 = vst.msk [vmem:[#allocation3 + $0x40] sm:$0xff] %vm408_vm1, %v3963_v53  ;;  %v3964_v5 = vadd.f32 %v3932_v22, %v3831_v21  ;;  %v4435_v56 = vadd.f32 %v4403_v12, %v9143_v0  ;;  %v4406_v41 = vld [vmem:[#allocation3 + $0x38] sm:$0xff] }
 0x27f   : > { %v9207_v6 = vpop.f32.mrb[106].mxu0  ;;  %3998 = vst.msk [vmem:[#allocation3 + $0x58] sm:$0xff] %vm408_vm1, %v3966_v50  ;;  %4469 = vst.msk [vmem:[#allocation3 + $0x30] sm:$0xff] %vm408_vm1, %v4437_v34  ;;  %v4438_v11 = vadd.f32 %v9147_v1, %v4406_v41  ;;  %v4404_v57 = vld [vmem:[#allocation3 + $0x28] sm:$0xff]  ;;  %v7060_v1 = vld [vmem:[%s9223_s22] sm:$0xff]  }
 0x280   : > { %v9211_v46 = vpop.f32.mrb[107].mxu0  ;;  %3996 = vst.msk [vmem:[#allocation3 + $0x48] sm:$0xff] %vm408_vm1, %v3964_v5  ;;  %4467 = vst.msk [vmem:[#allocation3 + $0x20] sm:$0xff] %vm408_vm1, %v4435_v56  ;;  %v4436_v51 = vadd.f32 %v4404_v57, %v9151_v14  ;;  %6960 = vmatprep.mubr.msk.bf16.mxu0 %vm408_vm1, %v7060_v1  ;;  %v3943_v57 = vld [vmem:[#allocation3 + $0xa0] sm:$0xff] }
 0x281   : > { %4470 = vst.msk [vmem:[#allocation3 + $0x38] sm:$0xff] %vm408_vm1, %v4438_v11  ;;  %6961 = vmatmul.mubr.msk.bf16.vlgmr.msra.gmra.mrb[152].mxu0 %vm408_vm1, %v7061_v55 }
 0x282   : > { %v6804_v0 = vpop.f32.mrb[84].mxu1  ;;  %4468 = vst.msk [vmem:[#allocation3 + $0x28] sm:$0xff] %vm408_vm1, %v4436_v51  ;;  %6964 = vmatprep.mubr.msk.bf16.mxu0 %vm408_vm1, %v7062_v3  ;;  %v3950_v3 = vld [vmem:[#allocation3 + $0xd8] sm:$0xff] }
 0x283   : > { %v3969_v26 = vadd.f32 %v6804_v0, %v3937_v45  ;;  %v3844_v24 = vpop.f32.mrb[85].mxu1 }
 0x284   : > { %v3967_v14 = vadd.f32 %v3935_v23, %v3844_v24  ;;  %v6805_v36 = vpop.f32.mrb[86].mxu1  ;;  %v4409_v8 = vld [vmem:[#allocation3 + $0x50] sm:$0xff]  ;;  %v3946_v23 = vld [vmem:[#allocation3 + $0xb8] sm:$0xff] }
 0x285   : > { %v9228_v58 = vpop.f32.mrb[108].mxu0  ;;  %4001 = vst.msk [vmem:[#allocation3 + $0x70] sm:$0xff] %vm408_vm1, %v3969_v26  ;;  %v3970_v38 = vadd.f32 %v6805_v36, %v3938_v49  ;;  %v3847_v47 = vpop.f32.mrb[87].mxu1  ;;  %v4441_v62 = vadd.f32 %v9160_v9, %v4409_v8  ;;  %v4407_v4 = vld [vmem:[#allocation3 + $0x40] sm:$0xff] }
 0x286   : > { %v9232_v39 = vpop.f32.mrb[109].mxu0  ;;  %3999 = vst.msk [vmem:[#allocation3 + $0x60] sm:$0xff] %vm408_vm1, %v3967_v14  ;;  %v3968_v33 = vadd.f32 %v3936_v28, %v3847_v47  ;;  %v4439_v16 = vadd.f32 %v4407_v4, %v9163_v63  ;;  %v4410_v54 = vld [vmem:[#allocation3 + $0x58] sm:$0xff]  ;;  %v5846_v47 = vld [vmem:[%s9625_s7] sm:$0x3] }
 0x287   : > { %v9237_v35 = vpop.f32.mrb[110].mxu0  ;;  %4002 = vst.msk [vmem:[#allocation3 + $0x78] sm:$0xff] %vm408_vm1, %v3970_v38  ;;  %4473 = vst.msk [vmem:[#allocation3 + $0x50] sm:$0xff] %vm408_vm1, %v4441_v62  ;;  %v4442_v9 = vadd.f32 %v9167_v44, %v4410_v54  ;;  %v4408_v13 = vld [vmem:[#allocation3 + $0x48] sm:$0xff]  ;;  %v7063_v63 = vld [vmem:[%s9223_s22 + $0x18] sm:$0xff]   ;;  %7000 = vmatprep.subr.msk.bf16.mxu0 %vm9898_vm2, %v5846_v47  ;;  %v5961_v4 = vsel %vm9899_vm7, %v5846_v47, 0 }
 0x288   : > { %v9241_v61 = vpop.f32.mrb[111].mxu0  ;;  %4000 = vst.msk [vmem:[#allocation3 + $0x68] sm:$0xff] %vm408_vm1, %v3968_v33  ;;  %4471 = vst.msk [vmem:[#allocation3 + $0x40] sm:$0xff] %vm408_vm1, %v4439_v16  ;;  %v4440_v7 = vadd.f32 %v4408_v13, %v9171_v17  ;;  %v3939_v44 = vld [vmem:[#allocation3 + $0x80] sm:$0xff]  ;;  %6969 = vmatpush3.bf16.msra.mxu0 %v5961_v4  ;;  %v3949_v16 = vld [vmem:[#allocation3 + $0xd0] sm:$0xff]  ;;  %s6176_s22 = sshll.u32 %s392_s14, 5 }
 0x289   : > { %4474 = vst.msk [vmem:[#allocation3 + $0x58] sm:$0xff] %vm408_vm1, %v4442_v9  ;;  %6965 = vmatmul.mubr.msk.bf16.gmra.mrb[156].mxu0 %vm408_vm1, %v7063_v63  ;;  %v3947_v9 = vld [vmem:[#allocation3 + $0xc0] sm:$0xff]  ;;  %s394_s12 = scalar_lea.vmem [#allocation4], %s6176_s22  ;;  %s7068_s22 = sshll.u32 %s7130_s16, 4  ;;  %s7069_s22 = int_to_ptr.vmem [resolvable:$false] %s7068_s22 }
 0x28a   : > { %v6808_v31 = vpop.f32.mrb[88].mxu1  ;;  %4472 = vst.msk [vmem:[#allocation3 + $0x48] sm:$0xff] %vm408_vm1, %v4440_v7  ;;  %s6098_s25 = sshll.u32 %s394_s12, 4  ;;  %s7070_s24 = scalar_lea.vmem %s7069_s22, 1024  ;;  %s9570_s25 = int_to_ptr.vmem [resolvable:$true] %s6098_s25 }
 0x28b   : > { %v3973_v37 = vadd.f32 %v6808_v31, %v3941_v29  ;;  %v3860_v60 = vpop.f32.mrb[89].mxu1  ;;  %s7064_s15 = scalar_lea.vmem %s9570_s25, 512  ;;  %p7071_p0 = scmp.lt.s32.totalorder %s9570_s25, %s7069_s22 }
 0x28c   : > { %v3971_v2 = vadd.f32 %v3939_v44, %v3860_v60  ;;  %v6809_v20 = vpop.f32.mrb[90].mxu1  ;;  %v4413_v43 = vld [vmem:[#allocation3 + $0x70] sm:$0xff]  ;;  %p7065_p11 = scmp.ne.s32.totalorder %s9570_s25, %s7064_s15  ;;  %p7072_p1 = scmp.lt.s32.totalorder %s7070_s24, %s7064_s15 }
 0x28d   : > { %v9253_v18 = vpop.f32.mrb[112].mxu0  ;;  %4005 = vst.msk [vmem:[#allocation3 + $0x90] sm:$0xff] %vm408_vm1, %v3973_v37  ;;  %v3974_v17 = vadd.f32 %v6809_v20, %v3942_v48  ;;  %v3863_v59 = vpop.f32.mrb[91].mxu1  ;;  %v4445_v30 = vadd.f32 %v9180_v40, %v4413_v43  ;;  %v4411_v15 = vld [vmem:[#allocation3 + $0x60] sm:$0xff]  ;;  %v3948_v37 = vld [vmem:[#allocation3 + $0xc8] sm:$0xff] }
 0x28e   : > { %v9256_v53 = vpop.f32.mrb[113].mxu0  ;;  %4003 = vst.msk [vmem:[#allocation3 + $0x80] sm:$0xff] %vm408_vm1, %v3971_v2  ;;  %v3972_v10 = vadd.f32 %v3940_v32, %v3863_v59  ;;  %v4443_v21 = vadd.f32 %v4411_v15, %v9183_v42  ;;  %v4414_v22 = vld [vmem:[#allocation3 + $0x78] sm:$0xff]  ;;  %v3945_v42 = vld [vmem:[#allocation3 + $0xb0] sm:$0xff]  ;;  %p7066_p12 = pnand %p7065_p11, %p7231_p5  ;;  %p7073_p2 = por %p7072_p1, %p7071_p0 }
 0x28f   : > { %v9261_v50 = vpop.f32.mrb[114].mxu0  ;;  %4006 = vst.msk [vmem:[#allocation3 + $0x98] sm:$0xff] %vm408_vm1, %v3974_v17  ;;  %4477 = vst.msk [vmem:[#allocation3 + $0x70] sm:$0xff] %vm408_vm1, %v4445_v30  ;;  %v4446_v12 = vadd.f32 %v9187_v52, %v4414_v22  ;;  %v4412_v40 = vld [vmem:[#allocation3 + $0x68] sm:$0xff]  ;;  %v3951_v22 = vld [vmem:[#allocation3 + $0xe0] sm:$0xff] }
 0x290   : > { %v9265_v34 = vpop.f32.mrb[115].mxu0  ;;  %4004 = vst.msk [vmem:[#allocation3 + $0x88] sm:$0xff] %vm408_vm1, %v3972_v10  ;;  %4475 = vst.msk [vmem:[#allocation3 + $0x60] sm:$0xff] %vm408_vm1, %v4443_v21  ;;  %v4444_v5 = vadd.f32 %v4412_v40, %v9191_v25  ;;  %v3944_v25 = vld [vmem:[#allocation3 + $0xa8] sm:$0xff]  ;;  %p7067_p13 = pneg %p7066_p12 }
 0x291   : > { %4478 = vst.msk [vmem:[#allocation3 + $0x78] sm:$0xff] %vm408_vm1, %v4446_v12 }
 0x292   : > { %v6812_v56 = vpop.f32.mrb[92].mxu1  ;;  %4476 = vst.msk [vmem:[#allocation3 + $0x68] sm:$0xff] %vm408_vm1, %v4444_v5  ;;  %v3954_v5 = vld [vmem:[#allocation3 + $0xf8] sm:$0xff]  ;;  %p7074_p3 = pnand %p7073_p2, %p7067_p13 }
 0x293   : > { %v3977_v41 = vadd.f32 %v6812_v56, %v3945_v42  ;;  %v3876_v11 = vpop.f32.mrb[93].mxu1 }
 0x294   : > { %v3975_v51 = vadd.f32 %v3943_v57, %v3876_v11  ;;  %v6813_v45 = vpop.f32.mrb[94].mxu1  ;;  %v4417_v0 = vld [vmem:[#allocation3 + $0x90] sm:$0xff] }
 0x295   : > { %v9274_v52 = vpop.f32.mrb[116].mxu0  ;;  %4009 = vst.msk [vmem:[#allocation3 + $0xb0] sm:$0xff] %vm408_vm1, %v3977_v41  ;;  %v3978_v1 = vadd.f32 %v6813_v45, %v3946_v23  ;;  %v3879_v26 = vpop.f32.mrb[95].mxu1  ;;  %v4449_v55 = vadd.f32 %v9200_v19, %v4417_v0  ;;  %v4415_v14 = vld [vmem:[#allocation3 + $0x80] sm:$0xff] }
 0x296   : > { %v9277_v24 = vpop.f32.mrb[117].mxu0  ;;  %4007 = vst.msk [vmem:[#allocation3 + $0xa0] sm:$0xff] %vm408_vm1, %v3975_v51  ;;  %v3976_v36 = vadd.f32 %v3944_v25, %v3879_v26  ;;  %v4447_v8 = vadd.f32 %v4415_v14, %v9203_v27  ;;  %v4418_v38 = vld [vmem:[#allocation3 + $0x98] sm:$0xff] }
 0x297   : > { %v9281_v49 = vpop.f32.mrb[118].mxu0  ;;  %4010 = vst.msk [vmem:[#allocation3 + $0xb8] sm:$0xff] %vm408_vm1, %v3978_v1  ;;  %4481 = vst.msk [vmem:[#allocation3 + $0x90] sm:$0xff] %vm408_vm1, %v4449_v55  ;;  %v4450_v19 = vadd.f32 %v9207_v6, %v4418_v38  ;;  %v4416_v62 = vld [vmem:[#allocation3 + $0x88] sm:$0xff]  ;;  %v4875_v38 = vld [vmem:[#allocation3] sm:$0xff] }
 0x298   : > { %v9288_v28 = vpop.f32.mrb[119].mxu0  ;;  %4008 = vst.msk [vmem:[#allocation3 + $0xa8] sm:$0xff] %vm408_vm1, %v3976_v36  ;;  %4479 = vst.msk [vmem:[#allocation3 + $0x80] sm:$0xff] %vm408_vm1, %v4447_v8  ;;  %v4448_v27 = vadd.f32 %v4416_v62, %v9211_v46  ;;  %v4878_v62 = vld [vmem:[#allocation3 + $0x18] sm:$0xff] }
 0x299   : > { %4482 = vst.msk [vmem:[#allocation3 + $0x98] sm:$0xff] %vm408_vm1, %v4450_v19 }
 0x29a   : > { %v6816_v33 = vpop.f32.mrb[96].mxu1  ;;  %4480 = vst.msk [vmem:[#allocation3 + $0x88] sm:$0xff] %vm408_vm1, %v4448_v27 }
 0x29b   : > { %v3981_v54 = vadd.f32 %v6816_v33, %v3949_v16  ;;  %v3892_v6 = vpop.f32.mrb[97].mxu1 }
 0x29c   : > { %v3979_v13 = vadd.f32 %v3947_v9, %v3892_v6  ;;  %v6817_v7 = vpop.f32.mrb[98].mxu1  ;;  %v4421_v31 = vld [vmem:[#allocation3 + $0xb0] sm:$0xff] }
 0x29d   : > { %v9299_v63 = vpop.f32.mrb[120].mxu0  ;;  %4013 = vst.msk [vmem:[#allocation3 + $0xd0] sm:$0xff] %vm408_vm1, %v3981_v54  ;;  %v3982_v29 = vadd.f32 %v6817_v7, %v3950_v3  ;;  %v3895_v46 = vpop.f32.mrb[99].mxu1  ;;  %v4453_v44 = vadd.f32 %v9228_v58, %v4421_v31  ;;  %v4419_v2 = vld [vmem:[#allocation3 + $0xa0] sm:$0xff] }
 0x29e   : > { %v9302_v60 = vpop.f32.mrb[121].mxu0  ;;  %4011 = vst.msk [vmem:[#allocation3 + $0xc0] sm:$0xff] %vm408_vm1, %v3979_v13  ;;  %v3980_v20 = vadd.f32 %v3948_v37, %v3895_v46  ;;  %v4451_v43 = vadd.f32 %v4419_v2, %v9232_v39  ;;  %v4422_v17 = vld [vmem:[#allocation3 + $0xb8] sm:$0xff]  ;;  %v3953_v39 = vld [vmem:[#allocation3 + $0xf0] sm:$0xff] }
 0x29f   : > { %v9306_v48 = vpop.f32.mrb[122].mxu0  ;;  %4014 = vst.msk [vmem:[#allocation3 + $0xd8] sm:$0xff] %vm408_vm1, %v3982_v29  ;;  %4485 = vst.msk [vmem:[#allocation3 + $0xb0] sm:$0xff] %vm408_vm1, %v4453_v44  ;;  %v4454_v32 = vadd.f32 %v9237_v35, %v4422_v17  ;;  %v4420_v30 = vld [vmem:[#allocation3 + $0xa8] sm:$0xff] }
 0x2a0   : > { %v9310_v59 = vpop.f32.mrb[123].mxu0  ;;  %4012 = vst.msk [vmem:[#allocation3 + $0xc8] sm:$0xff] %vm408_vm1, %v3980_v20  ;;  %4483 = vst.msk [vmem:[#allocation3 + $0xa0] sm:$0xff] %vm408_vm1, %v4451_v43  ;;  %v4452_v58 = vadd.f32 %v4420_v30, %v9241_v61  ;;  %v3952_v61 = vld [vmem:[#allocation3 + $0xe8] sm:$0xff]  ;;  %v4879_v20 = vld [vmem:[#allocation3 + $0x20] sm:$0xff] }
 0x2a1   : > { %4486 = vst.msk [vmem:[#allocation3 + $0xb8] sm:$0xff] %vm408_vm1, %v4454_v32  ;;  %v4882_v32 = vld [vmem:[#allocation3 + $0x38] sm:$0xff] }
 0x2a2   : > { %v6820_v15 = vpop.f32.mrb[100].mxu1  ;;  %4484 = vst.msk [vmem:[#allocation3 + $0xa8] sm:$0xff] %vm408_vm1, %v4452_v58 }
 0x2a3   : > { %v3985_v10 = vadd.f32 %v6820_v15, %v3953_v39  ;;  %v3908_v21 = vpop.f32.mrb[101].mxu1 }
 0x2a4   : > { %v3983_v12 = vadd.f32 %v3951_v22, %v3908_v21  ;;  %v6821_v40 = vpop.f32.mrb[102].mxu1  ;;  %v4425_v56 = vld [vmem:[#allocation3 + $0xd0] sm:$0xff] }
 0x2a5   : > { %v9319_v35 = vpop.f32.mrb[124].mxu0  ;;  %4017 = vst.msk [vmem:[#allocation3 + $0xf0] sm:$0xff] %vm408_vm1, %v3985_v10  ;;  %v3986_v42 = vadd.f32 %v6821_v40, %v3954_v5  ;;  %v3911_v41 = vpop.f32.mrb[103].mxu1  ;;  %v4457_v57 = vadd.f32 %v9253_v18, %v4425_v56  ;;  %v4423_v51 = vld [vmem:[#allocation3 + $0xc0] sm:$0xff] }
 0x2a6   : > { %v9322_v11 = vpop.f32.mrb[125].mxu0  ;;  %4015 = vst.msk [vmem:[#allocation3 + $0xe0] sm:$0xff] %vm408_vm1, %v3983_v12  ;;  %v3984_v45 = vadd.f32 %v3952_v61, %v3911_v41  ;;  %v4455_v0 = vadd.f32 %v4423_v51, %v9256_v53  ;;  %v4426_v1 = vld [vmem:[#allocation3 + $0xd8] sm:$0xff]  ;;  %v4877_v53 = vld [vmem:[#allocation3 + $0x10] sm:$0xff] }
 0x2a7   : > { %v9326_v23 = vpop.f32.mrb[126].mxu0  ;;  %4018 = vst.msk [vmem:[#allocation3 + $0xf8] sm:$0xff] %vm408_vm1, %v3986_v42  ;;  %4489 = vst.msk [vmem:[#allocation3 + $0xd0] sm:$0xff] %vm408_vm1, %v4457_v57  ;;  %v4458_v25 = vadd.f32 %v9261_v50, %v4426_v1  ;;  %v4424_v55 = vld [vmem:[#allocation3 + $0xc8] sm:$0xff] }
 0x2a8   : > { %v9330_v26 = vpop.f32.mrb[127].mxu0  ;;  %4016 = vst.msk [vmem:[#allocation3 + $0xe8] sm:$0xff] %vm408_vm1, %v3984_v45  ;;  %4487 = vst.msk [vmem:[#allocation3 + $0xc0] sm:$0xff] %vm408_vm1, %v4455_v0  ;;  %v4456_v18 = vadd.f32 %v4424_v55, %v9265_v34  ;;  %v4876_v34 = vld [vmem:[#allocation3 + $0x8] sm:$0xff]  ;;  %v4883_v45 = vld [vmem:[#allocation3 + $0x40] sm:$0xff] }
 0x2a9   : > { %4490 = vst.msk [vmem:[#allocation3 + $0xd8] sm:$0xff] %vm408_vm1, %v4458_v25  ;;  %v4886_v25 = vld [vmem:[#allocation3 + $0x58] sm:$0xff] }
 0x2aa   : > { %v6860_v14 = vpop.f32.mrb[104].mxu1  ;;  %4488 = vst.msk [vmem:[#allocation3 + $0xc8] sm:$0xff] %vm408_vm1, %v4456_v18 }
 0x2ab   : > { %v4909_v36 = vadd.f32 %v6860_v14, %v4877_v53  ;;  %v4748_v8 = vpop.f32.mrb[105].mxu1 }
 0x2ac   : > { %v4907_v47 = vadd.f32 %v4875_v38, %v4748_v8  ;;  %v6861_v19 = vpop.f32.mrb[106].mxu1  ;;  %v4429_v4 = vld [vmem:[#allocation3 + $0xf0] sm:$0xff] }
 0x2ad   : > { %v9339_v50 = vpop.f32.mrb[128].mxu0  ;;  %4941 = vst.msk [vmem:[#allocation3 + $0x10] sm:$0xff] %vm408_vm1, %v4909_v36  ;;  %v4910_v27 = vadd.f32 %v6861_v19, %v4878_v62  ;;  %v4751_v33 = vpop.f32.mrb[107].mxu1  ;;  %v4461_v54 = vadd.f32 %v9274_v52, %v4429_v4  ;;  %v4427_v6 = vld [vmem:[#allocation3 + $0xe0] sm:$0xff] }
 0x2ae   : > { %v9342_v16 = vpop.f32.mrb[129].mxu0  ;;  %4939 = vst.msk [vmem:[#allocation3] sm:$0xff] %vm408_vm1, %v4907_v47  ;;  %v4908_v9 = vadd.f32 %v4876_v34, %v4751_v33  ;;  %v4459_v7 = vadd.f32 %v4427_v6, %v9277_v24  ;;  %v4430_v3 = vld [vmem:[#allocation3 + $0xf8] sm:$0xff]  ;;  %v4881_v24 = vld [vmem:[#allocation3 + $0x30] sm:$0xff] }
 0x2af   : > { %v9346_v13 = vpop.f32.mrb[130].mxu0  ;;  %4942 = vst.msk [vmem:[#allocation3 + $0x18] sm:$0xff] %vm408_vm1, %v4910_v27  ;;  %4493 = vst.msk [vmem:[#allocation3 + $0xf0] sm:$0xff] %vm408_vm1, %v4461_v54  ;;  %v4462_v29 = vadd.f32 %v9281_v49, %v4430_v3  ;;  %v4428_v46 = vld [vmem:[#allocation3 + $0xe8] sm:$0xff] }
 0x2b0   : > { %v9350_v31 = vpop.f32.mrb[131].mxu0  ;;  %4940 = vst.msk [vmem:[#allocation3 + $0x8] sm:$0xff] %vm408_vm1, %v4908_v9  ;;  %4491 = vst.msk [vmem:[#allocation3 + $0xe0] sm:$0xff] %vm408_vm1, %v4459_v7  ;;  %v4460_v52 = vadd.f32 %v4428_v46, %v9288_v28  ;;  %v4880_v28 = vld [vmem:[#allocation3 + $0x28] sm:$0xff]  ;;  %v4887_v9 = vld [vmem:[#allocation3 + $0x60] sm:$0xff] }
 0x2b1   : > { %4494 = vst.msk [vmem:[#allocation3 + $0xf8] sm:$0xff] %vm408_vm1, %v4462_v29  ;;  %v4890_v29 = vld [vmem:[#allocation3 + $0x78] sm:$0xff] }
 0x2b2   : > { %v6864_v37 = vpop.f32.mrb[108].mxu1  ;;  %4492 = vst.msk [vmem:[#allocation3 + $0xe8] sm:$0xff] %vm408_vm1, %v4460_v52 }
 0x2b3   : > { %v4913_v44 = vadd.f32 %v6864_v37, %v4881_v24  ;;  %v4764_v2 = vpop.f32.mrb[109].mxu1 }
 0x2b4   : > { %v4911_v43 = vadd.f32 %v4879_v20, %v4764_v2  ;;  %v6865_v17 = vpop.f32.mrb[110].mxu1  ;;  %v5203_v30 = vld [vmem:[#allocation3 + $0x10] sm:$0xff] }
 0x2b5   : > { %v9359_v49 = vpop.f32.mrb[132].mxu0  ;;  %4945 = vst.msk [vmem:[#allocation3 + $0x30] sm:$0xff] %vm408_vm1, %v4913_v44  ;;  %v4914_v58 = vadd.f32 %v6865_v17, %v4882_v32  ;;  %v4767_v15 = vpop.f32.mrb[111].mxu1  ;;  %v5235_v10 = vadd.f32 %v9299_v63, %v5203_v30  ;;  %v5201_v21 = vld [vmem:[#allocation3] sm:$0xff] }
 0x2b6   : > { %v9362_v39 = vpop.f32.mrb[133].mxu0  ;;  %4943 = vst.msk [vmem:[#allocation3 + $0x20] sm:$0xff] %vm408_vm1, %v4911_v43  ;;  %v4912_v22 = vadd.f32 %v4880_v28, %v4767_v15  ;;  %v5233_v40 = vadd.f32 %v5201_v21, %v9302_v60  ;;  %v5204_v5 = vld [vmem:[#allocation3 + $0x18] sm:$0xff]  ;;  %v4885_v60 = vld [vmem:[#allocation3 + $0x50] sm:$0xff] }
 0x2b7   : > { %v9366_v12 = vpop.f32.mrb[134].mxu0  ;;  %4946 = vst.msk [vmem:[#allocation3 + $0x38] sm:$0xff] %vm408_vm1, %v4914_v58  ;;  %5267 = vst.msk [vmem:[#allocation3 + $0x10] sm:$0xff] %vm408_vm1, %v5235_v10  ;;  %v5236_v42 = vadd.f32 %v9306_v48, %v5204_v5  ;;  %v5202_v41 = vld [vmem:[#allocation3 + $0x8] sm:$0xff] }
 0x2b8   : > { %v9370_v56 = vpop.f32.mrb[135].mxu0  ;;  %4944 = vst.msk [vmem:[#allocation3 + $0x28] sm:$0xff] %vm408_vm1, %v4912_v22  ;;  %5265 = vst.msk [vmem:[#allocation3] sm:$0xff] %vm408_vm1, %v5233_v40  ;;  %v5234_v63 = vadd.f32 %v5202_v41, %v9310_v59  ;;  %v4884_v59 = vld [vmem:[#allocation3 + $0x48] sm:$0xff]  ;;  %v4891_v22 = vld [vmem:[#allocation3 + $0x80] sm:$0xff] }
 0x2b9   : > { %5268 = vst.msk [vmem:[#allocation3 + $0x18] sm:$0xff] %vm408_vm1, %v5236_v42  ;;  %v4894_v42 = vld [vmem:[#allocation3 + $0x98] sm:$0xff] }
 0x2ba   : > { %v6868_v61 = vpop.f32.mrb[112].mxu1  ;;  %5266 = vst.msk [vmem:[#allocation3 + $0x8] sm:$0xff] %vm408_vm1, %v5234_v63 }
 0x2bb   : > { %v4917_v57 = vadd.f32 %v6868_v61, %v4885_v60  ;;  %v4780_v51 = vpop.f32.mrb[113].mxu1 }
 0x2bc   : > { %v4915_v0 = vadd.f32 %v4883_v45, %v4780_v51  ;;  %v6869_v1 = vpop.f32.mrb[114].mxu1  ;;  %v5207_v55 = vld [vmem:[#allocation3 + $0x30] sm:$0xff] }
 0x2bd   : > { %v9379_v48 = vpop.f32.mrb[136].mxu0  ;;  %4949 = vst.msk [vmem:[#allocation3 + $0x50] sm:$0xff] %vm408_vm1, %v4917_v57  ;;  %v4918_v18 = vadd.f32 %v6869_v1, %v4886_v25  ;;  %v4783_v14 = vpop.f32.mrb[115].mxu1  ;;  %v5239_v36 = vadd.f32 %v9319_v35, %v5207_v55  ;;  %v5205_v8 = vld [vmem:[#allocation3 + $0x20] sm:$0xff] }
 0x2be   : > { %v9382_v53 = vpop.f32.mrb[137].mxu0  ;;  %4947 = vst.msk [vmem:[#allocation3 + $0x40] sm:$0xff] %vm408_vm1, %v4915_v0  ;;  %v4916_v38 = vadd.f32 %v4884_v59, %v4783_v14  ;;  %v5237_v19 = vadd.f32 %v5205_v8, %v9322_v11  ;;  %v5208_v62 = vld [vmem:[#allocation3 + $0x38] sm:$0xff]  ;;  %v4889_v11 = vld [vmem:[#allocation3 + $0x70] sm:$0xff] }
 0x2bf   : > { %v9386_v47 = vpop.f32.mrb[138].mxu0  ;;  %4950 = vst.msk [vmem:[#allocation3 + $0x58] sm:$0xff] %vm408_vm1, %v4918_v18  ;;  %5271 = vst.msk [vmem:[#allocation3 + $0x30] sm:$0xff] %vm408_vm1, %v5239_v36  ;;  %v5240_v27 = vadd.f32 %v9326_v23, %v5208_v62  ;;  %v5206_v33 = vld [vmem:[#allocation3 + $0x28] sm:$0xff] }
 0x2c0   : > { %v9390_v4 = vpop.f32.mrb[139].mxu0  ;;  %4948 = vst.msk [vmem:[#allocation3 + $0x48] sm:$0xff] %vm408_vm1, %v4916_v38  ;;  %5269 = vst.msk [vmem:[#allocation3 + $0x20] sm:$0xff] %vm408_vm1, %v5237_v19  ;;  %v5238_v35 = vadd.f32 %v5206_v33, %v9330_v26  ;;  %v4888_v26 = vld [vmem:[#allocation3 + $0x68] sm:$0xff]  ;;  %v4895_v38 = vld [vmem:[#allocation3 + $0xa0] sm:$0xff] }
 0x2c1   : > { %5272 = vst.msk [vmem:[#allocation3 + $0x38] sm:$0xff] %vm408_vm1, %v5240_v27  ;;  %v4898_v27 = vld [vmem:[#allocation3 + $0xb8] sm:$0xff] }
 0x2c2   : > { %v6872_v34 = vpop.f32.mrb[116].mxu1  ;;  %5270 = vst.msk [vmem:[#allocation3 + $0x28] sm:$0xff] %vm408_vm1, %v5238_v35 }
 0x2c3   : > { %v4921_v54 = vadd.f32 %v6872_v34, %v4889_v11  ;;  %v4796_v6 = vpop.f32.mrb[117].mxu1 }
 0x2c4   : > { %v4919_v7 = vadd.f32 %v4887_v9, %v4796_v6  ;;  %v6873_v3 = vpop.f32.mrb[118].mxu1  ;;  %v5211_v46 = vld [vmem:[#allocation3 + $0x50] sm:$0xff] }
 0x2c5   : > { %v9399_v23 = vpop.f32.mrb[140].mxu0  ;;  %4953 = vst.msk [vmem:[#allocation3 + $0x70] sm:$0xff] %vm408_vm1, %v4921_v54  ;;  %v4922_v52 = vadd.f32 %v6873_v3, %v4890_v29  ;;  %v4799_v37 = vpop.f32.mrb[119].mxu1  ;;  %v5243_v44 = vadd.f32 %v9339_v50, %v5211_v46  ;;  %v5209_v2 = vld [vmem:[#allocation3 + $0x40] sm:$0xff] }
 0x2c6   : > { %v9402_v24 = vpop.f32.mrb[141].mxu0  ;;  %4951 = vst.msk [vmem:[#allocation3 + $0x60] sm:$0xff] %vm408_vm1, %v4919_v7  ;;  %v4920_v20 = vadd.f32 %v4888_v26, %v4799_v37  ;;  %v5241_v17 = vadd.f32 %v5209_v2, %v9342_v16  ;;  %v5212_v32 = vld [vmem:[#allocation3 + $0x58] sm:$0xff]  ;;  %v4893_v16 = vld [vmem:[#allocation3 + $0x90] sm:$0xff] }
 0x2c7   : > { %v9406_v43 = vpop.f32.mrb[142].mxu0  ;;  %4954 = vst.msk [vmem:[#allocation3 + $0x78] sm:$0xff] %vm408_vm1, %v4922_v52  ;;  %5275 = vst.msk [vmem:[#allocation3 + $0x50] sm:$0xff] %vm408_vm1, %v5243_v44  ;;  %v5244_v58 = vadd.f32 %v9346_v13, %v5212_v32  ;;  %v5210_v15 = vld [vmem:[#allocation3 + $0x48] sm:$0xff] }
 0x2c8   : > { %v9410_v30 = vpop.f32.mrb[143].mxu0  ;;  %4952 = vst.msk [vmem:[#allocation3 + $0x68] sm:$0xff] %vm408_vm1, %v4920_v20  ;;  %5273 = vst.msk [vmem:[#allocation3 + $0x40] sm:$0xff] %vm408_vm1, %v5241_v17  ;;  %v5242_v50 = vadd.f32 %v5210_v15, %v9350_v31  ;;  %v4892_v31 = vld [vmem:[#allocation3 + $0x88] sm:$0xff]  ;;  %v4899_v20 = vld [vmem:[#allocation3 + $0xc0] sm:$0xff] }
 0x2c9   : > { %5276 = vst.msk [vmem:[#allocation3 + $0x58] sm:$0xff] %vm408_vm1, %v5244_v58  ;;  %v4902_v58 = vld [vmem:[#allocation3 + $0xd8] sm:$0xff] }
 0x2ca   : > { %v6876_v28 = vpop.f32.mrb[120].mxu1  ;;  %5274 = vst.msk [vmem:[#allocation3 + $0x48] sm:$0xff] %vm408_vm1, %v5242_v50 }
 0x2cb   : > { %v4925_v10 = vadd.f32 %v6876_v28, %v4893_v16  ;;  %v4812_v21 = vpop.f32.mrb[121].mxu1  ;;  %v4900_v28 = vld [vmem:[#allocation3 + $0xc8] sm:$0xff] }
 0x2cc   : > { %v4923_v40 = vadd.f32 %v4891_v22, %v4812_v21  ;;  %v6877_v5 = vpop.f32.mrb[122].mxu1  ;;  %v5215_v41 = vld [vmem:[#allocation3 + $0x70] sm:$0xff] }
 0x2cd   : > { %v9419_v13 = vpop.f32.mrb[144].mxu0  ;;  %4957 = vst.msk [vmem:[#allocation3 + $0x90] sm:$0xff] %vm408_vm1, %v4925_v10  ;;  %v4926_v63 = vadd.f32 %v6877_v5, %v4894_v42  ;;  %v4815_v61 = vpop.f32.mrb[123].mxu1  ;;  %v5247_v57 = vadd.f32 %v9359_v49, %v5215_v41  ;;  %v5213_v51 = vld [vmem:[#allocation3 + $0x60] sm:$0xff]  ;;  %v4905_v41 = vld [vmem:[#allocation3 + $0xf0] sm:$0xff] }
 0x2ce   : > { %v9422_v60 = vpop.f32.mrb[145].mxu0  ;;  %4955 = vst.msk [vmem:[#allocation3 + $0x80] sm:$0xff] %vm408_vm1, %v4923_v40  ;;  %v4924_v45 = vadd.f32 %v4892_v31, %v4815_v61  ;;  %v5245_v1 = vadd.f32 %v5213_v51, %v9362_v39  ;;  %v5216_v25 = vld [vmem:[#allocation3 + $0x78] sm:$0xff]  ;;  %v4897_v39 = vld [vmem:[#allocation3 + $0xb0] sm:$0xff]  ;;  %v4903_v61 = vld [vmem:[#allocation3 + $0xe0] sm:$0xff] }
 0x2cf   : > { %v9426_v0 = vpop.f32.mrb[146].mxu0  ;;  %4958 = vst.msk [vmem:[#allocation3 + $0x98] sm:$0xff] %vm408_vm1, %v4926_v63  ;;  %5279 = vst.msk [vmem:[#allocation3 + $0x70] sm:$0xff] %vm408_vm1, %v5247_v57  ;;  %v5248_v18 = vadd.f32 %v9366_v12, %v5216_v25  ;;  %v5214_v14 = vld [vmem:[#allocation3 + $0x68] sm:$0xff]  ;;  %v4906_v51 = vld [vmem:[#allocation3 + $0xf8] sm:$0xff] }
 0x2d0   : > { %v9430_v55 = vpop.f32.mrb[147].mxu0  ;;  %4956 = vst.msk [vmem:[#allocation3 + $0x88] sm:$0xff] %vm408_vm1, %v4924_v45  ;;  %5277 = vst.msk [vmem:[#allocation3 + $0x60] sm:$0xff] %vm408_vm1, %v5245_v1  ;;  %v5246_v49 = vadd.f32 %v5214_v14, %v9370_v56  ;;  %v4896_v56 = vld [vmem:[#allocation3 + $0xa8] sm:$0xff] }
 0x2d1   : > { %5280 = vst.msk [vmem:[#allocation3 + $0x78] sm:$0xff] %vm408_vm1, %v5248_v18  ;;  %v4904_v25 = vld [vmem:[#allocation3 + $0xe8] sm:$0xff] }
 0x2d2   : > { %v6880_v59 = vpop.f32.mrb[124].mxu1  ;;  %5278 = vst.msk [vmem:[#allocation3 + $0x68] sm:$0xff] %vm408_vm1, %v5246_v49 }
 0x2d3   : > { %v4929_v36 = vadd.f32 %v6880_v59, %v4897_v39  ;;  %v4828_v8 = vpop.f32.mrb[125].mxu1 }
 0x2d4   : > { %v4927_v19 = vadd.f32 %v4895_v38, %v4828_v8  ;;  %v6881_v62 = vpop.f32.mrb[126].mxu1  ;;  %v5219_v33 = vld [vmem:[#allocation3 + $0x90] sm:$0xff] }
 0x2d5   : > { %v9439_v12 = vpop.f32.mrb[148].mxu0  ;;  %4961 = vst.msk [vmem:[#allocation3 + $0xb0] sm:$0xff] %vm408_vm1, %v4929_v36  ;;  %v4930_v35 = vadd.f32 %v6881_v62, %v4898_v27  ;;  %v4831_v34 = vpop.f32.mrb[127].mxu1  ;;  %v5251_v54 = vadd.f32 %v9379_v48, %v5219_v33  ;;  %v5217_v6 = vld [vmem:[#allocation3 + $0x80] sm:$0xff]  ;;  %v5679_v38 = vld [vmem:[#allocation3 + $0x10] sm:$0xff] }
 0x2d6   : > { %v9442_v11 = vpop.f32.mrb[149].mxu0  ;;  %4959 = vst.msk [vmem:[#allocation3 + $0xa0] sm:$0xff] %vm408_vm1, %v4927_v19  ;;  %v4928_v9 = vadd.f32 %v4896_v56, %v4831_v34  ;;  %v5249_v3 = vadd.f32 %v5217_v6, %v9382_v53  ;;  %v5220_v29 = vld [vmem:[#allocation3 + $0x98] sm:$0xff]  ;;  %v4901_v53 = vld [vmem:[#allocation3 + $0xd0] sm:$0xff]  ;;  %v5677_v62 = vld [vmem:[#allocation3] sm:$0xff] }
 0x2d7   : > { %v9446_v7 = vpop.f32.mrb[150].mxu0  ;;  %4962 = vst.msk [vmem:[#allocation3 + $0xb8] sm:$0xff] %vm408_vm1, %v4930_v35  ;;  %5283 = vst.msk [vmem:[#allocation3 + $0x90] sm:$0xff] %vm408_vm1, %v5251_v54  ;;  %v5252_v52 = vadd.f32 %v9386_v47, %v5220_v29  ;;  %v5218_v37 = vld [vmem:[#allocation3 + $0x88] sm:$0xff] }
 0x2d8   : > { %v9450_v46 = vpop.f32.mrb[151].mxu0  ;;  %4960 = vst.msk [vmem:[#allocation3 + $0xa8] sm:$0xff] %vm408_vm1, %v4928_v9  ;;  %5281 = vst.msk [vmem:[#allocation3 + $0x80] sm:$0xff] %vm408_vm1, %v5249_v3  ;;  %v5250_v48 = vadd.f32 %v5218_v37, %v9390_v4  ;;  %v5678_v6 = vld [vmem:[#allocation3 + $0x8] sm:$0xff] }
 0x2d9   : > { %5284 = vst.msk [vmem:[#allocation3 + $0x98] sm:$0xff] %vm408_vm1, %v5252_v52 }
 0x2da   : > { %v6884_v26 = vpop.f32.mrb[128].mxu1  ;;  %5282 = vst.msk [vmem:[#allocation3 + $0x88] sm:$0xff] %vm408_vm1, %v5250_v48  ;;  %v5683_v48 = vld [vmem:[#allocation3 + $0x30] sm:$0xff] }
 0x2db   : > { %v4933_v44 = vadd.f32 %v6884_v26, %v4901_v53  ;;  %v4844_v2 = vpop.f32.mrb[129].mxu1 }
 0x2dc   : > { %v4931_v17 = vadd.f32 %v4899_v20, %v4844_v2  ;;  %v6885_v32 = vpop.f32.mrb[130].mxu1  ;;  %v5223_v47 = vld [vmem:[#allocation3 + $0xb0] sm:$0xff] }
 0x2dd   : > { %4965 = vst.msk [vmem:[#allocation3 + $0xd0] sm:$0xff] %vm408_vm1, %v4933_v44  ;;  %v4934_v15 = vadd.f32 %v6885_v32, %v4902_v58  ;;  %v4847_v50 = vpop.f32.mrb[131].mxu1  ;;  %v5255_v4 = vadd.f32 %v9399_v23, %v5223_v47  ;;  %v5221_v16 = vld [vmem:[#allocation3 + $0xa0] sm:$0xff]  ;;  %v5682_v58 = vld [vmem:[#allocation3 + $0x28] sm:$0xff] }
 0x2de   : > { %4963 = vst.msk [vmem:[#allocation3 + $0xc0] sm:$0xff] %vm408_vm1, %v4931_v17  ;;  %v4932_v10 = vadd.f32 %v4900_v28, %v4847_v50  ;;  %v5253_v21 = vadd.f32 %v5221_v16, %v9402_v24  ;;  %v5224_v22 = vld [vmem:[#allocation3 + $0xb8] sm:$0xff]  ;;  %v5681_v44 = vld [vmem:[#allocation3 + $0x20] sm:$0xff]  ;;  %v5687_v28 = vld [vmem:[#allocation3 + $0x50] sm:$0xff] }
 0x2df   : > { %4966 = vst.msk [vmem:[#allocation3 + $0xd8] sm:$0xff] %vm408_vm1, %v4934_v15  ;;  %5287 = vst.msk [vmem:[#allocation3 + $0xb0] sm:$0xff] %vm408_vm1, %v5255_v4  ;;  %v5256_v40 = vadd.f32 %v9406_v43, %v5224_v22  ;;  %v5222_v5 = vld [vmem:[#allocation3 + $0xa8] sm:$0xff]  ;;  %v5684_v17 = vld [vmem:[#allocation3 + $0x38] sm:$0xff] }
 0x2e0   : > { %4964 = vst.msk [vmem:[#allocation3 + $0xc8] sm:$0xff] %vm408_vm1, %v4932_v10  ;;  %5285 = vst.msk [vmem:[#allocation3 + $0xa0] sm:$0xff] %vm408_vm1, %v5253_v21  ;;  %v5254_v23 = vadd.f32 %v5222_v5, %v9410_v30  ;;  %v9502_v15 = vld [vmem:[%s9623_s5] ss:$0 sm:$0xff] }
 0x2e1   : > { %5288 = vst.msk [vmem:[#allocation3 + $0xb8] sm:$0xff] %vm408_vm1, %v5256_v40  ;;  %v5685_v10 = vld [vmem:[#allocation3 + $0x40] sm:$0xff]  ;;  %v5688_v40 = vld [vmem:[#allocation3 + $0x58] sm:$0xff] }
 0x2e2   : > { %v6888_v42 = vpop.f32.mrb[132].mxu1  ;;  %5286 = vst.msk [vmem:[#allocation3 + $0xa8] sm:$0xff] %vm408_vm1, %v5254_v23 }
 0x2e3   : > { %v4937_v24 = vadd.f32 %v6888_v42, %v4905_v41  ;;  %v4860_v63 = vpop.f32.mrb[133].mxu1  ;;  %v5686_v41 = vld [vmem:[#allocation3 + $0x48] sm:$0xff] }
 0x2e4   : > { %v4935_v31 = vadd.f32 %v4903_v61, %v4860_v63  ;;  %v6889_v57 = vpop.f32.mrb[134].mxu1  ;;  %v5227_v43 = vld [vmem:[#allocation3 + $0xd0] sm:$0xff] }
 0x2e5   : > { %4969 = vst.msk [vmem:[#allocation3 + $0xf0] sm:$0xff] %vm408_vm1, %v4937_v24  ;;  %v4938_v45 = vadd.f32 %v6889_v57, %v4906_v51  ;;  %v4863_v1 = vpop.f32.mrb[135].mxu1  ;;  %v5259_v30 = vadd.f32 %v9419_v13, %v5227_v43  ;;  %v5225_v18 = vld [vmem:[#allocation3 + $0xc0] sm:$0xff]  ;;  %v5691_v43 = vld [vmem:[#allocation3 + $0x70] sm:$0xff] }
 0x2e6   : > { %4967 = vst.msk [vmem:[#allocation3 + $0xe0] sm:$0xff] %vm408_vm1, %v4935_v31  ;;  %v4936_v14 = vadd.f32 %v4904_v25, %v4863_v1  ;;  %v5257_v49 = vadd.f32 %v5225_v18, %v9422_v60  ;;  %v5228_v59 = vld [vmem:[#allocation3 + $0xd8] sm:$0xff]  ;;  %v9509_v24 = vld [vmem:[%s9624_s6] ss:$0 sm:$0xff] }
 0x2e7   : > { %4970 = vst.msk [vmem:[#allocation3 + $0xf8] sm:$0xff] %vm408_vm1, %v4938_v45  ;;  %5291 = vst.msk [vmem:[#allocation3 + $0xd0] sm:$0xff] %vm408_vm1, %v5259_v30  ;;  %v5260_v39 = vadd.f32 %v9426_v0, %v5228_v59  ;;  %v5226_v36 = vld [vmem:[#allocation3 + $0xc8] sm:$0xff]  ;;  %v5680_v0 = vld [vmem:[#allocation3 + $0x18] sm:$0xff] }
 0x2e8   : > { %4968 = vst.msk [vmem:[#allocation3 + $0xe8] sm:$0xff] %vm408_vm1, %v4936_v14  ;;  %5289 = vst.msk [vmem:[#allocation3 + $0xc0] sm:$0xff] %vm408_vm1, %v5257_v49  ;;  %v5258_v13 = vadd.f32 %v5226_v36, %v9430_v55  ;;  %v5689_v30 = vld [vmem:[#allocation3 + $0x60] sm:$0xff]  ;;  %v5692_v49 = vld [vmem:[#allocation3 + $0x78] sm:$0xff] }
 0x2e9   : > { %5292 = vst.msk [vmem:[#allocation3 + $0xd8] sm:$0xff] %vm408_vm1, %v5260_v39 }
 0x2ea   : > { %v6928_v8 = vpop.f32.mrb[136].mxu1  ;;  %5290 = vst.msk [vmem:[#allocation3 + $0xc8] sm:$0xff] %vm408_vm1, %v5258_v13 }
 0x2eb   : > { %v5711_v60 = vadd.f32 %v6928_v8, %v5679_v38  ;;  %v5550_v19 = vpop.f32.mrb[137].mxu1  ;;  %v5690_v8 = vld [vmem:[#allocation3 + $0x68] sm:$0xff] }
 0x2ec   : > { %v5709_v27 = vadd.f32 %v5677_v62, %v5550_v19  ;;  %v5231_v33 = vld [vmem:[#allocation3 + $0xf0] sm:$0xff]  ;;  %v6929_v35 = vpop.f32.mrb[138].mxu1 }
 0x2ed   : > { %5743 = vst.msk [vmem:[#allocation3 + $0x10] sm:$0xff] %vm408_vm1, %v5711_v60  ;;  %v5263_v34 = vadd.f32 %v9439_v12, %v5231_v33  ;;  %v5712_v56 = vadd.f32 %v6929_v35, %v5680_v0  ;;  %v5229_v54 = vld [vmem:[#allocation3 + $0xe0] sm:$0xff]  ;;  %v5553_v55 = vpop.f32.mrb[139].mxu1 }
 0x2ee   : > { %5741 = vst.msk [vmem:[#allocation3] sm:$0xff] %vm408_vm1, %v5709_v27  ;;  %v5261_v9 = vadd.f32 %v5229_v54, %v9442_v11  ;;  %v5710_v3 = vadd.f32 %v5678_v6, %v5553_v55  ;;  %v5232_v29 = vld [vmem:[#allocation3 + $0xf8] sm:$0xff]  ;;  %v5695_v27 = vld [vmem:[#allocation3 + $0x90] sm:$0xff]  ;;  %v5693_v0 = vld [vmem:[#allocation3 + $0x80] sm:$0xff] }
 0x2ef   : > { %5295 = vst.msk [vmem:[#allocation3 + $0xf0] sm:$0xff] %vm408_vm1, %v5263_v34  ;;  %5744 = vst.msk [vmem:[#allocation3 + $0x18] sm:$0xff] %vm408_vm1, %v5712_v56  ;;  %v5264_v52 = vadd.f32 %v9446_v7, %v5232_v29  ;;  %v5230_v37 = vld [vmem:[#allocation3 + $0xe8] sm:$0xff]  ;;  %v5696_v54 = vld [vmem:[#allocation3 + $0x98] sm:$0xff] }
 0x2f0   : > { %5293 = vst.msk [vmem:[#allocation3 + $0xe0] sm:$0xff] %vm408_vm1, %v5261_v9  ;;  %5742 = vst.msk [vmem:[#allocation3 + $0x8] sm:$0xff] %vm408_vm1, %v5710_v3  ;;  %v5262_v12 = vadd.f32 %v5230_v37, %v9450_v46  ;;  %v5694_v3 = vld [vmem:[#allocation3 + $0x88] sm:$0xff] }
 0x2f1   : > { %5296 = vst.msk [vmem:[#allocation3 + $0xf8] sm:$0xff] %vm408_vm1, %v5264_v52 }
 0x2f2   : > { %5294 = vst.msk [vmem:[#allocation3 + $0xe8] sm:$0xff] %vm408_vm1, %v5262_v12  ;;  %v6932_v11 = vpop.f32.mrb[140].mxu1 }
 0x2f3   : > { %v5715_v26 = vadd.f32 %v6932_v11, %v5683_v48  ;;  %v5566_v53 = vpop.f32.mrb[141].mxu1  ;;  %v5699_v48 = vld [vmem:[#allocation3 + $0xb0] sm:$0xff] }
 0x2f4   : > { %v5713_v2 = vadd.f32 %v5681_v44, %v5566_v53  ;;  %v6933_v20 = vpop.f32.mrb[142].mxu1 }
 0x2f5   : > { %5747 = vst.msk [vmem:[#allocation3 + $0x30] sm:$0xff] %vm408_vm1, %v5715_v26  ;;  %v5716_v7 = vadd.f32 %v6933_v20, %v5684_v17  ;;  %v5569_v32 = vpop.f32.mrb[143].mxu1 }
 0x2f6   : > { %5745 = vst.msk [vmem:[#allocation3 + $0x20] sm:$0xff] %vm408_vm1, %v5713_v2  ;;  %v5714_v46 = vadd.f32 %v5682_v58, %v5569_v32  ;;  %v5697_v2 = vld [vmem:[#allocation3 + $0xa0] sm:$0xff] }
 0x2f7   : > { %5748 = vst.msk [vmem:[#allocation3 + $0x38] sm:$0xff] %vm408_vm1, %v5716_v7  ;;  %v5773_v47 = vld [vmem:[#allocation3] ss:$2 sm:$0xff]  ;;  %v5700_v7 = vld [vmem:[#allocation3 + $0xb8] sm:$0xff] }
 0x2f8   : > { %5746 = vst.msk [vmem:[#allocation3 + $0x28] sm:$0xff] %vm408_vm1, %v5714_v46  ;;  %v5803_v5 = vadd.f32 %v9502_v15, %v5773_v47 }
 0x2fa   : > { %v6936_v50 = vpop.f32.mrb[144].mxu1  ;;  %v5826_v57 = vmul.f32 %v9509_v24, %v5803_v5  ;;  %vm5811_vm10 = vcmp.ge.f32.partialorder %v5803_v5, 0.0 }
 0x2fb   : > { %v5719_v4 = vadd.f32 %v6936_v50, %v5687_v28  ;;  %v5582_v16 = vpop.f32.mrb[145].mxu1  ;;  %v5698_v50 = vld [vmem:[#allocation3 + $0xa8] sm:$0xff] }
 0x2fc   : > { %v5717_v21 = vadd.f32 %v5685_v10, %v5582_v16  ;;  %v6937_v22 = vpop.f32.mrb[146].mxu1  ;;  %v5834_v59 = vsel %vm5811_vm10, %v5803_v5, %v5826_v57  ;;  %v5701_v5 = vld [vmem:[#allocation3 + $0xc0] sm:$0xff]  ;;  %v5702_v57 = vld [vmem:[#allocation3 + $0xc8] sm:$0xff] }
 0x2fd   : > { %5751 = vst.msk [vmem:[#allocation3 + $0x50] sm:$0xff] %vm408_vm1, %v5719_v4  ;;  %v5720_v23 = vadd.f32 %v6937_v22, %v5688_v40  ;;  %v5585_v42 = vpop.f32.mrb[147].mxu1 }
 0x2fe   : > { %5749 = vst.msk [vmem:[#allocation3 + $0x40] sm:$0xff] %vm408_vm1, %v5717_v21  ;;  %v5718_v63 = vadd.f32 %v5686_v41, %v5585_v42  ;;  %v5703_v21 = vld [vmem:[#allocation3 + $0xd0] sm:$0xff]  ;;  %v5704_v41 = vld [vmem:[#allocation3 + $0xd8] sm:$0xff] }
 0x2ff   : > { %5752 = vst.msk [vmem:[#allocation3 + $0x58] sm:$0xff] %vm408_vm1, %v5720_v23  ;;  %v5775_v61 = vld [vmem:[#allocation3 + $0x20] ss:$2 sm:$0xff] }
 0x300   : > { %5750 = vst.msk [vmem:[#allocation3 + $0x48] sm:$0xff] %vm408_vm1, %v5718_v63  ;;  %v5804_v31 = vadd.f32 %v9502_v15, %v5775_v61 }
 0x302   : > { %v6940_v51 = vpop.f32.mrb[148].mxu1  ;;  %vm5812_vm11 = vcmp.ge.f32.partialorder %v5804_v31, 0.0  ;;  %v5827_v45 = vmul.f32 %v9509_v24, %v5804_v31 }
 0x303   : > { %v5723_v1 = vadd.f32 %v6940_v51, %v5691_v43  ;;  %v5598_v25 = vpop.f32.mrb[149].mxu1 }
 0x304   : > { %v5721_v18 = vadd.f32 %v5689_v30, %v5598_v25  ;;  %v6941_v14 = vpop.f32.mrb[150].mxu1  ;;  %v5835_v39 = vsel %vm5812_vm11, %v5804_v31, %v5827_v45  ;;  %v5707_v30 = vld [vmem:[#allocation3 + $0xf0] sm:$0xff] }
 0x305   : > { %5755 = vst.msk [vmem:[#allocation3 + $0x70] sm:$0xff] %vm408_vm1, %v5723_v1  ;;  %v5724_v36 = vadd.f32 %v6941_v14, %v5692_v49  ;;  %v5601_v13 = vpop.f32.mrb[151].mxu1  ;;  %v5842_v38 = vpack.c.bf16 %v5835_v39, %v5834_v59  ;;  %v5705_v59 = vld [vmem:[#allocation3 + $0xe0] sm:$0xff] }
 0x306   : > { %5753 = vst.msk [vmem:[#allocation3 + $0x60] sm:$0xff] %vm408_vm1, %v5721_v18  ;;  %v5722_v60 = vadd.f32 %v5690_v8, %v5601_v13  ;;  %v5708_v13 = vld [vmem:[#allocation3 + $0xf8] sm:$0xff] }
 0x307   : > { %5756 = vst.msk [vmem:[#allocation3 + $0x78] sm:$0xff] %vm408_vm1, %v5724_v36  ;;  %6970 = vmatprep.mubr.msk.bf16.mxu0 %vm408_vm1, %v5842_v38  ;;  %v5777_v19 = vld [vmem:[#allocation3 + $0x40] ss:$2 sm:$0xff] }
 0x308   : > { %5754 = vst.msk [vmem:[#allocation3 + $0x68] sm:$0xff] %vm408_vm1, %v5722_v60  ;;  %v5805_v55 = vadd.f32 %v9502_v15, %v5777_v19 }
 0x30a   : > { %v6944_v62 = vpop.f32.mrb[152].mxu1  ;;  %v5828_v12 = vmul.f32 %v9509_v24, %v5805_v55  ;;  %vm5813_vm6 = vcmp.ge.f32.partialorder %v5805_v55, 0.0 }
 0x30b   : > { %v5727_v33 = vadd.f32 %v6944_v62, %v5695_v27  ;;  %v5614_v35 = vpop.f32.mrb[153].mxu1  ;;  %v5706_v62 = vld [vmem:[#allocation3 + $0xe8] sm:$0xff] }
 0x30c   : > { %v5725_v34 = vadd.f32 %v5693_v0, %v5614_v35  ;;  %v6945_v56 = vpop.f32.mrb[154].mxu1  ;;  %v5836_v32 = vsel %vm5813_vm6, %v5805_v55, %v5828_v12 }
 0x30d   : > { %5759 = vst.msk [vmem:[#allocation3 + $0x90] sm:$0xff] %vm408_vm1, %v5727_v33  ;;  %v5728_v6 = vadd.f32 %v6945_v56, %v5696_v54  ;;  %v5617_v9 = vpop.f32.mrb[155].mxu1 }
 0x30e   : > { %5757 = vst.msk [vmem:[#allocation3 + $0x80] sm:$0xff] %vm408_vm1, %v5725_v34  ;;  %v5726_v29 = vadd.f32 %v5694_v3, %v5617_v9 }
 0x30f   : > { %5760 = vst.msk [vmem:[#allocation3 + $0x98] sm:$0xff] %vm408_vm1, %v5728_v6  ;;  %v5779_v52 = vld [vmem:[#allocation3 + $0x60] ss:$2 sm:$0xff] }
 0x310   : > { %5758 = vst.msk [vmem:[#allocation3 + $0x88] sm:$0xff] %vm408_vm1, %v5726_v29  ;;  %v5806_v37 = vadd.f32 %v9502_v15, %v5779_v52  ;;  %v6413_v29 = vld [vmem:[%s9626_s8] ss:$0 sm:$0xff] }
 0x312   : > { %v6948_v11 = vpop.f32.mrb[156].mxu1  ;;  %vm5814_vm13 = vcmp.ge.f32.partialorder %v5806_v37, 0.0  ;;  %v5829_v26 = vmul.f32 %v9509_v24, %v5806_v37 }
 0x313   : > { %v5731_v53 = vadd.f32 %v6948_v11, %v5699_v48  ;;  %v5630_v44 = vpop.f32.mrb[157].mxu1 }
 0x314   : > { %v5729_v20 = vadd.f32 %v5697_v2, %v5630_v44  ;;  %v6949_v17 = vpop.f32.mrb[158].mxu1  ;;  %v5837_v58 = vsel %vm5814_vm13, %v5806_v37, %v5829_v26 }
 0x315   : > { %5763 = vst.msk [vmem:[#allocation3 + $0xb0] sm:$0xff] %vm408_vm1, %v5731_v53  ;;  %v5732_v46 = vadd.f32 %v6949_v17, %v5700_v7  ;;  %v5633_v47 = vpop.f32.mrb[159].mxu1  ;;  %v5843_v28 = vpack.c.bf16 %v5837_v58, %v5836_v32 }
 0x316   : > { %5761 = vst.msk [vmem:[#allocation3 + $0xa0] sm:$0xff] %vm408_vm1, %v5729_v20  ;;  %v5730_v4 = vadd.f32 %v5698_v50, %v5633_v47 }
 0x317   : > { %5764 = vst.msk [vmem:[#allocation3 + $0xb8] sm:$0xff] %vm408_vm1, %v5732_v46  ;;  %6971 = vmatmul.mubr.msk.bf16.vlgmr.msra.gmra.mrb[152].mxu0 %vm408_vm1, %v5843_v28  ;;  %v5781_v16 = vld [vmem:[#allocation3 + $0x80] ss:$2 sm:$0xff] }
 0x318   : > { %5762 = vst.msk [vmem:[#allocation3 + $0xa8] sm:$0xff] %vm408_vm1, %v5730_v4  ;;  %v5807_v63 = vadd.f32 %v9502_v15, %v5781_v16 }
 0x31a   : > { %v6952_v10 = vpop.f32.mrb[160].mxu1  ;;  %v5830_v1 = vmul.f32 %v9509_v24, %v5807_v63  ;;  %vm5815_vm14 = vcmp.ge.f32.partialorder %v5807_v63, 0.0 }
 0x31b   : > { %v5735_v22 = vadd.f32 %v6952_v10, %v5703_v21  ;;  %v5646_v40 = vpop.f32.mrb[161].mxu1 }
 0x31c   : > { %v5733_v23 = vadd.f32 %v5701_v5, %v5646_v40  ;;  %v6953_v42 = vpop.f32.mrb[162].mxu1  ;;  %v5838_v8 = vsel %vm5815_vm14, %v5807_v63, %v5830_v1 }
 0x31d   : > { %5767 = vst.msk [vmem:[#allocation3 + $0xd0] sm:$0xff] %vm408_vm1, %v5735_v22  ;;  %v5736_v61 = vadd.f32 %v6953_v42, %v5704_v41  ;;  %v5649_v31 = vpop.f32.mrb[163].mxu1 }
 0x31e   : > { %5765 = vst.msk [vmem:[#allocation3 + $0xc0] sm:$0xff] %vm408_vm1, %v5733_v23  ;;  %v5734_v51 = vadd.f32 %v5702_v57, %v5649_v31 }
 0x31f   : > { %5768 = vst.msk [vmem:[#allocation3 + $0xd8] sm:$0xff] %vm408_vm1, %v5736_v61  ;;  %v5783_v43 = vld [vmem:[#allocation3 + $0xa0] ss:$2 sm:$0xff] }
 0x320   : > { %5766 = vst.msk [vmem:[#allocation3 + $0xc8] sm:$0xff] %vm408_vm1, %v5734_v51  ;;  %v5808_v45 = vadd.f32 %v9502_v15, %v5783_v43 }
 0x322   : > { %v6956_v25 = vpop.f32.mrb[164].mxu1  ;;  %vm5816_vm5 = vcmp.ge.f32.partialorder %v5808_v45, 0.0  ;;  %v5831_v18 = vmul.f32 %v9509_v24, %v5808_v45 }
 0x323   : > { %v5739_v14 = vadd.f32 %v6956_v25, %v5707_v30  ;;  %v5662_v49 = vpop.f32.mrb[165].mxu1 }
 0x324   : > { %v5737_v39 = vadd.f32 %v5705_v59, %v5662_v49  ;;  %v6957_v36 = vpop.f32.mrb[166].mxu1  ;;  %v5839_v38 = vsel %vm5816_vm5, %v5808_v45, %v5831_v18 }
 0x325   : > { %5771 = vst.msk [vmem:[#allocation3 + $0xf0] sm:$0xff] %vm408_vm1, %v5739_v14  ;;  %v5740_v60 = vadd.f32 %v6957_v36, %v5708_v13  ;;  %v5665_v19 = vpop.f32.mrb[167].mxu1  ;;  %v5844_v27 = vpack.c.bf16 %v5839_v38, %v5838_v8 }
 0x326   : > { %5769 = vst.msk [vmem:[#allocation3 + $0xe0] sm:$0xff] %vm408_vm1, %v5737_v39  ;;  %v5738_v33 = vadd.f32 %v5706_v62, %v5665_v19 }
 0x327   : > { %5772 = vst.msk [vmem:[#allocation3 + $0xf8] sm:$0xff] %vm408_vm1, %v5740_v60  ;;  %6974 = vmatprep.mubr.msk.bf16.mxu0 %vm408_vm1, %v5844_v27  ;;  %v5785_v35 = vld [vmem:[#allocation3 + $0xc0] ss:$2 sm:$0xff] }
 0x328   : > { %5770 = vst.msk [vmem:[#allocation3 + $0xe8] sm:$0xff] %vm408_vm1, %v5738_v33  ;;  %v5809_v0 = vadd.f32 %v9502_v15, %v5785_v35 }
 0x32a   : > { %v5832_v54 = vmul.f32 %v9509_v24, %v5809_v0  ;;  %vm5817_vm4 = vcmp.ge.f32.partialorder %v5809_v0, 0.0 }
 0x32c   : > { %v5840_v6 = vsel %vm5817_vm4, %v5809_v0, %v5832_v54 }
 0x32f   : > { %v5787_v34 = vld [vmem:[#allocation3 + $0xe0] ss:$2 sm:$0xff] }
 0x330   : > { %v5810_v56 = vadd.f32 %v9502_v15, %v5787_v34 }
 0x332   : > { %vm5818_vm3 = vcmp.ge.f32.partialorder %v5810_v56, 0.0  ;;  %v5833_v55 = vmul.f32 %v9509_v24, %v5810_v56 }
 0x334   : > { %v5841_v9 = vsel %vm5818_vm3, %v5810_v56, %v5833_v55 }
 0x335   : > { %v5845_v3 = vpack.c.bf16 %v5841_v9, %v5840_v6 }
 0x337   : > { %6975 = vmatmul.mubr.msk.bf16.gmra.mrb[156].mxu0 %vm408_vm1, %v5845_v3 }
 0x3ea   : > { %v6972_v52 = vpop.f32.mrb[152].mxu0 }
 0x3eb   : > { %v6037_v15 = vadd.f32 %v6972_v52, %v6413_v29  ;;  %v5997_v37 = vpop.f32.mrb[153].mxu0 }
 0x3ec   : > { %v6035_v12 = vadd.f32 %v6413_v29, %v5997_v37  ;;  %v6973_v11 = vpop.f32.mrb[154].mxu0 }
 0x3ed   : > { %v6431_v48 = vpack.c.bf16 %v6037_v15, %v6037_v15  ;;  %v6038_v24 = vadd.f32 %v6973_v11, %v6413_v29  ;;  %v6000_v26 = vpop.f32.mrb[155].mxu0 }
 0x3ee   : > { %v6429_v53 = vpack.c.bf16 %v6035_v12, %v6035_v12  ;;  %v6036_v44 = vadd.f32 %v6413_v29, %v6000_v26 }
 0x3ef   : > { %6078 = vst.msk [vmem:[%s394_s12 + $0x8] sm:$0xf] %vm6075_vm12, %v6431_v48  ;;  %v6432_v2 = vpack.c.bf16 %v6038_v24, %v6038_v24 }
 0x3f0   : > { %6076 = vst.msk [vmem:[%s394_s12] sm:$0xf] %vm6075_vm12, %v6429_v53  ;;  %v6430_v20 = vpack.c.bf16 %v6036_v44, %v6036_v44 }
 0x3f1   : > { %6079 = vst.msk [vmem:[%s394_s12 + $0xc] sm:$0xf] %vm6075_vm12, %v6432_v2 }
 0x3f2   : > { %6077 = vst.msk [vmem:[%s394_s12 + $0x4] sm:$0xf] %vm6075_vm12, %v6430_v20 }
 0x40a   : > { %v6976_v17 = vpop.f32.mrb[156].mxu0 }
 0x40b   : > { %v6041_v7 = vadd.f32 %v6976_v17, %v6413_v29  ;;  %v6013_v32 = vpop.f32.mrb[157].mxu0 }
 0x40c   : > { %v6039_v58 = vadd.f32 %v6413_v29, %v6013_v32  ;;  %v6977_v46 = vpop.f32.mrb[158].mxu0 }
 0x40d   : > { %v6435_v47 = vpack.c.bf16 %v6041_v7, %v6041_v7  ;;  %v6042_v50 = vadd.f32 %v6977_v46, %v6413_v29  ;;  %v6016_v28 = vpop.f32.mrb[159].mxu0 }
 0x40e   : > { %v6433_v4 = vpack.c.bf16 %v6039_v58, %v6039_v58  ;;  %v6040_v16 = vadd.f32 %v6413_v29, %v6016_v28 }
 0x40f   : > { %6082 = vst.msk [vmem:[%s394_s12 + $0x18] sm:$0xf] %vm6075_vm12, %v6435_v47  ;;  %v6436_v10 = vpack.c.bf16 %v6042_v50, %v6042_v50 }
 0x410   : > { %6080 = vst.msk [vmem:[%s394_s12 + $0x10] sm:$0xf] %vm6075_vm12, %v6433_v4  ;;  %v6434_v21 = vpack.c.bf16 %v6040_v16, %v6040_v16 }
 0x411   : > { %6083 = vst.msk [vmem:[%s394_s12 + $0x1c] sm:$0xf] %vm6075_vm12, %v6436_v10 }
 0x412   : > { %6081 = vst.msk [vmem:[%s394_s12 + $0x14] sm:$0xf] %vm6075_vm12, %v6434_v21 }
 0x413   : > { %7077 = shalt.err (!%p7074_p3)
}
 0x414   : > { %s7078_s14 = scalar_lea.hbm %s9568_s13, 512  ;;  %s7082_s30 = scalar_lea.hbm %s9629_s11, 1024 }
 0x415   : > { %p7079_p4 = scmp.ne.s32.totalorder %s9568_s13, %s7078_s14  ;;  %p7083_p9 = scmp.lt.u32.totalorder %s9568_s13, %s9629_s11 }
 0x416   : > { %p7084_p10 = scmp.lt.u32.totalorder %s7082_s30, %s7078_s14  ;;  %p7086_p12 = scmp.lt.u32.totalorder %s7078_s14, %s9568_s13 }
 0x417   : > { %p7080_p7 = pnand %p7079_p4, %p7231_p5 }
 0x418   : > { %p7085_p11 = por %p7084_p10, %p7083_p9 }
 0x419   : > { %p7081_p8 = pneg %p7080_p7 }
 0x41a   : > { %p7087_p13 = por %p7086_p12, %p7085_p11 }
 0x41c   : > { %p7088_p0 = pnand %p7087_p13, %p7081_p8 }
 0x41e   : > { %7091 = shalt.err (!%p7088_p0)
}
 0x41f   : > { %s7131_s15 = smov 64   ;;  %s7132_s24 = smov 4  }
 0x420   : > { %7001 = dma.vmem_to_hbm [thread:$0]  (%p7231_p5), %s9570_s25, 512, %s9568_s13, %s9577_s21, %s7131_s15, %s7131_s15, %s7132_s24  }
 0x421 PF: > { %p7007_p1 = scmp.ge.s32.totalorder %s7126_s20, 2  ;;  %s6113_s12 = sand.u32 1, %s7114_s17  }
 0x422   : > { %s6114_s14 = scalar_lea.sflag [#allocation5], %s6113_s12 }
 0x423   : > { %p7004_p2 = pnand %p7007_p1, %p7235_p6 }
 0x425   : > { %7109 = dma.done.wait (!%p7004_p2), %s6114_s14, 512  }
 0x426   : > { %7111 = vsyncadd (!%p7004_p2), %s6114_s14, 4294966784  ;;  %p21_p3 = scmp.ge.s32.totalorder %s7218_s23, 4   ;;  %s9900_s17 = smov %s7118_s18 }
 0x427   : > { %s9901_s18 = smov %s7122_s19  ;;  %s9902_s19 = smov %s7229_s26 }
 0x428   : > { %s9903_s20 = smov %s7218_s23  ;;  %23 = sbr.rel (!%p21_p3) target bundleno = 3 (0x3), region = 117 }
 0x42f   :  { %6119 = vsyncpa [#allocation5], 1 }
 0x430   :  { %6121 = vsyncpa [#allocation5 + $0x1], 1 }

</bundles_post_ra>
